<compile_context>
chip_gen: v6e
topology: v6e:2x2x1
jax: 0.10.0
libtpu: 0.0.40
codegen_flags: <defaults>
</compile_context>

<pallas_src>
import jax
import jax.numpy as jnp
from jax.experimental import pallas as pl
from jax.experimental.pallas import tpu as pltpu

LATENT_DIM = 100
LATENT_PAD = 128           # 100 padded up to one full lane tile
H1, H2, H3 = 256, 512, 1024
OUT = 28 * 28              # 784
OUT_PAD = 896              # 7 * 128 -> lane-dense output slab


def generator_kernel(z_ref,
                     w1_ref, b1_ref,
                     w2_ref, b2_ref,
                     w3_ref, b3_ref,
                     w4_ref, b4_ref,
                     o_ref):
    # Layer 1: Linear(128 -> 256) + ReLU   (bf16 inputs, f32 accumulation)
    h = jnp.dot(z_ref[...], w1_ref[...], preferred_element_type=jnp.float32)
    h = jnp.maximum(h + b1_ref[...], 0.0).astype(jnp.bfloat16)
    # Layer 2: Linear(256 -> 512) + ReLU
    h = jnp.dot(h, w2_ref[...], preferred_element_type=jnp.float32)
    h = jnp.maximum(h + b2_ref[...], 0.0).astype(jnp.bfloat16)
    # Layer 3: Linear(512 -> 1024) + ReLU
    h = jnp.dot(h, w3_ref[...], preferred_element_type=jnp.float32)
    h = jnp.maximum(h + b3_ref[...], 0.0).astype(jnp.bfloat16)
    # Layer 4: Linear(1024 -> 896[=784 padded]) + Tanh, stored as f32
    h = jnp.dot(h, w4_ref[...], preferred_element_type=jnp.float32)
    o_ref[...] = jnp.tanh(h + b4_ref[...])


def init_params(key):
    """f32 params with PyTorch nn.Linear-style shapes, stored (in, out)."""
    dims = [(LATENT_DIM, H1), (H1, H2), (H2, H3), (H3, OUT)]
    params = []
    for (fan_in, fan_out) in dims:
        key, kw, kb = jax.random.split(key, 3)
        bound = 1.0 / jnp.sqrt(jnp.float32(fan_in))
        w = jax.random.uniform(kw, (fan_in, fan_out), jnp.float32, -bound, bound)
        b = jax.random.uniform(kb, (1, fan_out), jnp.float32, -bound, bound)
        params.append((w, b))
    return params


def pack_params(params):
    """Pad to lane-aligned shapes and cast weights to bf16 (biases kept f32)."""
    (w1, b1), (w2, b2), (w3, b3), (w4, b4) = params
    w1p = jnp.zeros((LATENT_PAD, H1), jnp.float32).at[:LATENT_DIM, :].set(w1)
    w4p = jnp.zeros((H3, OUT_PAD), jnp.float32).at[:, :OUT].set(w4)
    b4p = jnp.zeros((1, OUT_PAD), jnp.float32).at[:, :OUT].set(b4)
    return [
        (w1p.astype(jnp.bfloat16), b1),
        (w2.astype(jnp.bfloat16), b2),
        (w3.astype(jnp.bfloat16), b3),
        (w4p.astype(jnp.bfloat16), b4p),
    ]


def generator_forward(z, packed, *, tb=32):
    """z: (B, 100) float32 -> (B, 1, 28, 28) float32."""
    (w1, b1), (w2, b2), (w3, b3), (w4, b4) = packed
    B = z.shape[0]

    # Batch tile: multiple of 8 sublanes, no larger than the padded batch.
    tb = max(8, min(tb, ((B + 7) // 8) * 8))
    nb = pl.cdiv(B, tb)
    b_pad = nb * tb

    # Pad latent 100 -> 128 (zeros) and batch up to a multiple of tb; cast to bf16.
    z_p = jnp.zeros((b_pad, LATENT_PAD), jnp.bfloat16)
    z_p = z_p.at[:B, :LATENT_DIM].set(z.astype(jnp.bfloat16))

    def batch_spec(cols):
        return pl.BlockSpec((tb, cols), lambda i: (i, 0))

    def const_spec(shape):
        return pl.BlockSpec(shape, lambda i: (0, 0))

    flat = pl.pallas_call(
        generator_kernel,
        out_shape=jax.ShapeDtypeStruct((b_pad, OUT_PAD), jnp.float32),
        grid=(nb,),
        in_specs=[
            batch_spec(LATENT_PAD),
            const_spec(w1.shape), const_spec(b1.shape),
            const_spec(w2.shape), const_spec(b2.shape),
            const_spec(w3.shape), const_spec(b3.shape),
            const_spec(w4.shape), const_spec(b4.shape),
        ],
        out_specs=batch_spec(OUT_PAD),
        compiler_params=pltpu.CompilerParams(
            dimension_semantics=("parallel",),
            vmem_limit_bytes=32 << 20,
        ),
    )(z_p, w1, b1, w2, b2, w3, b3, w4, b4)

    # Slice off batch / lane padding, then view(B, 1, 28, 28).
    return flat[:B, :OUT].reshape(B, 1, 28, 28)


def reference_forward(z, packed):
    """Pure-JAX reference with the same (padded, bf16) arithmetic as the kernel."""
    B = z.shape[0]
    h = jnp.zeros((B, LATENT_PAD), jnp.bfloat16).at[:, :LATENT_DIM].set(
        z.astype(jnp.bfloat16))
    for i, (w, b) in enumerate(packed):
        h = jnp.dot(h, w, preferred_element_type=jnp.float32) + b
        if i < 3:
            h = jnp.maximum(h, 0.0).astype(jnp.bfloat16)
        else:
            h = jnp.tanh(h)
    return h[:, :OUT].reshape(B, 1, 28, 28)


if __name__ == "__main__":
    key = jax.random.PRNGKey(0)
    key, kz = jax.random.split(key)

    B = 64  # matches the PyTorch script's z = torch.randn(64, latent_dim)
    z = jax.random.normal(kz, (B, LATENT_DIM), jnp.float32)

    params = init_params(key)
    packed = pack_params(params)

    out = generator_forward(z, packed)
    out = jax.block_until_ready(out)

    assert out.shape == (B, 1, 28, 28), out.shape
    ref = reference_forward(z, packed)
    assert jnp.allclose(out, ref, atol=2e-3, rtol=2e-3), \
        float(jnp.max(jnp.abs(out - ref)))

    print("KERNEL_OK")
</pallas_src>

<mosaic_0001>
module attributes {stable_mosaic.version = 11 : i64} {
  func.func @generator_kernel(%arg0: i32, %arg1: memref<32x128xbf16, #tpu.memory_space<vmem>>, %arg2: memref<128x256xbf16, #tpu.memory_space<vmem>>, %arg3: memref<1x256xf32, #tpu.memory_space<vmem>>, %arg4: memref<256x512xbf16, #tpu.memory_space<vmem>>, %arg5: memref<1x512xf32, #tpu.memory_space<vmem>>, %arg6: memref<512x1024xbf16, #tpu.memory_space<vmem>>, %arg7: memref<1x1024xf32, #tpu.memory_space<vmem>>, %arg8: memref<1024x896xbf16, #tpu.memory_space<vmem>>, %arg9: memref<1x896xf32, #tpu.memory_space<vmem>>, %arg10: memref<32x896xf32, #tpu.memory_space<vmem>>) attributes {dimension_semantics = [#tpu.dimension_semantics<parallel>], iteration_bounds = array<i64: 2>, scalar_prefetch = 0 : i64, scratch_operands = 0 : i64, tpu.core_type = #tpu.core_type<tc>, window_params = [{transform_indices = @transform_0, window_bounds = array<i64: 32, 128>}, {pipeline_mode = #tpu.pipeline_mode<synchronous>, transform_indices = @transform_1, window_bounds = array<i64: 128, 256>}, {pipeline_mode = #tpu.pipeline_mode<synchronous>, transform_indices = @transform_2, window_bounds = array<i64: 1, 256>}, {pipeline_mode = #tpu.pipeline_mode<synchronous>, transform_indices = @transform_3, window_bounds = array<i64: 256, 512>}, {pipeline_mode = #tpu.pipeline_mode<synchronous>, transform_indices = @transform_4, window_bounds = array<i64: 1, 512>}, {pipeline_mode = #tpu.pipeline_mode<synchronous>, transform_indices = @transform_5, window_bounds = array<i64: 512, 1024>}, {pipeline_mode = #tpu.pipeline_mode<synchronous>, transform_indices = @transform_6, window_bounds = array<i64: 1, 1024>}, {pipeline_mode = #tpu.pipeline_mode<synchronous>, transform_indices = @transform_7, window_bounds = array<i64: 1024, 896>}, {pipeline_mode = #tpu.pipeline_mode<synchronous>, transform_indices = @transform_8, window_bounds = array<i64: 1, 896>}, {transform_indices = @transform_9, window_bounds = array<i64: 32, 896>}]} {
    %c0 = arith.constant 0 : index
    %c0_0 = arith.constant 0 : index
    %0 = vector.load %arg1[%c0, %c0_0] : memref<32x128xbf16, #tpu.memory_space<vmem>>, vector<32x128xbf16>
    %c0_1 = arith.constant 0 : index
    %c0_2 = arith.constant 0 : index
    %1 = vector.load %arg2[%c0_1, %c0_2] : memref<128x256xbf16, #tpu.memory_space<vmem>>, vector<128x256xbf16>
    %cst = arith.constant dense<0.000000e+00> : vector<32x256xf32>
    %2 = tpu.matmul %0, %1, %cst {dimension_numbers = #tpu.dot_dimension_numbers<[1], [0], [0], [1], [0, 0, 1, 1], [], []>} : vector<32x128xbf16>, vector<128x256xbf16>, vector<32x256xf32> -> vector<32x256xf32>
    %c0_3 = arith.constant 0 : index
    %c0_4 = arith.constant 0 : index
    %3 = vector.load %arg3[%c0_3, %c0_4] : memref<1x256xf32, #tpu.memory_space<vmem>>, vector<1x256xf32>
    %4 = vector.broadcast %3 : vector<1x256xf32> to vector<32x256xf32>
    %5 = arith.addf %2, %4 : vector<32x256xf32>
    %cst_5 = arith.constant 0.000000e+00 : f32
    %6 = vector.broadcast %cst_5 : f32 to vector<32x256xf32>
    %7 = arith.maximumf %5, %6 : vector<32x256xf32>
    %8 = arith.truncf %7 : vector<32x256xf32> to vector<32x256xbf16>
    %c0_6 = arith.constant 0 : index
    %c0_7 = arith.constant 0 : index
    %9 = vector.load %arg4[%c0_6, %c0_7] : memref<256x512xbf16, #tpu.memory_space<vmem>>, vector<256x512xbf16>
    %cst_8 = arith.constant dense<0.000000e+00> : vector<32x512xf32>
    %10 = tpu.matmul %8, %9, %cst_8 {dimension_numbers = #tpu.dot_dimension_numbers<[1], [0], [0], [1], [0, 0, 1, 1], [], []>} : vector<32x256xbf16>, vector<256x512xbf16>, vector<32x512xf32> -> vector<32x512xf32>
    %c0_9 = arith.constant 0 : index
    %c0_10 = arith.constant 0 : index
    %11 = vector.load %arg5[%c0_9, %c0_10] : memref<1x512xf32, #tpu.memory_space<vmem>>, vector<1x512xf32>
    %12 = vector.broadcast %11 : vector<1x512xf32> to vector<32x512xf32>
    %13 = arith.addf %10, %12 : vector<32x512xf32>
    %cst_11 = arith.constant 0.000000e+00 : f32
    %14 = vector.broadcast %cst_11 : f32 to vector<32x512xf32>
    %15 = arith.maximumf %13, %14 : vector<32x512xf32>
    %16 = arith.truncf %15 : vector<32x512xf32> to vector<32x512xbf16>
    %c0_12 = arith.constant 0 : index
    %c0_13 = arith.constant 0 : index
    %17 = vector.load %arg6[%c0_12, %c0_13] : memref<512x1024xbf16, #tpu.memory_space<vmem>>, vector<512x1024xbf16>
    %cst_14 = arith.constant dense<0.000000e+00> : vector<32x1024xf32>
    %18 = tpu.matmul %16, %17, %cst_14 {dimension_numbers = #tpu.dot_dimension_numbers<[1], [0], [0], [1], [0, 0, 1, 1], [], []>} : vector<32x512xbf16>, vector<512x1024xbf16>, vector<32x1024xf32> -> vector<32x1024xf32>
    %c0_15 = arith.constant 0 : index
    %c0_16 = arith.constant 0 : index
    %19 = vector.load %arg7[%c0_15, %c0_16] : memref<1x1024xf32, #tpu.memory_space<vmem>>, vector<1x1024xf32>
    %20 = vector.broadcast %19 : vector<1x1024xf32> to vector<32x1024xf32>
    %21 = arith.addf %18, %20 : vector<32x1024xf32>
    %cst_17 = arith.constant 0.000000e+00 : f32
    %22 = vector.broadcast %cst_17 : f32 to vector<32x1024xf32>
    %23 = arith.maximumf %21, %22 : vector<32x1024xf32>
    %24 = arith.truncf %23 : vector<32x1024xf32> to vector<32x1024xbf16>
    %c0_18 = arith.constant 0 : index
    %c0_19 = arith.constant 0 : index
    %25 = vector.load %arg8[%c0_18, %c0_19] : memref<1024x896xbf16, #tpu.memory_space<vmem>>, vector<1024x896xbf16>
    %cst_20 = arith.constant dense<0.000000e+00> : vector<32x896xf32>
    %26 = tpu.matmul %24, %25, %cst_20 {dimension_numbers = #tpu.dot_dimension_numbers<[1], [0], [0], [1], [0, 0, 1, 1], [], []>} : vector<32x1024xbf16>, vector<1024x896xbf16>, vector<32x896xf32> -> vector<32x896xf32>
    %c0_21 = arith.constant 0 : index
    %c0_22 = arith.constant 0 : index
    %27 = vector.load %arg9[%c0_21, %c0_22] : memref<1x896xf32, #tpu.memory_space<vmem>>, vector<1x896xf32>
    %28 = vector.broadcast %27 : vector<1x896xf32> to vector<32x896xf32>
    %29 = arith.addf %26, %28 : vector<32x896xf32>
    %30 = math.tanh %29 : vector<32x896xf32>
    %c0_23 = arith.constant 0 : index
    %c0_24 = arith.constant 0 : index
    %31 = vector.load %arg10[%c0_23, %c0_24] : memref<32x896xf32, #tpu.memory_space<vmem>>, vector<32x896xf32>
    tpu.vector_store %arg10[%c0_23, %c0_24], %30 {strides = array<i32>} : memref<32x896xf32, #tpu.memory_space<vmem>>, vector<32x896xf32>,
    return
  }
  func.func @transform_0(%arg0: i32) -> (i32, i32) {
    %c0_i32 = arith.constant 0 : i32
    %c0_i32_0 = arith.constant 0 : i32
    return %arg0, %c0_i32 : i32, i32
  }
  func.func @transform_1(%arg0: i32) -> (i32, i32) {
    %c0_i32 = arith.constant 0 : i32
    %c0_i32_0 = arith.constant 0 : i32
    %c0_i32_1 = arith.constant 0 : i32
    return %c0_i32, %c0_i32_0 : i32, i32
  }
  func.func @transform_2(%arg0: i32) -> (i32, i32) {
    %c0_i32 = arith.constant 0 : i32
    %c0_i32_0 = arith.constant 0 : i32
    %c0_i32_1 = arith.constant 0 : i32
    return %c0_i32, %c0_i32_0 : i32, i32
  }
  func.func @transform_3(%arg0: i32) -> (i32, i32) {
    %c0_i32 = arith.constant 0 : i32
    %c0_i32_0 = arith.constant 0 : i32
    %c0_i32_1 = arith.constant 0 : i32
    return %c0_i32, %c0_i32_0 : i32, i32
  }
  func.func @transform_4(%arg0: i32) -> (i32, i32) {
    %c0_i32 = arith.constant 0 : i32
    %c0_i32_0 = arith.constant 0 : i32
    %c0_i32_1 = arith.constant 0 : i32
    return %c0_i32, %c0_i32_0 : i32, i32
  }
  func.func @transform_5(%arg0: i32) -> (i32, i32) {
    %c0_i32 = arith.constant 0 : i32
    %c0_i32_0 = arith.constant 0 : i32
    %c0_i32_1 = arith.constant 0 : i32
    return %c0_i32, %c0_i32_0 : i32, i32
  }
  func.func @transform_6(%arg0: i32) -> (i32, i32) {
    %c0_i32 = arith.constant 0 : i32
    %c0_i32_0 = arith.constant 0 : i32
    %c0_i32_1 = arith.constant 0 : i32
    return %c0_i32, %c0_i32_0 : i32, i32
  }
  func.func @transform_7(%arg0: i32) -> (i32, i32) {
    %c0_i32 = arith.constant 0 : i32
    %c0_i32_0 = arith.constant 0 : i32
    %c0_i32_1 = arith.constant 0 : i32
    return %c0_i32, %c0_i32_0 : i32, i32
  }
  func.func @transform_8(%arg0: i32) -> (i32, i32) {
    %c0_i32 = arith.constant 0 : i32
    %c0_i32_0 = arith.constant 0 : i32
    %c0_i32_1 = arith.constant 0 : i32
    return %c0_i32, %c0_i32_0 : i32, i32
  }
  func.func @transform_9(%arg0: i32) -> (i32, i32) {
    %c0_i32 = arith.constant 0 : i32
    %c0_i32_0 = arith.constant 0 : i32
    return %arg0, %c0_i32 : i32, i32
  }
}

</mosaic_0001>

<bundles_post_ra>
// kernel: tpu_custom_call.1
= control target key start
LH: loop header
LB: loop body
LE: loop exit
PB: predicated region body
PF: predicated region fallthrough
CT: control target
= control target key end

     0   :  { %s10130_s0 = inlined_call_operand.hbm [shape: bf16[64,128], index: 0, kind: input, shape index: {}]   ;;  %s10131_s1 = inlined_call_operand.hbm [shape: bf16[128,256], index: 1, kind: input, shape index: {}]   ;;  %s10132_s2 = inlined_call_operand.hbm [shape: f32[1,256], index: 2, kind: input, shape index: {}]   ;;  %s10133_s3 = inlined_call_operand.hbm [shape: bf16[256,512], index: 3, kind: input, shape index: {}]   ;;  %s10134_s4 = inlined_call_operand.hbm [shape: f32[1,512], index: 4, kind: input, shape index: {}]   ;;  %s10135_s5 = inlined_call_operand.hbm [shape: bf16[512,1024], index: 5, kind: input, shape index: {}]   ;;  %s10136_s6 = inlined_call_operand.hbm [shape: f32[1,1024], index: 6, kind: input, shape index: {}]   ;;  %s10137_s7 = inlined_call_operand.hbm [shape: bf16[1024,896], index: 7, kind: input, shape index: {}]   ;;  %s10138_s8 = inlined_call_operand.hbm [shape: f32[1,896], index: 8, kind: input, shape index: {}]   ;;  %s10139_s9 = inlined_call_operand.hbm [shape: f32[64,896], index: 9, kind: output, shape index: {}]  }
   0x1   :  { %10144 = sst [smem:[#allocation24_spill]] %s10131_s1 }
   0x2   :  { %10145 = sst [smem:[#allocation25_spill]] %s10132_s2 }
   0x3   :  { %10146 = sst [smem:[#allocation26_spill]] %s10133_s3 }
   0x4   :  { %14 = vsyncpa [#allocation3], 0 }
   0x5   :  { %16 = vsyncpa [#allocation3 + $0x1], 0 }
   0x6   :  { %17 = vsyncpa [#allocation6], 0 }
   0x7   :  { %18 = vsyncpa [#allocation9], 0 }
   0x8   :  { %19 = vsyncpa [#allocation12], 0 }
   0x9   :  { %20 = vsyncpa [#allocation15], 0 }
   0xa   :  { %21 = vsyncpa [#allocation4], 0 }
   0xb   :  { %23 = vsyncpa [#allocation4 + $0x1], 0  ;;  %s9438_s30 = smov 0   ;;  %s9440_s10 = smov 0  }
   0xc   :  { %s9442_s11 = smov 0   ;;  %s9444_s12 = smov 0  }
   0xd LB: > { %s9365_s13 = smov [#allocation5]   ;;  %s9459_s15 = sadd.s32 4294967295, %s9363_s12   ;;  %s9363_s12 = sphi %s9444_s12, %s10175_s12   ;;  %s9359_s11 = sphi %s9442_s11, %s10174_s11   ;;  %s9355_s10 = sphi %s9440_s10, %s10173_s10   ;;  %s9351_s30 = sphi %s9438_s30, %s10172_s30  }
   0xe   : > { %s266_s14 = sshll.u32 %s9365_s13, 4  ;;  %p7143_p0 = scmp.ge.s32.totalorder %s9363_s12, 1  ;;  %s267_s14 = int_to_ptr.vmem [resolvable:$true] %s266_s14 }
   0xf   : > { %p10140_p1 = scmp.eq.s32.totalorder %s9459_s15, 0  ;;  %p254_p2 = scmp.lt.s32.totalorder %s9363_s12, 3 }
  0x10   : > { %s9366_s17 = smov [#allocation8]   ;;  %s9367_s20 = smov [#allocation11]  }
  0x11   : > { %p9464_p3 = pnand %p7143_p0, %p254_p2  ;;  %s290_s18 = sshll.u32 %s9366_s17, 4  ;;  %s9477_s18 = int_to_ptr.vmem [resolvable:$true] %s290_s18 }
  0x12   : > { %s9479_s21 = sshll.u32 %s9367_s20, 4  ;;  %s9058_s23 = scalar_lea.vmem %s267_s14, 2048  ;;  %s315_s21 = int_to_ptr.vmem [resolvable:$true] %s9479_s21 }
  0x13   : > { %s10147_s16 = scalar_select %p9464_p3, 1, 0 }
  0x14   : > { %p8124_p5 = pneg %p9464_p3  ;;  %p9059_p8 = scmp.ne.s32.totalorder %s267_s14, %s9058_s23 }
  0x15   : > { %p9066_p11 = scmp.lt.s32.totalorder %s267_s14, %s267_s14  ;;  %p9067_p12 = scmp.lt.s32.totalorder %s9058_s23, %s9058_s23 }
  0x16   : > { %p9473_p6 = pnand %p8124_p5, %p10140_p1 }
  0x17   : > { %p9068_p13 = por %p9067_p12, %p9066_p11 }
  0x18   : > { %p9483_p7 = pneg %p9473_p6 }
  0x1a   : > { %p9061_p9 = pnand %p9059_p8, %p9483_p7 }
  0x1c   : > { %p9062_p10 = pneg %p9061_p9 }
  0x1e   : > { %p9069_p0 = pnand %p9068_p13, %p9062_p10 }
  0x20   : > { %9072 = shalt.err (!%p9069_p0)
}
  0x21   : > { %s9368_s24 = smov 128   ;;  %s9369_s25 = smov 8  }
  0x22   : > { %s10150_s1 = sld [smem:[#allocation24_spill]]  ;;  %s9084_s28 = scalar_lea.vmem %s9477_s18, 8192 }
  0x23   : > { %p9085_p2 = scmp.ne.s32.totalorder %s9477_s18, %s9084_s28  ;;  %p9092_p9 = scmp.lt.s32.totalorder %s9477_s18, %s9477_s18 }
  0x24   : > { %p9093_p10 = scmp.lt.s32.totalorder %s9084_s28, %s9084_s28 }
  0x25   : > { %p9087_p5 = pnand %p9085_p2, %p9483_p7 }
  0x26   : > { %p9094_p11 = por %p9093_p10, %p9092_p9 }
  0x27   : > { %p9088_p8 = pneg %p9087_p5 }
  0x28   : > { %8127 = dma.hbm_to_vmem [thread:$0]  (!%p9473_p6), %s10150_s1, 2048, %s267_s14, [#allocation6], %s9368_s24, %s9368_s24, %s9369_s25  }
  0x29   : > { %p9095_p12 = pnand %p9094_p11, %p9088_p8 }
  0x2b   : > { %9098 = shalt.err (!%p9095_p12)
}
  0x2c   : > { %s9370_s29 = smov 256   ;;  %s9371_s13 = smov 16  }
  0x2d   : > { %s10151_s3 = sld [smem:[#allocation26_spill]]  ;;  %s9110_s20 = scalar_lea.vmem %s315_s21, 32768 }
  0x2e   : > { %p9111_p13 = scmp.ne.s32.totalorder %s315_s21, %s9110_s20  ;;  %p9118_p5 = scmp.lt.s32.totalorder %s315_s21, %s315_s21 }
  0x2f   : > { %p9119_p8 = scmp.lt.s32.totalorder %s9110_s20, %s9110_s20 }
  0x30   : > { %p9113_p0 = pnand %p9111_p13, %p9483_p7 }
  0x31   : > { %p9120_p9 = por %p9119_p8, %p9118_p5 }
  0x32   : > { %p9114_p2 = pneg %p9113_p0 }
  0x33   : > { %8133 = dma.hbm_to_vmem [thread:$0]  (!%p9473_p6), %s10151_s3, 8192, %s9477_s18, [#allocation9], %s9370_s29, %s9370_s29, %s9371_s13  }
  0x34   : > { %p9121_p10 = pnand %p9120_p9, %p9114_p2 }
  0x36   : > { %9124 = shalt.err (!%p9121_p10)
}
  0x37   : > { %s9372_s23 = smov 512   ;;  %s9373_s24 = smov 32  }
  0x38   : > { %8139 = dma.hbm_to_vmem [thread:$0]  (!%p9473_p6), %s10135_s5, 32768, %s315_s21, [#allocation12], %s9372_s23, %s9372_s23, %s9373_s24  }
  0x39   : > { %s9374_s18 = smov [#allocation14]  }
  0x3a   : > { %s338_s27 = sshll.u32 %s9374_s18, 4  ;;  %s339_s27 = int_to_ptr.vmem [resolvable:$true] %s338_s27 }
  0x3b   : > { %s9136_s28 = scalar_lea.vmem %s339_s27, 57344  ;;  %p9144_p0 = scmp.lt.s32.totalorder %s339_s27, %s339_s27 }
  0x3c   : > { %p9137_p11 = scmp.ne.s32.totalorder %s339_s27, %s9136_s28  ;;  %p9145_p2 = scmp.lt.s32.totalorder %s9136_s28, %s9136_s28 }
  0x3e   : > { %p9139_p12 = pnand %p9137_p11, %p9483_p7  ;;  %p9146_p5 = por %p9145_p2, %p9144_p0 }
  0x40   : > { %p9140_p13 = pneg %p9139_p12 }
  0x42   : > { %p9147_p8 = pnand %p9146_p5, %p9140_p13 }
  0x44   : > { %9150 = shalt.err (!%p9147_p8)
}
  0x45   : > { %s9375_s29 = smov 448   ;;  %s9376_s13 = smov 28  }
  0x46   : > { %8145 = dma.hbm_to_vmem [thread:$0]  (!%p9473_p6), %s10137_s7, 57344, %s339_s27, [#allocation15], %s9375_s29, %s9375_s29, %s9376_s13  }
  0x47   : > { %s9377_s14 = smov [#allocation7]   ;;  %s9378_s23 = smov [#allocation10]  }
  0x48   : > { %s280_s20 = sshll.u32 %s9377_s14, 4  ;;  %s304_s24 = sshll.u32 %s9378_s23, 4  ;;  %s281_s20 = int_to_ptr.vmem [resolvable:$true] %s280_s20  ;;  %s305_s24 = int_to_ptr.vmem [resolvable:$true] %s304_s24 }
  0x49   : > { %s9162_s25 = scalar_lea.vmem %s281_s20, 32  ;;  %p9170_p12 = scmp.lt.s32.totalorder %s281_s20, %s281_s20 }
  0x4a   : > { %p9163_p9 = scmp.ne.s32.totalorder %s281_s20, %s9162_s25  ;;  %p9171_p13 = scmp.lt.s32.totalorder %s9162_s25, %s9162_s25 }
  0x4c   : > { %p9165_p10 = pnand %p9163_p9, %p9483_p7  ;;  %p9172_p0 = por %p9171_p13, %p9170_p12 }
  0x4e   : > { %p9166_p11 = pneg %p9165_p10 }
  0x50   : > { %p9173_p2 = pnand %p9172_p0, %p9166_p11 }
  0x52   : > { %9176 = shalt.err (!%p9173_p2)
}
  0x53   : > { %s10152_s2 = sld [smem:[#allocation25_spill]]  ;;  %s9188_s27 = scalar_lea.vmem %s305_s24, 64 }
  0x54   : > { %p9189_p5 = scmp.ne.s32.totalorder %s305_s24, %s9188_s27  ;;  %p9196_p1 = scmp.lt.s32.totalorder %s305_s24, %s305_s24 }
  0x55   : > { %p9197_p9 = scmp.lt.s32.totalorder %s9188_s27, %s9188_s27 }
  0x56   : > { %p9191_p8 = pnand %p9189_p5, %p9483_p7 }
  0x57   : > { %p9198_p10 = por %p9197_p9, %p9196_p1 }
  0x58   : > { %p9192_p4 = pneg %p9191_p8 }
  0x59   : > { %8130 = dma.hbm_to_vmem [thread:$0]  (!%p9473_p6), %s10152_s2, 32, %s281_s20, [#allocation6]  }
  0x5a   : > { %p9199_p3 = pnand %p9198_p10, %p9192_p4 }
  0x5c   : > { %9202 = shalt.err (!%p9199_p3)
}
  0x5d   : > { %8136 = dma.hbm_to_vmem [thread:$0]  (!%p9473_p6), %s10134_s4, 64, %s305_s24, [#allocation9]  }
  0x5e   : > { %s9379_s13 = smov [#allocation13]   ;;  %s9380_s21 = smov [#allocation16]  }
  0x5f   : > { %s328_s17 = sshll.u32 %s9379_s13, 4  ;;  %s352_s14 = sshll.u32 %s9380_s21, 4  ;;  %s329_s17 = int_to_ptr.vmem [resolvable:$true] %s328_s17  ;;  %s353_s14 = int_to_ptr.vmem [resolvable:$true] %s352_s14 }
  0x60   : > { %s9214_s20 = scalar_lea.vmem %s329_s17, 128  ;;  %p9222_p4 = scmp.lt.s32.totalorder %s329_s17, %s329_s17 }
  0x61   : > { %p9215_p11 = scmp.ne.s32.totalorder %s329_s17, %s9214_s20  ;;  %p9223_p3 = scmp.lt.s32.totalorder %s9214_s20, %s9214_s20 }
  0x63   : > { %p9217_p12 = pnand %p9215_p11, %p9483_p7  ;;  %p9224_p13 = por %p9223_p3, %p9222_p4 }
  0x65   : > { %p9218_p1 = pneg %p9217_p12 }
  0x67   : > { %p9225_p0 = pnand %p9224_p13, %p9218_p1 }
  0x69   : > { %9228 = shalt.err (!%p9225_p0)
}
  0x6a   : > { %8142 = dma.hbm_to_vmem [thread:$0]  (!%p9473_p6), %s10136_s6, 128, %s329_s17, [#allocation12]  }
  0x6b   : > { %s9240_s25 = scalar_lea.vmem %s353_s14, 112  ;;  %s9247_s26 = scalar_lea.vmem %s353_s14, 128 }
  0x6c   : > { %p9241_p2 = scmp.ne.s32.totalorder %s353_s14, %s9240_s25  ;;  %p9248_p9 = scmp.lt.s32.totalorder %s353_s14, %s353_s14 }
  0x6d   : > { %p9249_p10 = scmp.lt.s32.totalorder %s9247_s26, %s9240_s25 }
  0x6e   : > { %p9243_p5 = pnand %p9241_p2, %p9483_p7 }
  0x6f   : > { %p9250_p11 = por %p9249_p10, %p9248_p9 }
  0x70   : > { %p9244_p8 = pneg %p9243_p5 }
  0x72   : > { %p9251_p12 = pnand %p9250_p11, %p9244_p8 }
  0x74   : > { %9254 = shalt.err (!%p9251_p12)
}
  0x75   : > { %8148 = dma.hbm_to_vmem [thread:$0]  (!%p9473_p6), %s10138_s8, 112, %s353_s14, [#allocation15]  }
  0x76   : > { %s7142_s22 = sadd.s32 4294967294, %s9363_s12   ;;  %s9551_s19 = sadd.s32 1, %s9363_s12  }
  0x77   : > { %s33_s28 = ssub.s32 %s9363_s12, %s9551_s19  ;;  %s36_s29 = sadd.s32 1, %s9359_s11 }
  0x78   : > { %p34_p7 = scmp.eq.s32.totalorder %s33_s28, 0  ;;  %p43_p1 = scmp.ne.s32.totalorder %s9359_s11, %s9355_s10 }
  0x79   : > { %p44_p4 = scmp.eq.s32.totalorder %s9363_s12, 0  ;;  %p49_p3 = scmp.ne.s32.totalorder %s9355_s10, %s9351_s30 }
  0x7a   : > { %s9562_s13 = scalar_select %p34_p7, %s9359_s11, %s36_s29  }
  0x7b   : > { %p9564_p13 = por %p44_p4, %p43_p1  ;;  %p10154_p0 = scmp.eq.s32.totalorder %s9459_s15, 0 }
  0x7c   : > { %p241_p2 = scmp.eq.s32.totalorder %s9459_s15, 1  ;;  %p247_p5 = scmp.eq.s32.totalorder %s7142_s22, 1 }
  0x7d   : > { %p9570_p6 = por %p10154_p0, %p49_p3  ;;  %p8165_p8 = scmp.lt.s32.totalorder %s9363_s12, 2 }
  0x7e   : > { %s363_s14 = sand.u32 1, %s9359_s11   ;;  %p9577_p9 = por %p241_p2, %p43_p1 }
  0x7f   : > { %s10155_s21 = scalar_select %p9570_p6, 1, 0 }
  0x80   : > { %s10156_s20 = scalar_select %p9577_p9, 1, 0 }
  0x81   : > { %p9581_p10 = por %p247_p5, %p49_p3  ;;  %s7153_s24 = sshll.u32 %s363_s14, 4 }
  0x82   : > { %s7957_s25 = sshll.u32 %s9363_s12, 8  ;;  %s367_s22 = scalar_lea.vmem [#allocation2], %s7153_s24 }
  0x83   : > { %s10157_s23 = scalar_select %p9581_p10, 1, 0 }
  0x84   : > { %s9589_s27 = scalar_lea.hbm %s10130_s0, %s7957_s25  ;;  %s374_s28 = sshll.u32 %s367_s22, 4  ;;  %s9591_s28 = int_to_ptr.vmem [resolvable:$true] %s374_s28 }
  0x85   : > { %p9595_p11 = pnand %p8165_p8, %p9564_p13  ;;  %s9599_s1 = scalar_lea.sflag [#allocation3], %s363_s14 }
  0x86   : > { %s9255_s2 = scalar_lea.hbm %s9589_s27, 256  ;;  %s9260_s24 = scalar_lea.hbm %s10130_s0, 512 }
  0x87   : > { %p9256_p12 = scmp.ne.s32.totalorder %s9589_s27, %s9255_s2  ;;  %p9257_p7 = pneg %p9595_p11 }
  0x88   : > { %p9261_p3 = scmp.lt.s32.totalorder %s9589_s27, %s10130_s0  ;;  %p9262_p13 = scmp.lt.s32.totalorder %s9260_s24, %s9255_s2 }
  0x89   : > { %p9258_p1 = pnand %p9257_p7, %p9256_p12 }
  0x8a   : > { %p9263_p0 = por %p9262_p13, %p9261_p3 }
  0x8b   : > { %p9259_p4 = pneg %p9258_p1 }
  0x8d   : > { %p9264_p2 = pnand %p9263_p0, %p9259_p4 }
  0x8f   : > { %9267 = shalt.err (!%p9264_p2)
}
  0x90   : > { %s9268_s17 = scalar_lea.vmem %s9591_s28, 256  ;;  %s9381_s14 = smov [#allocation2]  }
  0x91   : > { %p9269_p5 = scmp.ne.s32.totalorder %s9591_s28, %s9268_s17  ;;  %s9273_s3 = sshll.u32 %s9381_s14, 4  ;;  %s9274_s3 = int_to_ptr.vmem [resolvable:$false] %s9273_s3 }
  0x92   : > { %s9275_s25 = scalar_lea.vmem %s9274_s3, 512  ;;  %p9276_p1 = scmp.lt.s32.totalorder %s9591_s28, %s9274_s3 }
  0x93   : > { %p9271_p8 = pnand %p9269_p5, %p9257_p7  ;;  %p9277_p10 = scmp.lt.s32.totalorder %s9275_s25, %s9268_s17 }
  0x95   : > { %p9272_p12 = pneg %p9271_p8  ;;  %p9278_p9 = por %p9277_p10, %p9276_p1 }
  0x97   : > { %p9279_p6 = pnand %p9278_p9, %p9272_p12 }
  0x99   : > { %9282 = shalt.err (!%p9279_p6)
}
  0x9a   : > { %s9382_s2 = smov 64   ;;  %s9383_s26 = smov 4  }
  0x9b   : > { %8152 = dma.hbm_to_vmem [thread:$0]  (!%p9595_p11), %s9589_s27, 256, %s9591_s28, %s9599_s1, %s9382_s2, %s9382_s2, %s9383_s26  }
  0x9c   : > { %p10159_p7 = scmp.ne.s32.totalorder %s10147_s16, 0 }
  0x9d   : > { %s9623_s24 = sand.u32 (!%p10159_p7), 1, %s9355_s10   ;;  %p10160_p6 = scmp.ne.s32.totalorder (!%p10159_p7), %s10155_s21, 0 }
  0x9e   : > { %386 = sbr.rel (%p10159_p7) target bundleno = 1580 (0x62c), region = 56  ;;  %s7157_s3 = sshll.u32 (!%p10159_p7), %s9623_s24, 4 }
  0x9f   : > { %s389_s18 = scalar_lea.sflag (!%p10159_p7), [#allocation3], %s9623_s24  ;;  %s9627_s22 = scalar_lea.vmem (!%p10159_p7), [#allocation2], %s7157_s3 }
  0xa3   : > { %9326 = dma.done.wait (%p10160_p6), %s389_s18, 256  }
  0xa4   : > { %9328 = vsyncadd (%p10160_p6), %s389_s18, 4294967040  ;;  %p10161_p9 = scmp.eq.s32.totalorder %s9459_s15, 0 }
  0xa6   : > { %9330 = dma.done.wait (%p10161_p9), [#allocation6], 2080   ;;  %p10162_p10 = pmov %p10161_p9 }
  0xa7   : > { %p10163_p11 = pmov %p10161_p9 }
  0xa8   : > { %9332 = vsyncadd (%p10162_p10), [#allocation6], 4294965216 }
  0xa9   : > { %9334 = dma.done.wait (%p10163_p11), [#allocation9], 8256   ;;  %p10164_p4 = pmov %p10161_p9 }
  0xab   : > { %9336 = vsyncadd (%p10164_p4), [#allocation9], 4294959040  ;;  %p10165_p3 = pmov %p10164_p4 }
  0xad   : > { %9338 = dma.done.wait (%p10165_p3), [#allocation12], 32896   ;;  %p10166_p13 = pmov %p10165_p3 }
  0xae   : > { %p10167_p0 = pmov %p10165_p3 }
  0xaf   : > { %9340 = vsyncadd (%p10166_p13), [#allocation12], 4294934400 }
  0xb0   : > { %9342 = dma.done.wait (%p10167_p0), [#allocation15], 57456   ;;  %p10168_p2 = pmov %p10167_p0 }
  0xb1   : > { %v9384_v0 = vmov 0   ;;  %v8228_v1 = vld [vmem:[#allocation5 + $0x74] ss:$8 sps:$4 sm:$0xff]   ;;  %v8230_v2 = vld [vmem:[#allocation5 + $0x70] ss:$8 sps:$4 sm:$0xff]   ;;  %s8086_s1 = smul.u32 224, %s9623_s24 }
  0xb2   : > { %9344 = vsyncadd (%p10168_p2), [#allocation15], 4294909840  ;;  %618 = vmatprep.mubr.bf16.mxu0 %v9384_v0  ;;  %586 = vmatprep.subr.bf16.mxu0 %v8228_v1  ;;  %v8231_v3 = vld [vmem:[#allocation5 + $0x64] ss:$8 sps:$4 sm:$0xff]   ;;  %v8233_v4 = vld [vmem:[#allocation5 + $0x60] ss:$8 sps:$4 sm:$0xff]  }
  0xb3   : > { %587 = vmatpush1.bf16.msra.mxu0 %v8230_v2  ;;  %v8234_v5 = vld [vmem:[#allocation5 + $0x54] ss:$8 sps:$4 sm:$0xff]   ;;  %v8236_v6 = vld [vmem:[#allocation5 + $0x50] ss:$8 sps:$4 sm:$0xff]   ;;  %v8237_v7 = vld [vmem:[#allocation5 + $0x44] ss:$8 sps:$4 sm:$0xff]  }
  0xb4   : > { %588 = vmatprep.subr.bf16.mxu0 %v8231_v3  ;;  %v8239_v8 = vld [vmem:[#allocation5 + $0x40] ss:$8 sps:$4 sm:$0xff]   ;;  %v8240_v9 = vld [vmem:[#allocation5 + $0x34] ss:$8 sps:$4 sm:$0xff]   ;;  %v8242_v11 = vld [vmem:[#allocation5 + $0x30] ss:$8 sps:$4 sm:$0xff]  }
  0xb5   : > { %v8254_v10 = vld [vmem:[#allocation8 + $0xe4] ss:$16 sps:$4 sm:$0xff]   ;;  %v8259_v13 = vld [vmem:[#allocation8 + $0xe0] ss:$16 sps:$4 sm:$0xff]   ;;  %v8258_v26 = vld [vmem:[#allocation8 + $0xec] ss:$16 sps:$4 sm:$0xff]  }
  0xb6   : > { %v8243_v12 = vld [vmem:[#allocation5 + $0x24] ss:$8 sps:$4 sm:$0xff]   ;;  %1057 = vmatprep.subr.bf16.mxu1 %v8254_v10  ;;  %v8245_v17 = vld [vmem:[#allocation5 + $0x20] ss:$8 sps:$4 sm:$0xff]   ;;  %v8246_v18 = vld [vmem:[#allocation5 + $0x14] ss:$8 sps:$4 sm:$0xff]  }
  0xb7   : > { %589 = vmatpush1.bf16.msra.mxu0 %v8233_v4  ;;  %v8260_v14 = vld [vmem:[#allocation8 + $0xc4] ss:$16 sps:$4 sm:$0xff]   ;;  %1058 = vmatpush1.bf16.msra.mxu1 %v8259_v13  ;;  %v8265_v15 = vld [vmem:[#allocation8 + $0xc0] ss:$16 sps:$4 sm:$0xff]   ;;  %v8256_v30 = vld [vmem:[#allocation8 + $0xe8] ss:$16 sps:$4 sm:$0xff]  }
  0xb8   : > { %590 = vmatprep.subr.bf16.mxu0 %v8234_v5  ;;  %1059 = vmatprep.subr.bf16.mxu1 %v8260_v14  ;;  %v8266_v16 = vld [vmem:[#allocation8 + $0xa4] ss:$16 sps:$4 sm:$0xff]   ;;  %v8271_v19 = vld [vmem:[#allocation8 + $0xa0] ss:$16 sps:$4 sm:$0xff]   ;;  %v8264_v31 = vld [vmem:[#allocation8 + $0xcc] ss:$16 sps:$4 sm:$0xff]  }
  0xb9   : > { %v8272_v20 = vld [vmem:[#allocation8 + $0x84] ss:$16 sps:$4 sm:$0xff]   ;;  %v8277_v23 = vld [vmem:[#allocation8 + $0x80] ss:$16 sps:$4 sm:$0xff]   ;;  %v8262_v34 = vld [vmem:[#allocation8 + $0xc8] ss:$16 sps:$4 sm:$0xff]  }
  0xba   : > { %v8248_v21 = vld [vmem:[#allocation5 + $0x10] ss:$8 sps:$4 sm:$0xff]   ;;  %v8249_v22 = vld [vmem:[#allocation5 + $0x4] ss:$8 sps:$4 sm:$0xff]   ;;  %v8251_v25 = vld [vmem:[#allocation5] ss:$8 sps:$4 sm:$0xff]  }
  0xbb   : > { %591 = vmatpush1.bf16.msra.mxu0 %v8236_v6  ;;  %1060 = vmatpush1.bf16.msra.mxu1 %v8265_v15  ;;  %v8278_v24 = vld [vmem:[#allocation8 + $0x64] ss:$16 sps:$4 sm:$0xff]   ;;  %v8283_v27 = vld [vmem:[#allocation8 + $0x60] ss:$16 sps:$4 sm:$0xff]   ;;  %v8270_v35 = vld [vmem:[#allocation8 + $0xac] ss:$16 sps:$4 sm:$0xff]  }
  0xbc   : > { %592 = vmatprep.subr.bf16.mxu0 %v8237_v7  ;;  %1061 = vmatprep.subr.bf16.mxu1 %v8266_v16  ;;  %v8252_v28 = vld [vmem:[%s9627_s22] sm:$0xff]   ;;  %v8253_v37 = vld [vmem:[%s9627_s22 + $0x8] sm:$0xff]   ;;  %s9959_s16 = scalar_lea.vmem [#allocation17], %s8086_s1  ;;  %s8087_s21 = smul.u32 3584, %s9459_s15 }
  0xbd   : > { %v8284_v29 = vld [vmem:[#allocation8 + $0x44] ss:$16 sps:$4 sm:$0xff]   ;;  %v8289_v32 = vld [vmem:[#allocation8 + $0x40] ss:$16 sps:$4 sm:$0xff]   ;;  %v8268_v39 = vld [vmem:[#allocation8 + $0xa8] ss:$16 sps:$4 sm:$0xff]  }
  0xbe   : > { %v8290_v33 = vld [vmem:[#allocation8 + $0x24] ss:$16 sps:$4 sm:$0xff]   ;;  %v8295_v36 = vld [vmem:[#allocation8 + $0x20] ss:$16 sps:$4 sm:$0xff]   ;;  %v8276_v40 = vld [vmem:[#allocation8 + $0x8c] ss:$16 sps:$4 sm:$0xff]   ;;  %s10084_s17 = scalar_lea.hbm %s10139_s9, %s8087_s21 }
  0xbf   : > { %593 = vmatpush1.bf16.msra.mxu0 %v8239_v8  ;;  %1062 = vmatpush1.bf16.msra.mxu1 %v8271_v19  ;;  %v8296_v38 = vld [vmem:[#allocation8 + $0x4] ss:$16 sps:$4 sm:$0xff]   ;;  %v8301_v41 = vld [vmem:[#allocation8] ss:$16 sps:$4 sm:$0xff]   ;;  %v8274_v43 = vld [vmem:[#allocation8 + $0x88] ss:$16 sps:$4 sm:$0xff]  }
  0xc0   : > { %594 = vmatprep.subr.bf16.mxu0 %v8240_v9  ;;  %1063 = vmatprep.subr.bf16.mxu1 %v8272_v20  ;;  %v8302_v42 = vld [vmem:[#allocation8 + $0x1e4] ss:$16 sps:$4 sm:$0xff]   ;;  %v8282_v44 = vld [vmem:[#allocation8 + $0x6c] ss:$16 sps:$4 sm:$0xff]   ;;  %v8307_v45 = vld [vmem:[#allocation8 + $0x1e0] ss:$16 sps:$4 sm:$0xff]  }
  0xc1   : > { %v8280_v46 = vld [vmem:[#allocation8 + $0x68] ss:$16 sps:$4 sm:$0xff]   ;;  %v8308_v47 = vld [vmem:[#allocation8 + $0x1c4] ss:$16 sps:$4 sm:$0xff]   ;;  %v8288_v48 = vld [vmem:[#allocation8 + $0x4c] ss:$16 sps:$4 sm:$0xff]  }
  0xc2   : > { %v8313_v49 = vld [vmem:[#allocation8 + $0x1c0] ss:$16 sps:$4 sm:$0xff]   ;;  %v8314_v50 = vld [vmem:[#allocation8 + $0x1a4] ss:$16 sps:$4 sm:$0xff]   ;;  %v8286_v51 = vld [vmem:[#allocation8 + $0x48] ss:$16 sps:$4 sm:$0xff]  }
  0xc3   : > { %595 = vmatpush1.bf16.msra.mxu0 %v8242_v11  ;;  %1064 = vmatpush1.bf16.msra.mxu1 %v8277_v23  ;;  %v8294_v52 = vld [vmem:[#allocation8 + $0x2c] ss:$16 sps:$4 sm:$0xff]   ;;  %v8319_v53 = vld [vmem:[#allocation8 + $0x1a0] ss:$16 sps:$4 sm:$0xff]   ;;  %v8320_v54 = vld [vmem:[#allocation8 + $0x184] ss:$16 sps:$4 sm:$0xff]  }
  0xc4   : > { %596 = vmatprep.subr.bf16.mxu0 %v8243_v12  ;;  %1065 = vmatprep.subr.bf16.mxu1 %v8278_v24  ;;  %v8292_v55 = vld [vmem:[#allocation8 + $0x28] ss:$16 sps:$4 sm:$0xff]   ;;  %v8300_v56 = vld [vmem:[#allocation8 + $0xc] ss:$16 sps:$4 sm:$0xff]   ;;  %v8325_v57 = vld [vmem:[#allocation8 + $0x180] ss:$16 sps:$4 sm:$0xff]  }
  0xc5   : > { %v8326_v58 = vld [vmem:[#allocation8 + $0x164] ss:$16 sps:$4 sm:$0xff]   ;;  %v8298_v59 = vld [vmem:[#allocation8 + $0x8] ss:$16 sps:$4 sm:$0xff]   ;;  %v8306_v60 = vld [vmem:[#allocation8 + $0x1ec] ss:$16 sps:$4 sm:$0xff]  }
  0xc6   : > { %v8331_v61 = vld [vmem:[#allocation8 + $0x160] ss:$16 sps:$4 sm:$0xff]   ;;  %v8304_v62 = vld [vmem:[#allocation8 + $0x1e8] ss:$16 sps:$4 sm:$0xff]   ;;  %v8312_v63 = vld [vmem:[#allocation8 + $0x1cc] ss:$16 sps:$4 sm:$0xff]  }
  0xc7   : > { %597 = vmatpush1.bf16.msra.mxu0 %v8245_v17  ;;  %1066 = vmatpush1.bf16.msra.mxu1 %v8283_v27  ;;  %v8318_v1 = vld [vmem:[#allocation8 + $0x1ac] ss:$16 sps:$4 sm:$0xff]   ;;  %v8316_v2 = vld [vmem:[#allocation8 + $0x1a8] ss:$16 sps:$4 sm:$0xff]   ;;  %v8332_v7 = vld [vmem:[#allocation8 + $0x144] ss:$16 sps:$4 sm:$0xff]   ;;  %v484_v27 = vlaneseq }
  0xc8   : > { %598 = vmatprep.subr.bf16.mxu0 %v8246_v18  ;;  %1067 = vmatprep.subr.bf16.mxu1 %v8284_v29  ;;  %v8324_v3 = vld [vmem:[#allocation8 + $0x18c] ss:$16 sps:$4 sm:$0xff]   ;;  %v8322_v4 = vld [vmem:[#allocation8 + $0x188] ss:$16 sps:$4 sm:$0xff]   ;;  %v8337_v10 = vld [vmem:[#allocation8 + $0x140] ss:$16 sps:$4 sm:$0xff]  }
  0xc9   : > { %v8330_v5 = vld [vmem:[#allocation8 + $0x16c] ss:$16 sps:$4 sm:$0xff]   ;;  %v8328_v6 = vld [vmem:[#allocation8 + $0x168] ss:$16 sps:$4 sm:$0xff]   ;;  %v8338_v11 = vld [vmem:[#allocation8 + $0x124] ss:$16 sps:$4 sm:$0xff]  }
  0xca   : > { %v8336_v8 = vld [vmem:[#allocation8 + $0x14c] ss:$16 sps:$4 sm:$0xff]   ;;  %v8334_v9 = vld [vmem:[#allocation8 + $0x148] ss:$16 sps:$4 sm:$0xff]   ;;  %v8343_v14 = vld [vmem:[#allocation8 + $0x120] ss:$16 sps:$4 sm:$0xff]  }
  0xcb   : > { %599 = vmatpush1.bf16.msra.mxu0 %v8248_v21  ;;  %1068 = vmatpush1.bf16.msra.mxu1 %v8289_v32  ;;  %v8342_v12 = vld [vmem:[#allocation8 + $0x12c] ss:$16 sps:$4 sm:$0xff]   ;;  %v8340_v13 = vld [vmem:[#allocation8 + $0x128] ss:$16 sps:$4 sm:$0xff]   ;;  %v8344_v15 = vld [vmem:[#allocation8 + $0x104] ss:$16 sps:$4 sm:$0xff]  }
  0xcc   : > { %600 = vmatprep.subr.bf16.mxu0 %v8249_v22  ;;  %1069 = vmatprep.subr.bf16.mxu1 %v8290_v33  ;;  %v8348_v16 = vld [vmem:[#allocation8 + $0x10c] ss:$16 sps:$4 sm:$0xff]   ;;  %v8346_v17 = vld [vmem:[#allocation8 + $0x108] ss:$16 sps:$4 sm:$0xff]   ;;  %v8349_v18 = vld [vmem:[#allocation8 + $0x100] ss:$16 sps:$4 sm:$0xff]  }
  0xcd   : > { %v1243_v19 = vld [vmem:[#allocation11 + $0x1c0] sm:$0xff]  ;;  %v482_v29 = vld [vmem:[#allocation7] sm:$0x3]  ;;  %s6993_s27 = sshll.u32 %s9959_s16, 4  ;;  %s6979_s14 = scalar_lea.sflag [#allocation4], %s9623_s24  ;;  %s10086_s27 = int_to_ptr.vmem [resolvable:$true] %s6993_s27 }
  0xce   : > { %v1247_v20 = vld [vmem:[#allocation11 + $0x1e0] sm:$0xff]  ;;  %s9283_s25 = scalar_lea.vmem %s10086_s27, 3584  ;;  %p10169_p8 = scmp.ne.s32.totalorder %s10156_s20, 0 }
  0xcf   : > { %601 = vmatpush1.bf16.msra.mxu0 %v8251_v25  ;;  %1070 = vmatpush1.bf16.msra.mxu1 %v8295_v36  ;;  %v1371_v21 = vld [vmem:[#allocation11 + $0x5c0] sm:$0xff]  ;;  %v7304_v22 = vcombine.low %v1243_v19, %v1247_v20  ;;  %v7305_v23 = vcombine.high %v1243_v19, %v1247_v20  ;;  %p9284_p5 = scmp.ne.s32.totalorder %s10086_s27, %s9283_s25  ;;  %s9385_s15 = smov [#allocation17]  }
  0xd0   : > { %1110 = vmatprep.subr.bf16.mxu0 %v8258_v26  ;;  %1071 = vmatprep.subr.bf16.mxu1 %v8296_v38  ;;  %v1375_v24 = vld [vmem:[#allocation11 + $0x5e0] sm:$0xff]  ;;  %s9287_s2 = sshll.u32 %s9385_s15, 4  ;;  %s9288_s2 = int_to_ptr.vmem [resolvable:$false] %s9287_s2 }
  0xd1   : > { %v7432_v25 = vcombine.low %v1371_v21, %v1375_v24  ;;  %v7433_v26 = vcombine.high %v1371_v21, %v1375_v24  ;;  %v1211_v20 = vld [vmem:[#allocation11 + $0xc0] sm:$0xff]  ;;  %p9285_p12 = pnand %p9284_p5, %p10169_p8  ;;  %s9289_s26 = scalar_lea.vmem %s9288_s2, 7168 }
  0xd2   : > { %619 = vmatmul.mubr.bf16.vlgmr.msra.gmra.mxu0 %v8252_v28  ;;  %v9653_v28 = vshrl.u32 %v484_v27, 7  ;;  %v1215_v21 = vld [vmem:[#allocation11 + $0xe0] sm:$0xff]  ;;  %p9290_p7 = scmp.lt.s32.totalorder %s10086_s27, %s9288_s2  ;;  %p9291_p6 = scmp.lt.s32.totalorder %s9289_s26, %s9283_s25 }
  0xd3   : > { %628 = vmatprep.mubr.bf16.mxu0 %v9384_v0  ;;  %1111 = vmatpush1.bf16.msra.mxu0 %v8256_v30  ;;  %v8310_v0 = vld [vmem:[#allocation8 + $0x1c8] ss:$16 sps:$4 sm:$0xff]   ;;  %p9286_p1 = pneg %p9285_p12 }
  0xd4   : > { %1112 = vmatprep.subr.bf16.mxu0 %v8264_v31  ;;  %1072 = vmatpush1.bf16.msra.mxu1 %v8301_v41  ;;  %v9656_v30 = vsub.s32 0, %v9653_v28  ;;  %v9659_v31 = vsub.s32 1, %v9653_v28  ;;  %p9292_p9 = por %p9291_p6, %p9290_p7 }
  0xd5   : > { %1073 = vmatprep.subr.bf16.mxu1 %v8302_v42 }
  0xd6   : > { %v487_v32 = vrot.slane %v482_v29, %v9656_v30  ;;  %p9293_p10 = pnand %p9292_p9, %p9286_p1 }
  0xd7   : > { %1113 = vmatpush1.bf16.msra.mxu0 %v8262_v34  ;;  %v491_v34 = vrot.slane %v482_v29, %v9659_v31  ;;  %v1203_v29 = vld [vmem:[#allocation11 + $0x80] sm:$0xff] }
  0xd8   : > { %1114 = vmatprep.subr.bf16.mxu0 %v8270_v35  ;;  %1074 = vmatpush2.bf16.msra.mxu1 %v8307_v45  ;;  %v1239_v45 = vld [vmem:[#allocation11 + $0x1a0] sm:$0xff] }
  0xd9   : > { %1075 = vmatprep.subr.bf16.mxu1 %v8308_v47  ;;  %v1367_v47 = vld [vmem:[#allocation11 + $0x5a0] sm:$0xff] }
  0xda   : > { %629 = vmatmul.mubr.bf16.gmra.mxu0 %v8253_v37 }
  0xdb   : > { %1115 = vmatpush1.bf16.msra.mxu0 %v8268_v39 }
  0xdc   : > { %1116 = vmatprep.subr.bf16.mxu0 %v8276_v40  ;;  %1076 = vmatpush2.bf16.msra.mxu1 %v8313_v49 }
  0xdd   : > { %1077 = vmatprep.subr.bf16.mxu1 %v8314_v50 }
  0xdf   : > { %1117 = vmatpush1.bf16.msra.mxu0 %v8274_v43 }
  0xe0   : > { %1118 = vmatprep.subr.bf16.mxu0 %v8282_v44  ;;  %1078 = vmatpush2.bf16.msra.mxu1 %v8319_v53  ;;  %v1235_v44 = vld [vmem:[#allocation11 + $0x180] sm:$0xff] }
  0xe1   : > { %1079 = vmatprep.subr.bf16.mxu1 %v8320_v54 }
  0xe3   : > { %1119 = vmatpush1.bf16.msra.mxu0 %v8280_v46  ;;  %v1363_v46 = vld [vmem:[#allocation11 + $0x580] sm:$0xff] }
  0xe4   : > { %1120 = vmatprep.subr.bf16.mxu0 %v8288_v48  ;;  %1080 = vmatpush2.bf16.msra.mxu1 %v8325_v57  ;;  %v1355_v57 = vld [vmem:[#allocation11 + $0x540] sm:$0xff] }
  0xe5   : > { %1081 = vmatprep.subr.bf16.mxu1 %v8326_v58 }
  0xe7   : > { %1121 = vmatpush1.bf16.msra.mxu0 %v8286_v51 }
  0xe8   : > { %1122 = vmatprep.subr.bf16.mxu0 %v8294_v52  ;;  %1082 = vmatpush2.bf16.msra.mxu1 %v8331_v61  ;;  %v7425_v61 = vcombine.high %v1363_v46, %v1367_v47 }
  0xe9   : > { %1083 = vmatprep.subr.bf16.mxu1 %v8332_v7  ;;  %v1219_v7 = vld [vmem:[#allocation11 + $0x100] sm:$0xff] }
  0xeb   : > { %1123 = vmatpush1.bf16.msra.mxu0 %v8292_v55  ;;  %v1227_v55 = vld [vmem:[#allocation11 + $0x140] sm:$0xff] }
  0xec   : > { %1124 = vmatprep.subr.bf16.mxu0 %v8300_v56  ;;  %1084 = vmatpush2.bf16.msra.mxu1 %v8337_v10  ;;  %v1231_v56 = vld [vmem:[#allocation11 + $0x160] sm:$0xff] }
  0xed   : > { %1085 = vmatprep.subr.bf16.mxu1 %v8338_v11  ;;  %v7289_v10 = vcombine.high %v1227_v55, %v1231_v56 }
  0xef   : > { %1125 = vmatpush1.bf16.msra.mxu0 %v8298_v59 }
  0xf0   : > { %1126 = vmatprep.subr.bf16.mxu0 %v8306_v60  ;;  %1086 = vmatpush2.bf16.msra.mxu1 %v8343_v14  ;;  %v7297_v60 = vcombine.high %v1235_v44, %v1239_v45 }
  0xf1   : > { %1087 = vmatprep.subr.bf16.mxu1 %v8344_v15 }
  0xf3   : > { %1127 = vmatpush2.bf16.msra.mxu0 %v8304_v62 }
  0xf4   : > { %1128 = vmatprep.subr.bf16.mxu0 %v8312_v63  ;;  %1088 = vmatpush2.bf16.msra.mxu1 %v8349_v18 }
  0xf5   : > { %2765 = vmatprep.subr.bf16.mxu1 %v7305_v23  ;;  %v1343_v23 = vld [vmem:[#allocation11 + $0x4e0] sm:$0xff] }
  0xf7   : > { %1129 = vmatpush2.bf16.msra.mxu0 %v8310_v0  ;;  %v1359_v0 = vld [vmem:[#allocation11 + $0x560] sm:$0xff] }
  0xf8   : > { %1130 = vmatprep.subr.bf16.mxu0 %v8318_v1  ;;  %v7417_v11 = vcombine.high %v1355_v57, %v1359_v0 }
  0xfb   : > { %1131 = vmatpush2.bf16.msra.mxu0 %v8316_v2  ;;  %v7296_v2 = vcombine.low %v1235_v44, %v1239_v45 }
  0xfc   : > { %1132 = vmatprep.subr.bf16.mxu0 %v8324_v3 }
  0xff   : > { %1133 = vmatpush2.bf16.msra.mxu0 %v8322_v4 }
 0x100   : > { %1134 = vmatprep.subr.bf16.mxu0 %v8330_v5 }
 0x103   : > { %1135 = vmatpush2.bf16.msra.mxu0 %v8328_v6  ;;  %v7424_v6 = vcombine.low %v1363_v46, %v1367_v47  ;;  %v1187_v47 = vld [vmem:[#allocation11] sm:$0xff] }
 0x104   : > { %1136 = vmatprep.subr.bf16.mxu0 %v8336_v8  ;;  %v1223_v8 = vld [vmem:[#allocation11 + $0x120] sm:$0xff] }
 0x105   : > { %v7281_v18 = vcombine.high %v1219_v7, %v1223_v8  ;;  %v7280_v24 = vcombine.low %v1219_v7, %v1223_v8  ;;  %v1291_v7 = vld [vmem:[#allocation11 + $0x340] sm:$0xff] }
 0x106   : > { %v1295_v8 = vld [vmem:[#allocation11 + $0x360] sm:$0xff] }
 0x107   : > { %1137 = vmatpush2.bf16.msra.mxu0 %v8334_v9  ;;  %v1347_v9 = vld [vmem:[#allocation11 + $0x500] sm:$0xff] }
 0x108   : > { %1138 = vmatprep.subr.bf16.mxu0 %v8342_v12 }
 0x10b   : > { %1139 = vmatpush2.bf16.msra.mxu0 %v8340_v13  ;;  %v1351_v13 = vld [vmem:[#allocation11 + $0x520] sm:$0xff] }
 0x10c   : > { %1140 = vmatprep.subr.bf16.mxu0 %v8348_v16  ;;  %v7288_v16 = vcombine.low %v1227_v55, %v1231_v56  ;;  %v7409_v19 = vcombine.high %v1347_v9, %v1351_v13  ;;  %v1307_v55 = vld [vmem:[#allocation11 + $0x3c0] sm:$0xff] }
 0x10d   : > { %v1311_v56 = vld [vmem:[#allocation11 + $0x3e0] sm:$0xff] }
 0x10f   : > { %1141 = vmatpush2.bf16.msra.mxu0 %v8346_v17  ;;  %v7416_v17 = vcombine.low %v1355_v57, %v1359_v0  ;;  %v1435_v57 = vld [vmem:[#allocation11 + $0x7c0] sm:$0xff] }
 0x110   : > { %2818 = vmatprep.subr.bf16.mxu0 %v7433_v26  ;;  %v7273_v26 = vcombine.high %v1211_v20, %v1215_v21  ;;  %v1303_v0 = vld [vmem:[#allocation11 + $0x3a0] sm:$0xff] }
 0x192   : > { %v620_v33 = vpop.f32.mrf.mxu0 }
 0x193   : > { %v621_v36 = vadd.f32 %v620_v33, %v487_v32  ;;  %v1331_v33 = vld [vmem:[#allocation11 + $0x480] sm:$0xff] }
 0x194   : > { %v622_v35 = vpop.f32.mrf.mxu0 }
 0x195   : > { %v623_v38 = vadd.f32 %v622_v35, %v491_v34  ;;  %v639_v41 = vmax.f32 %v621_v36, 0.0  ;;  %v7272_v35 = vcombine.low %v1211_v20, %v1215_v21 }
 0x196   : > { %v624_v37 = vpop.f32.mrf.mxu0 }
 0x197   : > { %v625_v39 = vadd.f32 %v624_v37, %v487_v32  ;;  %v640_v49 = vmax.f32 %v623_v38, 0.0 }
 0x198   : > { %v626_v40 = vpop.f32.mrf.mxu0 }
 0x199   : > { %v641_v42 = vmax.f32 %v625_v39, 0.0  ;;  %v627_v43 = vadd.f32 %v626_v40, %v491_v34  ;;  %v1195_v39 = vld [vmem:[#allocation11 + $0x40] sm:$0xff] }
 0x19a   : > { %v630_v48 = vpop.f32.mrf.mxu0  ;;  %v1199_v40 = vld [vmem:[#allocation11 + $0x60] sm:$0xff] }
 0x19b   : > { %v642_v50 = vmax.f32 %v627_v43, 0.0  ;;  %v631_v51 = vadd.f32 %v630_v48, %v487_v32  ;;  %v647_v58 = vpack.c.bf16 %v641_v42, %v639_v41  ;;  %v1323_v41 = vld [vmem:[#allocation11 + $0x440] sm:$0xff]  ;;  %v7257_v45 = vcombine.high %v1195_v39, %v1199_v40 }
 0x19c   : > { %v632_v52 = vpop.f32.mrf.mxu0  ;;  %v1327_v42 = vld [vmem:[#allocation11 + $0x460] sm:$0xff] }
 0x19d   : > { %v633_v53 = vadd.f32 %v632_v52, %v491_v34  ;;  %v648_v54 = vpack.c.bf16 %v642_v50, %v640_v49  ;;  %v643_v62 = vmax.f32 %v631_v51, 0.0  ;;  %v7385_v46 = vcombine.high %v1323_v41, %v1327_v42  ;;  %v1191_v48 = vld [vmem:[#allocation11 + $0x20] sm:$0xff] }
 0x19e   : > { %v634_v59 = vpop.f32.mrf.mxu0  ;;  %v1315_v49 = vld [vmem:[#allocation11 + $0x400] sm:$0xff]  ;;  %v7256_v51 = vcombine.low %v1195_v39, %v1199_v40  ;;  %v7384_v52 = vcombine.low %v1323_v41, %v1327_v42 }
 0x19f   : > { %v635_v63 = vadd.f32 %v634_v59, %v487_v32  ;;  %1089 = vmatprep.mubr.bf16.mxu1 %v648_v54  ;;  %1142 = vmatprep.mubr.bf16.mxu0 %v648_v54  ;;  %v644_v3 = vmax.f32 %v633_v53, 0.0  ;;  %v1207_v32 = vld [vmem:[#allocation11 + $0xa0] sm:$0xff]  ;;  %v7249_v53 = vcombine.high %v1187_v47, %v1191_v48  ;;  %v7248_v59 = vcombine.low %v1187_v47, %v1191_v48 }
 0x1a0   : > { %v636_v1 = vpop.f32.mrf.mxu0  ;;  %1090 = vmatmul.mubr.bf16.vlgmr.msra.gmra.mxu1 %v647_v58  ;;  %1143 = vmatmul.mubr.bf16.vlgmr.msra.gmra.mxu0 %v647_v58  ;;  %v7265_v37 = vcombine.high %v1203_v29, %v1207_v32  ;;  %v7264_v43 = vcombine.low %v1203_v29, %v1207_v32  ;;  %v1319_v50 = vld [vmem:[#allocation11 + $0x420] sm:$0xff] }
 0x1a1   : > { %v645_v4 = vmax.f32 %v635_v63, 0.0  ;;  %v637_v5 = vadd.f32 %v636_v1, %v491_v34  ;;  %2766 = vmatpush1.bf16.msra.mxu1 %v7304_v22  ;;  %2819 = vmatpush1.bf16.msra.mxu0 %v7432_v25  ;;  %v1339_v22 = vld [vmem:[#allocation11 + $0x4c0] sm:$0xff]  ;;  %v7408_v25 = vcombine.low %v1347_v9, %v1351_v13  ;;  %v7377_v54 = vcombine.high %v1315_v49, %v1319_v50 }
 0x1a2   : > { %2767 = vmatprep.subr.bf16.mxu1 %v7297_v60  ;;  %2820 = vmatprep.subr.bf16.mxu0 %v7425_v61  ;;  %v7401_v27 = vcombine.high %v1339_v22, %v1343_v23  ;;  %v1335_v34 = vld [vmem:[#allocation11 + $0x4a0] sm:$0xff]  ;;  %v7400_v36 = vcombine.low %v1339_v22, %v1343_v23  ;;  %v7376_v60 = vcombine.low %v1315_v49, %v1319_v50 }
 0x1a3   : > { %v646_v12 = vmax.f32 %v637_v5, 0.0  ;;  %v649_v14 = vpack.c.bf16 %v645_v4, %v643_v62  ;;  %v7393_v38 = vcombine.high %v1331_v33, %v1335_v34  ;;  %v7392_v44 = vcombine.low %v1331_v33, %v1335_v34  ;;  %v1439_v58 = vld [vmem:[#allocation11 + $0x7e0] sm:$0xff] }
 0x1a4   : > { %v7369_v61 = vcombine.high %v1307_v55, %v1311_v56  ;;  %v7497_v62 = vcombine.high %v1435_v57, %v1439_v58  ;;  %v1299_v63 = vld [vmem:[#allocation11 + $0x380] sm:$0xff]  ;;  %v7496_v4 = vcombine.low %v1435_v57, %v1439_v58  ;;  %v7353_v13 = vcombine.high %v1291_v7, %v1295_v8 }
 0x1a5   : > { %v650_v15 = vpack.c.bf16 %v646_v12, %v644_v3  ;;  %2768 = vmatpush1.bf16.msra.mxu1 %v7296_v2  ;;  %2821 = vmatpush1.bf16.msra.mxu0 %v7424_v6  ;;  %v1427_v1 = vld [vmem:[#allocation11 + $0x780] sm:$0xff]  ;;  %v7368_v3 = vcombine.low %v1307_v55, %v1311_v56  ;;  %v7361_v5 = vcombine.high %v1299_v63, %v1303_v0 }
 0x1a6   : > { %2769 = vmatprep.subr.bf16.mxu1 %v7289_v10  ;;  %2822 = vmatprep.subr.bf16.mxu0 %v7417_v11  ;;  %v1431_v2 = vld [vmem:[#allocation11 + $0x7a0] sm:$0xff]  ;;  %v7360_v11 = vcombine.low %v1299_v63, %v1303_v0  ;;  %v9671_v0 = vld [vmem:[#allocation11 + $0x5e8] sm:$0xff] }
 0x1a7   : > { %1099 = vmatprep.mubr.bf16.mxu1 %v650_v15  ;;  %1152 = vmatprep.mubr.bf16.mxu0 %v650_v15  ;;  %v7489_v6 = vcombine.high %v1427_v1, %v1431_v2  ;;  %v1419_v9 = vld [vmem:[#allocation11 + $0x740] sm:$0xff]  ;;  %v7488_v12 = vcombine.low %v1427_v1, %v1431_v2 }
 0x1a8   : > { %1100 = vmatmul.mubr.bf16.gmra.mxu1 %v649_v14  ;;  %1153 = vmatmul.mubr.bf16.gmra.mxu0 %v649_v14  ;;  %v1423_v10 = vld [vmem:[#allocation11 + $0x760] sm:$0xff] }
 0x1a9   : > { %2770 = vmatpush1.bf16.msra.mxu1 %v7288_v16  ;;  %2823 = vmatpush1.bf16.msra.mxu0 %v7416_v17  ;;  %v7481_v14 = vcombine.high %v1419_v9, %v1423_v10  ;;  %v1283_v15 = vld [vmem:[#allocation11 + $0x300] sm:$0xff]  ;;  %v7480_v20 = vcombine.low %v1419_v9, %v1423_v10 }
 0x1aa   : > { %2771 = vmatprep.subr.bf16.mxu1 %v7281_v18  ;;  %2824 = vmatprep.subr.bf16.mxu0 %v7409_v19  ;;  %v1287_v16 = vld [vmem:[#allocation11 + $0x320] sm:$0xff]  ;;  %v7352_v19 = vcombine.low %v1291_v7, %v1295_v8 }
 0x1ab   : > { %v1411_v17 = vld [vmem:[#allocation11 + $0x700] sm:$0xff]  ;;  %v7345_v21 = vcombine.high %v1283_v15, %v1287_v16 }
 0x1ac   : > { %v1415_v18 = vld [vmem:[#allocation11 + $0x720] sm:$0xff] }
 0x1ad   : > { %2772 = vmatpush1.bf16.msra.mxu1 %v7280_v24  ;;  %2825 = vmatpush1.bf16.msra.mxu0 %v7408_v25  ;;  %v7473_v22 = vcombine.high %v1411_v17, %v1415_v18  ;;  %v1275_v23 = vld [vmem:[#allocation11 + $0x2c0] sm:$0xff]  ;;  %v7472_v29 = vcombine.low %v1411_v17, %v1415_v18 }
 0x1ae   : > { %2773 = vmatprep.subr.bf16.mxu1 %v7273_v26  ;;  %2826 = vmatprep.subr.bf16.mxu0 %v7401_v27  ;;  %v1279_v24 = vld [vmem:[#allocation11 + $0x2e0] sm:$0xff]  ;;  %v7344_v27 = vcombine.low %v1283_v15, %v1287_v16 }
 0x1af   : > { %v1403_v25 = vld [vmem:[#allocation11 + $0x6c0] sm:$0xff]  ;;  %v7337_v32 = vcombine.high %v1275_v23, %v1279_v24  ;;  %v7336_v34 = vcombine.low %v1275_v23, %v1279_v24 }
 0x1b0   : > { %v1407_v26 = vld [vmem:[#allocation11 + $0x6e0] sm:$0xff] }
 0x1b1   : > { %2774 = vmatpush1.bf16.msra.mxu1 %v7272_v35  ;;  %2827 = vmatpush1.bf16.msra.mxu0 %v7400_v36  ;;  %v7465_v33 = vcombine.high %v1403_v25, %v1407_v26  ;;  %v7464_v35 = vcombine.low %v1403_v25, %v1407_v26  ;;  %v1267_v36 = vld [vmem:[#allocation11 + $0x280] sm:$0xff] }
 0x1b2   : > { %2775 = vmatprep.subr.bf16.mxu1 %v7265_v37  ;;  %2828 = vmatprep.subr.bf16.mxu0 %v7393_v38  ;;  %v1271_v37 = vld [vmem:[#allocation11 + $0x2a0] sm:$0xff] }
 0x1b3   : > { %v1395_v38 = vld [vmem:[#allocation11 + $0x680] sm:$0xff]  ;;  %v7329_v39 = vcombine.high %v1267_v36, %v1271_v37  ;;  %v7328_v41 = vcombine.low %v1267_v36, %v1271_v37 }
 0x1b4   : > { %v1399_v40 = vld [vmem:[#allocation11 + $0x6a0] sm:$0xff] }
 0x1b5   : > { %2776 = vmatpush1.bf16.msra.mxu1 %v7264_v43  ;;  %2829 = vmatpush1.bf16.msra.mxu0 %v7392_v44  ;;  %v7456_v42 = vcombine.low %v1395_v38, %v1399_v40  ;;  %v7457_v43 = vcombine.high %v1395_v38, %v1399_v40  ;;  %v1259_v44 = vld [vmem:[#allocation11 + $0x240] sm:$0xff] }
 0x1b6   : > { %2777 = vmatprep.subr.bf16.mxu1 %v7257_v45  ;;  %2830 = vmatprep.subr.bf16.mxu0 %v7385_v46  ;;  %v1263_v45 = vld [vmem:[#allocation11 + $0x260] sm:$0xff] }
 0x1b7   : > { %v1387_v46 = vld [vmem:[#allocation11 + $0x640] sm:$0xff]  ;;  %v7321_v47 = vcombine.high %v1259_v44, %v1263_v45  ;;  %v7320_v49 = vcombine.low %v1259_v44, %v1263_v45 }
 0x1b8   : > { %v1391_v48 = vld [vmem:[#allocation11 + $0x660] sm:$0xff] }
 0x1b9   : > { %2778 = vmatpush1.bf16.msra.mxu1 %v7256_v51  ;;  %2831 = vmatpush1.bf16.msra.mxu0 %v7384_v52  ;;  %v7448_v50 = vcombine.low %v1387_v46, %v1391_v48  ;;  %v7449_v51 = vcombine.high %v1387_v46, %v1391_v48  ;;  %v1251_v52 = vld [vmem:[#allocation11 + $0x200] sm:$0xff] }
 0x1ba   : > { %2779 = vmatprep.subr.bf16.mxu1 %v7249_v53  ;;  %2832 = vmatprep.subr.bf16.mxu0 %v7377_v54  ;;  %v1255_v53 = vld [vmem:[#allocation11 + $0x220] sm:$0xff] }
 0x1bb   : > { %v1379_v54 = vld [vmem:[#allocation11 + $0x600] sm:$0xff]  ;;  %v7313_v55 = vcombine.high %v1251_v52, %v1255_v53  ;;  %v7312_v57 = vcombine.low %v1251_v52, %v1255_v53 }
 0x1bc   : > { %v1383_v56 = vld [vmem:[#allocation11 + $0x620] sm:$0xff] }
 0x1bd   : > { %2780 = vmatpush1.bf16.msra.mxu1 %v7248_v59  ;;  %2833 = vmatpush1.bf16.msra.mxu0 %v7376_v60  ;;  %v7440_v58 = vcombine.low %v1379_v54, %v1383_v56  ;;  %v7441_v59 = vcombine.high %v1379_v54, %v1383_v56  ;;  %v9663_v60 = vld [vmem:[#allocation11 + $0x1c8] sm:$0xff] }
 0x1be   : > { %2781 = vmatprep.subr.bf16.mxu1 %v7369_v61  ;;  %2834 = vmatprep.subr.bf16.mxu0 %v7497_v62  ;;  %v9665_v61 = vld [vmem:[#allocation11 + $0x1e8] sm:$0xff] }
 0x1bf   : > { %v9667_v62 = vld [vmem:[#allocation11 + $0x5c8] sm:$0xff]  ;;  %v7307_v63 = vcombine.high %v9663_v60, %v9665_v61  ;;  %v7306_v1 = vcombine.low %v9663_v60, %v9665_v61 }
 0x1c0   : > { %v7434_v2 = vcombine.low %v9667_v62, %v9671_v0  ;;  %v1352_v60 = vld [vmem:[#allocation11 + $0x528] sm:$0xff] }
 0x1c1   : > { %2782 = vmatpush2.bf16.msra.mxu1 %v7368_v3  ;;  %2835 = vmatpush2.bf16.msra.mxu0 %v7496_v4  ;;  %v7435_v3 = vcombine.high %v9667_v62, %v9671_v0  ;;  %v9680_v4 = vsub.s32 3, %v9653_v28  ;;  %v1212_v0 = vld [vmem:[#allocation11 + $0xc8] sm:$0xff] }
 0x1c2   : > { %2783 = vmatprep.subr.bf16.mxu1 %v7361_v5  ;;  %2836 = vmatprep.subr.bf16.mxu0 %v7489_v6  ;;  %v9683_v5 = vsub.s32 2, %v9653_v28  ;;  %v715_v6 = vld [vmem:[#allocation10] sm:$0xf] }
 0x1c3   : > { %v9686_v9 = vrot.slane %v715_v6, %v9659_v31  ;;  %v9689_v10 = vrot.slane %v715_v6, %v9680_v4 }
 0x1c5   : > { %2784 = vmatpush2.bf16.msra.mxu1 %v7360_v11  ;;  %2837 = vmatpush2.bf16.msra.mxu0 %v7488_v12  ;;  %v720_v11 = vrot.slane %v715_v6, %v9656_v30  ;;  %v728_v12 = vrot.slane %v715_v6, %v9683_v5 }
 0x1c6   : > { %2785 = vmatprep.subr.bf16.mxu1 %v7353_v13  ;;  %2838 = vmatprep.subr.bf16.mxu0 %v7481_v14 }
 0x1c9   : > { %2786 = vmatpush2.bf16.msra.mxu1 %v7352_v19  ;;  %2839 = vmatpush2.bf16.msra.mxu0 %v7480_v20 }
 0x1ca   : > { %2787 = vmatprep.subr.bf16.mxu1 %v7345_v21  ;;  %2840 = vmatprep.subr.bf16.mxu0 %v7473_v22  ;;  %v9695_v21 = vld [vmem:[#allocation11 + $0x188] sm:$0xff] }
 0x1cb   : > { %v9697_v22 = vld [vmem:[#allocation11 + $0x1a8] sm:$0xff] }
 0x1cc   : > { %v7299_v36 = vcombine.high %v9695_v21, %v9697_v22 }
 0x1cd   : > { %2788 = vmatpush2.bf16.msra.mxu1 %v7344_v27  ;;  %2841 = vmatpush2.bf16.msra.mxu0 %v7472_v29 }
 0x1ce   : > { %2789 = vmatprep.subr.bf16.mxu1 %v7337_v32  ;;  %2842 = vmatprep.subr.bf16.mxu0 %v7465_v33 }
 0x1d1   : > { %2790 = vmatpush2.bf16.msra.mxu1 %v7336_v34  ;;  %2843 = vmatpush2.bf16.msra.mxu0 %v7464_v35 }
 0x1d2   : > { %2791 = vmatprep.subr.bf16.mxu1 %v7329_v39  ;;  %2844 = vmatprep.subr.bf16.mxu0 %v7457_v43 }
 0x1d5   : > { %2792 = vmatpush2.bf16.msra.mxu1 %v7328_v41  ;;  %2845 = vmatpush2.bf16.msra.mxu0 %v7456_v42  ;;  %v1364_v41 = vld [vmem:[#allocation11 + $0x588] sm:$0xff] }
 0x1d6   : > { %2793 = vmatprep.subr.bf16.mxu1 %v7321_v47  ;;  %2846 = vmatprep.subr.bf16.mxu0 %v7449_v51  ;;  %v1368_v42 = vld [vmem:[#allocation11 + $0x5a8] sm:$0xff] }
 0x1d7   : > { %v7426_v6 = vcombine.low %v1364_v41, %v1368_v42 }
 0x1d9   : > { %2794 = vmatpush2.bf16.msra.mxu1 %v7320_v49  ;;  %2847 = vmatpush2.bf16.msra.mxu0 %v7448_v50 }
 0x1da   : > { %2795 = vmatprep.subr.bf16.mxu1 %v7313_v55  ;;  %2848 = vmatprep.subr.bf16.mxu0 %v7441_v59  ;;  %v1228_v59 = vld [vmem:[#allocation11 + $0x148] sm:$0xff] }
 0x1dd   : > { %2796 = vmatpush2.bf16.msra.mxu1 %v7312_v57  ;;  %2849 = vmatpush2.bf16.msra.mxu0 %v7440_v58  ;;  %v7298_v57 = vcombine.low %v9695_v21, %v9697_v22  ;;  %v7427_v58 = vcombine.high %v1364_v41, %v1368_v42  ;;  %v1204_v41 = vld [vmem:[#allocation11 + $0x88] sm:$0xff] }
 0x1de   : > { %2871 = vmatprep.subr.bf16.mxu1 %v7307_v63  ;;  %2924 = vmatprep.subr.bf16.mxu0 %v7435_v3  ;;  %v1208_v42 = vld [vmem:[#allocation11 + $0xa8] sm:$0xff] }
 0x260   : > { %v1091_v7 = vpop.f32.mrf.mxu1  ;;  %v1144_v8 = vpop.f32.mrf.mxu0 }
 0x261   : > { %v1092_v23 = vadd.f32 %v1091_v7, %v720_v11  ;;  %v1145_v24 = vadd.f32 %v1144_v8, %v728_v12  ;;  %v1232_v7 = vld [vmem:[#allocation11 + $0x168] sm:$0xff] }
 0x262   : > { %v1093_v13 = vpop.f32.mrf.mxu1  ;;  %v1146_v14 = vpop.f32.mrf.mxu0  ;;  %v1356_v8 = vld [vmem:[#allocation11 + $0x548] sm:$0xff]  ;;  %v7291_v22 = vcombine.high %v1228_v59, %v1232_v7 }
 0x263   : > { %v1094_v17 = vadd.f32 %v1093_v13, %v9686_v9  ;;  %v1147_v18 = vadd.f32 %v1146_v14, %v9689_v10  ;;  %v1163_v43 = vmax.f32 %v1092_v23, 0.0  ;;  %v1165_v44 = vmax.f32 %v1145_v24, 0.0  ;;  %v1360_v13 = vld [vmem:[#allocation11 + $0x568] sm:$0xff] }
 0x264   : > { %v1095_v15 = vpop.f32.mrf.mxu1  ;;  %v1148_v16 = vpop.f32.mrf.mxu0  ;;  %v7419_v23 = vcombine.high %v1356_v8, %v1360_v13  ;;  %v7418_v62 = vcombine.low %v1356_v8, %v1360_v13  ;;  %v1320_v8 = vld [vmem:[#allocation11 + $0x428] sm:$0xff] }
 0x265   : > { %v1096_v19 = vadd.f32 %v1095_v15, %v720_v11  ;;  %v1149_v20 = vadd.f32 %v1148_v16, %v728_v12  ;;  %v1164_v37 = vmax.f32 %v1094_v17, 0.0  ;;  %v1166_v38 = vmax.f32 %v1147_v18, 0.0 }
 0x266   : > { %v1097_v25 = vpop.f32.mrf.mxu1  ;;  %v1150_v26 = vpop.f32.mrf.mxu0 }
 0x267   : > { %v1098_v27 = vadd.f32 %v1097_v25, %v9686_v9  ;;  %v1151_v29 = vadd.f32 %v1150_v26, %v9689_v10  ;;  %v1167_v32 = vmax.f32 %v1096_v19, 0.0  ;;  %v1169_v33 = vmax.f32 %v1149_v20, 0.0  ;;  %v1220_v26 = vld [vmem:[#allocation11 + $0x108] sm:$0xff] }
 0x268   : > { %v1101_v34 = vpop.f32.mrf.mxu1  ;;  %v1154_v35 = vpop.f32.mrf.mxu0 }
 0x269   : > { %v1168_v39 = vmax.f32 %v1098_v27, 0.0  ;;  %v1170_v40 = vmax.f32 %v1151_v29, 0.0  ;;  %v1102_v45 = vadd.f32 %v1101_v34, %v720_v11  ;;  %v1155_v46 = vadd.f32 %v1154_v35, %v728_v12  ;;  %v1224_v29 = vld [vmem:[#allocation11 + $0x128] sm:$0xff] }
 0x26a   : > { %v1103_v47 = vpop.f32.mrf.mxu1  ;;  %v1156_v48 = vpop.f32.mrf.mxu0  ;;  %v9709_v53 = vpack.c.bf16 %v1167_v32, %v1163_v43  ;;  %v9711_v54 = vpack.c.bf16 %v1169_v33, %v1165_v44  ;;  %v1348_v32 = vld [vmem:[#allocation11 + $0x508] sm:$0xff] }
 0x26b   : > { %v9703_v49 = vpack.c.bf16 %v1168_v39, %v1164_v37  ;;  %v9705_v50 = vpack.c.bf16 %v1170_v40, %v1166_v38  ;;  %v1104_v51 = vadd.f32 %v1103_v47, %v9686_v9  ;;  %v1157_v52 = vadd.f32 %v1156_v48, %v9689_v10  ;;  %v1216_v34 = vld [vmem:[#allocation11 + $0xe8] sm:$0xff] }
 0x26c   : > { %v1105_v55 = vpop.f32.mrf.mxu1  ;;  %v1158_v56 = vpop.f32.mrf.mxu0  ;;  %v1171_v14 = vmax.f32 %v1102_v45, 0.0  ;;  %v1173_v15 = vmax.f32 %v1155_v46, 0.0  ;;  %v7411_v33 = vcombine.high %v1348_v32, %v1352_v60  ;;  %v1340_v35 = vld [vmem:[#allocation11 + $0x4c8] sm:$0xff]  ;;  %v7282_v37 = vcombine.low %v1220_v26, %v1224_v29 }
 0x26d   : > { %v1106_v63 = vadd.f32 %v1105_v55, %v720_v11  ;;  %v1159_v3 = vadd.f32 %v1158_v56, %v728_v12  ;;  %2797 = vmatprep.mubr.bf16.mxu1 %v9703_v49  ;;  %2850 = vmatprep.mubr.bf16.mxu0 %v9705_v50  ;;  %v1172_v16 = vmax.f32 %v1104_v51, 0.0  ;;  %v1174_v17 = vmax.f32 %v1157_v52, 0.0  ;;  %v1332_v43 = vld [vmem:[#allocation11 + $0x488] sm:$0xff] }
 0x26e   : > { %v1107_v18 = vpop.f32.mrf.mxu1  ;;  %v1160_v19 = vpop.f32.mrf.mxu0  ;;  %2798 = vmatmul.mubr.bf16.vlgmr.msra.gmra.mxu1 %v9709_v53  ;;  %2851 = vmatmul.mubr.bf16.vlgmr.msra.gmra.mxu0 %v9711_v54  ;;  %v7410_v38 = vcombine.low %v1348_v32, %v1352_v60  ;;  %v7275_v39 = vcombine.high %v1212_v0, %v1216_v34  ;;  %v1336_v44 = vld [vmem:[#allocation11 + $0x4a8] sm:$0xff]  ;;  %v7274_v45 = vcombine.low %v1212_v0, %v1216_v34 }
 0x26f   : > { %v1175_v11 = vmax.f32 %v1106_v63, 0.0  ;;  %v1177_v12 = vmax.f32 %v1159_v3, 0.0  ;;  %v1108_v20 = vadd.f32 %v1107_v18, %v9686_v9  ;;  %v1161_v21 = vadd.f32 %v1160_v19, %v9689_v10  ;;  %2872 = vmatpush1.bf16.msra.mxu1 %v7306_v1  ;;  %2925 = vmatpush1.bf16.msra.mxu0 %v7434_v2  ;;  %v1196_v51 = vld [vmem:[#allocation11 + $0x48] sm:$0xff] }
 0x270   : > { %2873 = vmatprep.subr.bf16.mxu1 %v7299_v36  ;;  %2926 = vmatprep.subr.bf16.mxu0 %v7427_v58  ;;  %v7290_v10 = vcombine.low %v1228_v59, %v1232_v7  ;;  %v7283_v2 = vcombine.high %v1220_v26, %v1224_v29  ;;  %v1344_v36 = vld [vmem:[#allocation11 + $0x4e8] sm:$0xff]  ;;  %v7267_v47 = vcombine.high %v1204_v41, %v1208_v42 }
 0x271   : > { %v1176_v24 = vmax.f32 %v1108_v20, 0.0  ;;  %v1178_v25 = vmax.f32 %v1161_v21, 0.0  ;;  %v9727_v27 = vpack.c.bf16 %v1175_v11, %v1171_v14  ;;  %v9729_v9 = vpack.c.bf16 %v1177_v12, %v1173_v15  ;;  %v1200_v52 = vld [vmem:[#allocation11 + $0x68] sm:$0xff] }
 0x272   : > { %v7403_v40 = vcombine.high %v1340_v35, %v1344_v36  ;;  %v7402_v46 = vcombine.low %v1340_v35, %v1344_v36  ;;  %v7395_v48 = vcombine.high %v1332_v43, %v1336_v44  ;;  %v1324_v55 = vld [vmem:[#allocation11 + $0x448] sm:$0xff]  ;;  %v7394_v58 = vcombine.low %v1332_v43, %v1336_v44 }
 0x273   : > { %v9731_v61 = vpack.c.bf16 %v1176_v24, %v1172_v16  ;;  %v9733_v1 = vpack.c.bf16 %v1178_v25, %v1174_v17  ;;  %2874 = vmatpush1.bf16.msra.mxu1 %v7298_v57  ;;  %2927 = vmatpush1.bf16.msra.mxu0 %v7426_v6  ;;  %v1328_v56 = vld [vmem:[#allocation11 + $0x468] sm:$0xff]  ;;  %v7266_v57 = vcombine.low %v1204_v41, %v1208_v42 }
 0x274   : > { %2875 = vmatprep.subr.bf16.mxu1 %v7291_v22  ;;  %2928 = vmatprep.subr.bf16.mxu0 %v7419_v23  ;;  %v7259_v59 = vcombine.high %v1196_v51, %v1200_v52  ;;  %v7387_v63 = vcombine.high %v1324_v55, %v1328_v56  ;;  %v1188_v3 = vld [vmem:[#allocation11 + $0x8] sm:$0xff]  ;;  %v7258_v13 = vcombine.low %v1196_v51, %v1200_v52 }
 0x275   : > { %2807 = vmatprep.mubr.bf16.mxu1 %v9731_v61  ;;  %2860 = vmatprep.mubr.bf16.mxu0 %v9733_v1  ;;  %v1192_v6 = vld [vmem:[#allocation11 + $0x28] sm:$0xff]  ;;  %v7386_v14 = vcombine.low %v1324_v55, %v1328_v56 }
 0x276   : > { %2808 = vmatmul.mubr.bf16.gmra.mxu1 %v9727_v27  ;;  %2861 = vmatmul.mubr.bf16.gmra.mxu0 %v9729_v9  ;;  %v1316_v7 = vld [vmem:[#allocation11 + $0x408] sm:$0xff]  ;;  %v7251_v15 = vcombine.high %v1188_v3, %v1192_v6  ;;  %v7250_v12 = vcombine.low %v1188_v3, %v1192_v6 }
 0x277   : > { %2876 = vmatpush1.bf16.msra.mxu1 %v7290_v10  ;;  %2929 = vmatpush1.bf16.msra.mxu0 %v7418_v62  ;;  %v7379_v16 = vcombine.high %v1316_v7, %v1320_v8  ;;  %v1308_v17 = vld [vmem:[#allocation11 + $0x3c8] sm:$0xff]  ;;  %v7378_v20 = vcombine.low %v1316_v7, %v1320_v8 }
 0x278   : > { %2903 = vmatprep.mubr.bf16.mxu1 %v9703_v49  ;;  %2956 = vmatprep.mubr.bf16.mxu0 %v9705_v50  ;;  %v1312_v18 = vld [vmem:[#allocation11 + $0x3e8] sm:$0xff] }
 0x279   : > { %2877 = vmatprep.subr.bf16.mxu1 %v7283_v2  ;;  %2930 = vmatprep.subr.bf16.mxu0 %v7411_v33  ;;  %v1436_v19 = vld [vmem:[#allocation11 + $0x7c8] sm:$0xff]  ;;  %v7371_v21 = vcombine.high %v1308_v17, %v1312_v18  ;;  %v7370_v10 = vcombine.low %v1308_v17, %v1312_v18 }
 0x27a   : > { %v1440_v11 = vld [vmem:[#allocation11 + $0x7e8] sm:$0xff] }
 0x27b   : > { %2878 = vmatpush1.bf16.msra.mxu1 %v7282_v37  ;;  %2931 = vmatpush1.bf16.msra.mxu0 %v7410_v38  ;;  %v7499_v22 = vcombine.high %v1436_v19, %v1440_v11  ;;  %v1300_v23 = vld [vmem:[#allocation11 + $0x388] sm:$0xff]  ;;  %v7498_v29 = vcombine.low %v1436_v19, %v1440_v11 }
 0x27c   : > { %2879 = vmatprep.subr.bf16.mxu1 %v7275_v39  ;;  %2932 = vmatprep.subr.bf16.mxu0 %v7403_v40  ;;  %v1304_v24 = vld [vmem:[#allocation11 + $0x3a8] sm:$0xff] }
 0x27d   : > { %v1428_v25 = vld [vmem:[#allocation11 + $0x788] sm:$0xff]  ;;  %v7363_v32 = vcombine.high %v1300_v23, %v1304_v24  ;;  %v7362_v34 = vcombine.low %v1300_v23, %v1304_v24 }
 0x27e   : > { %v1432_v26 = vld [vmem:[#allocation11 + $0x7a8] sm:$0xff] }
 0x27f   : > { %2880 = vmatpush1.bf16.msra.mxu1 %v7274_v45  ;;  %2933 = vmatpush1.bf16.msra.mxu0 %v7402_v46  ;;  %v7491_v60 = vcombine.high %v1428_v25, %v1432_v26  ;;  %v1292_v62 = vld [vmem:[#allocation11 + $0x348] sm:$0xff]  ;;  %v7490_v35 = vcombine.low %v1428_v25, %v1432_v26 }
 0x280   : > { %2881 = vmatprep.subr.bf16.mxu1 %v7267_v47  ;;  %2934 = vmatprep.subr.bf16.mxu0 %v7395_v48  ;;  %v1296_v0 = vld [vmem:[#allocation11 + $0x368] sm:$0xff] }
 0x281   : > { %v1420_v2 = vld [vmem:[#allocation11 + $0x748] sm:$0xff]  ;;  %v7355_v36 = vcombine.high %v1292_v62, %v1296_v0  ;;  %v7354_v42 = vcombine.low %v1292_v62, %v1296_v0  ;;  %v1377_v62 = vld [vmem:[#allocation11 + $0x5f0] sm:$0xff] }
 0x282   : > { %v1424_v33 = vld [vmem:[#allocation11 + $0x768] sm:$0xff] }
 0x283   : > { %2882 = vmatpush1.bf16.msra.mxu1 %v7266_v57  ;;  %2935 = vmatpush1.bf16.msra.mxu0 %v7394_v58  ;;  %v7483_v37 = vcombine.high %v1420_v2, %v1424_v33  ;;  %v1284_v38 = vld [vmem:[#allocation11 + $0x308] sm:$0xff]  ;;  %v7482_v43 = vcombine.low %v1420_v2, %v1424_v33 }
 0x284   : > { %2883 = vmatprep.subr.bf16.mxu1 %v7259_v59  ;;  %2936 = vmatprep.subr.bf16.mxu0 %v7387_v63  ;;  %v1288_v39 = vld [vmem:[#allocation11 + $0x328] sm:$0xff] }
 0x285   : > { %v1412_v40 = vld [vmem:[#allocation11 + $0x708] sm:$0xff]  ;;  %v7347_v44 = vcombine.high %v1284_v38, %v1288_v39  ;;  %v7346_v52 = vcombine.low %v1284_v38, %v1288_v39  ;;  %v1369_v38 = vld [vmem:[#allocation11 + $0x5b0] sm:$0xff] }
 0x286   : > { %v1416_v41 = vld [vmem:[#allocation11 + $0x728] sm:$0xff] }
 0x287   : > { %2884 = vmatpush1.bf16.msra.mxu1 %v7258_v13  ;;  %2937 = vmatpush1.bf16.msra.mxu0 %v7386_v14  ;;  %v7475_v45 = vcombine.high %v1412_v40, %v1416_v41  ;;  %v1276_v46 = vld [vmem:[#allocation11 + $0x2c8] sm:$0xff]  ;;  %v7474_v55 = vcombine.low %v1412_v40, %v1416_v41 }
 0x288   : > { %2885 = vmatprep.subr.bf16.mxu1 %v7251_v15  ;;  %2938 = vmatprep.subr.bf16.mxu0 %v7379_v16  ;;  %v1280_v47 = vld [vmem:[#allocation11 + $0x2e8] sm:$0xff] }
 0x289   : > { %v1404_v48 = vld [vmem:[#allocation11 + $0x6c8] sm:$0xff]  ;;  %v7339_v56 = vcombine.high %v1276_v46, %v1280_v47  ;;  %v7338_v6 = vcombine.low %v1276_v46, %v1280_v47  ;;  %v1361_v46 = vld [vmem:[#allocation11 + $0x570] sm:$0xff] }
 0x28a   : > { %v1408_v51 = vld [vmem:[#allocation11 + $0x6e8] sm:$0xff] }
 0x28b   : > { %2886 = vmatpush1.bf16.msra.mxu1 %v7250_v12  ;;  %2939 = vmatpush1.bf16.msra.mxu0 %v7378_v20  ;;  %v7467_v57 = vcombine.high %v1404_v48, %v1408_v51  ;;  %v1268_v58 = vld [vmem:[#allocation11 + $0x288] sm:$0xff]  ;;  %v7466_v7 = vcombine.low %v1404_v48, %v1408_v51 }
 0x28c   : > { %2887 = vmatprep.subr.bf16.mxu1 %v7371_v21  ;;  %2940 = vmatprep.subr.bf16.mxu0 %v7499_v22  ;;  %v1272_v59 = vld [vmem:[#allocation11 + $0x2a8] sm:$0xff] }
 0x28d   : > { %v1396_v63 = vld [vmem:[#allocation11 + $0x688] sm:$0xff]  ;;  %v7331_v8 = vcombine.high %v1268_v58, %v1272_v59  ;;  %v7330_v18 = vcombine.low %v1268_v58, %v1272_v59  ;;  %v1353_v58 = vld [vmem:[#allocation11 + $0x530] sm:$0xff] }
 0x28e   : > { %v1400_v3 = vld [vmem:[#allocation11 + $0x6a8] sm:$0xff] }
 0x28f   : > { %2888 = vmatpush2.bf16.msra.mxu1 %v7370_v10  ;;  %2941 = vmatpush2.bf16.msra.mxu0 %v7498_v29  ;;  %v7459_v13 = vcombine.high %v1396_v63, %v1400_v3  ;;  %v1260_v14 = vld [vmem:[#allocation11 + $0x248] sm:$0xff]  ;;  %v7458_v19 = vcombine.low %v1396_v63, %v1400_v3  ;;  %v1245_v29 = vld [vmem:[#allocation11 + $0x1d0] sm:$0xff] }
 0x290   : > { %2889 = vmatprep.subr.bf16.mxu1 %v7363_v32  ;;  %2942 = vmatprep.subr.bf16.mxu0 %v7491_v60  ;;  %v1264_v15 = vld [vmem:[#allocation11 + $0x268] sm:$0xff]  ;;  %v1249_v32 = vld [vmem:[#allocation11 + $0x1f0] sm:$0xff] }
 0x291   : > { %v1388_v16 = vld [vmem:[#allocation11 + $0x648] sm:$0xff]  ;;  %v7323_v11 = vcombine.high %v1260_v14, %v1264_v15  ;;  %v7322_v24 = vcombine.low %v1260_v14, %v1264_v15  ;;  %v1373_v60 = vld [vmem:[#allocation11 + $0x5d0] sm:$0xff]  ;;  %v7309_v33 = vcombine.high %v1245_v29, %v1249_v32  ;;  %v7308_v39 = vcombine.low %v1245_v29, %v1249_v32 }
 0x292   : > { %v1392_v17 = vld [vmem:[#allocation11 + $0x668] sm:$0xff]  ;;  %v7436_v40 = vcombine.low %v1373_v60, %v1377_v62  ;;  %v1345_v14 = vld [vmem:[#allocation11 + $0x4f0] sm:$0xff] }
 0x293   : > { %2890 = vmatpush2.bf16.msra.mxu1 %v7362_v34  ;;  %2943 = vmatpush2.bf16.msra.mxu0 %v7490_v35  ;;  %v7451_v12 = vcombine.high %v1388_v16, %v1392_v17  ;;  %v1252_v20 = vld [vmem:[#allocation11 + $0x208] sm:$0xff]  ;;  %v7450_v25 = vcombine.low %v1388_v16, %v1392_v17  ;;  %v7437_v34 = vcombine.high %v1373_v60, %v1377_v62  ;;  %v1237_v35 = vld [vmem:[#allocation11 + $0x190] sm:$0xff] }
 0x294   : > { %2891 = vmatprep.subr.bf16.mxu1 %v7355_v36  ;;  %2944 = vmatprep.subr.bf16.mxu0 %v7483_v37  ;;  %v1256_v21 = vld [vmem:[#allocation11 + $0x228] sm:$0xff]  ;;  %v1241_v36 = vld [vmem:[#allocation11 + $0x1b0] sm:$0xff] }
 0x295   : > { %v1380_v22 = vld [vmem:[#allocation11 + $0x608] sm:$0xff]  ;;  %v7315_v26 = vcombine.high %v1252_v20, %v1256_v21  ;;  %v7314_v0 = vcombine.low %v1252_v20, %v1256_v21  ;;  %v1365_v37 = vld [vmem:[#allocation11 + $0x590] sm:$0xff]  ;;  %v7301_v41 = vcombine.high %v1237_v35, %v1241_v36  ;;  %v7300_v47 = vcombine.low %v1237_v35, %v1241_v36 }
 0x296   : > { %v1384_v23 = vld [vmem:[#allocation11 + $0x628] sm:$0xff]  ;;  %v7428_v48 = vcombine.low %v1365_v37, %v1369_v38  ;;  %v1337_v20 = vld [vmem:[#allocation11 + $0x4b0] sm:$0xff] }
 0x297   : > { %2892 = vmatpush2.bf16.msra.mxu1 %v7354_v42  ;;  %2945 = vmatpush2.bf16.msra.mxu0 %v7482_v43  ;;  %v7443_v10 = vcombine.high %v1380_v22, %v1384_v23  ;;  %v7442_v2 = vcombine.low %v1380_v22, %v1384_v23  ;;  %v7429_v42 = vcombine.high %v1365_v37, %v1369_v38  ;;  %v1229_v43 = vld [vmem:[#allocation11 + $0x150] sm:$0xff] }
 0x298   : > { %2893 = vmatprep.subr.bf16.mxu1 %v7347_v44  ;;  %2946 = vmatprep.subr.bf16.mxu0 %v7475_v45  ;;  %v1233_v44 = vld [vmem:[#allocation11 + $0x170] sm:$0xff] }
 0x299   : > { %v1357_v45 = vld [vmem:[#allocation11 + $0x550] sm:$0xff]  ;;  %v7293_v51 = vcombine.high %v1229_v43, %v1233_v44  ;;  %v7292_v59 = vcombine.low %v1229_v43, %v1233_v44 }
 0x29a   : > { %v7420_v63 = vcombine.low %v1357_v45, %v1361_v46  ;;  %v1329_v29 = vld [vmem:[#allocation11 + $0x470] sm:$0xff] }
 0x29b   : > { %2894 = vmatpush2.bf16.msra.mxu1 %v7346_v52  ;;  %2947 = vmatpush2.bf16.msra.mxu0 %v7474_v55  ;;  %v7421_v52 = vcombine.high %v1357_v45, %v1361_v46  ;;  %v1221_v55 = vld [vmem:[#allocation11 + $0x110] sm:$0xff] }
 0x29c   : > { %2895 = vmatprep.subr.bf16.mxu1 %v7339_v56  ;;  %2948 = vmatprep.subr.bf16.mxu0 %v7467_v57  ;;  %v1225_v56 = vld [vmem:[#allocation11 + $0x130] sm:$0xff] }
 0x29d   : > { %v1349_v57 = vld [vmem:[#allocation11 + $0x510] sm:$0xff]  ;;  %v7285_v3 = vcombine.high %v1221_v55, %v1225_v56  ;;  %v7284_v15 = vcombine.low %v1221_v55, %v1225_v56 }
 0x29e   : > { %v7412_v16 = vcombine.low %v1349_v57, %v1353_v58  ;;  %v1321_v35 = vld [vmem:[#allocation11 + $0x430] sm:$0xff] }
 0x29f   : > { %2896 = vmatpush2.bf16.msra.mxu1 %v7338_v6  ;;  %2949 = vmatpush2.bf16.msra.mxu0 %v7466_v7  ;;  %v7413_v6 = vcombine.high %v1349_v57, %v1353_v58  ;;  %v1213_v7 = vld [vmem:[#allocation11 + $0xd0] sm:$0xff] }
 0x2a0   : > { %2897 = vmatprep.subr.bf16.mxu1 %v7331_v8  ;;  %2950 = vmatprep.subr.bf16.mxu0 %v7459_v13  ;;  %v1217_v8 = vld [vmem:[#allocation11 + $0xf0] sm:$0xff] }
 0x2a1   : > { %v1341_v13 = vld [vmem:[#allocation11 + $0x4d0] sm:$0xff]  ;;  %v7277_v17 = vcombine.high %v1213_v7, %v1217_v8  ;;  %v7276_v21 = vcombine.low %v1213_v7, %v1217_v8 }
 0x2a2   : > { %v7404_v22 = vcombine.low %v1341_v13, %v1345_v14  ;;  %v1441_v43 = vld [vmem:[#allocation11 + $0x7f0] sm:$0xff] }
 0x2a3   : > { %2898 = vmatpush2.bf16.msra.mxu1 %v7330_v18  ;;  %2951 = vmatpush2.bf16.msra.mxu0 %v7458_v19  ;;  %v7405_v18 = vcombine.high %v1341_v13, %v1345_v14  ;;  %v1205_v19 = vld [vmem:[#allocation11 + $0x90] sm:$0xff] }
 0x2a4   : > { %2899 = vmatprep.subr.bf16.mxu1 %v7323_v11  ;;  %2952 = vmatprep.subr.bf16.mxu0 %v7451_v12  ;;  %v1209_v11 = vld [vmem:[#allocation11 + $0xb0] sm:$0xff] }
 0x2a5   : > { %v1333_v12 = vld [vmem:[#allocation11 + $0x490] sm:$0xff]  ;;  %v7269_v23 = vcombine.high %v1205_v19, %v1209_v11  ;;  %v7268_v32 = vcombine.low %v1205_v19, %v1209_v11 }
 0x2a6   : > { %v7396_v60 = vcombine.low %v1333_v12, %v1337_v20  ;;  %v1433_v55 = vld [vmem:[#allocation11 + $0x7b0] sm:$0xff] }
 0x2a7   : > { %2900 = vmatpush2.bf16.msra.mxu1 %v7322_v24  ;;  %2953 = vmatpush2.bf16.msra.mxu0 %v7450_v25  ;;  %v7397_v24 = vcombine.high %v1333_v12, %v1337_v20  ;;  %v1197_v25 = vld [vmem:[#allocation11 + $0x50] sm:$0xff] }
 0x2a8   : > { %2901 = vmatprep.subr.bf16.mxu1 %v7315_v26  ;;  %2954 = vmatprep.subr.bf16.mxu0 %v7443_v10  ;;  %v1201_v26 = vld [vmem:[#allocation11 + $0x70] sm:$0xff] }
 0x2a9   : > { %v1325_v10 = vld [vmem:[#allocation11 + $0x450] sm:$0xff]  ;;  %v7261_v62 = vcombine.high %v1197_v25, %v1201_v26  ;;  %v7260_v36 = vcombine.low %v1197_v25, %v1201_v26 }
 0x2aa   : > { %v7388_v37 = vcombine.low %v1325_v10, %v1329_v29  ;;  %v1425_v7 = vld [vmem:[#allocation11 + $0x770] sm:$0xff] }
 0x2ab   : > { %2902 = vmatpush2.bf16.msra.mxu1 %v7314_v0  ;;  %2955 = vmatpush2.bf16.msra.mxu0 %v7442_v2  ;;  %v7389_v0 = vcombine.high %v1325_v10, %v1329_v29  ;;  %v1189_v2 = vld [vmem:[#allocation11 + $0x10] sm:$0xff] }
 0x2ac   : > { %2977 = vmatprep.subr.bf16.mxu1 %v7309_v33  ;;  %3030 = vmatprep.subr.bf16.mxu0 %v7437_v34  ;;  %v1193_v33 = vld [vmem:[#allocation11 + $0x30] sm:$0xff] }
 0x2ad   : > { %v1317_v34 = vld [vmem:[#allocation11 + $0x410] sm:$0xff]  ;;  %v7253_v38 = vcombine.high %v1189_v2, %v1193_v33  ;;  %v7252_v44 = vcombine.low %v1189_v2, %v1193_v33 }
 0x2ae   : > { %2904 = vmatmul.mubr.bf16.vlgmr.msra.gmra.mxu1 %v9709_v53  ;;  %2957 = vmatmul.mubr.bf16.vlgmr.msra.gmra.mxu0 %v9711_v54  ;;  %v7380_v45 = vcombine.low %v1317_v34, %v1321_v35  ;;  %v1417_v19 = vld [vmem:[#allocation11 + $0x730] sm:$0xff] }
 0x2af   : > { %2913 = vmatprep.mubr.bf16.mxu1 %v9731_v61  ;;  %2966 = vmatprep.mubr.bf16.mxu0 %v9733_v1  ;;  %v1409_v25 = vld [vmem:[#allocation11 + $0x6f0] sm:$0xff] }
 0x2b0   : > { %2978 = vmatpush1.bf16.msra.mxu1 %v7308_v39  ;;  %3031 = vmatpush1.bf16.msra.mxu0 %v7436_v40  ;;  %v7381_v39 = vcombine.high %v1317_v34, %v1321_v35  ;;  %v1309_v40 = vld [vmem:[#allocation11 + $0x3d0] sm:$0xff] }
 0x2b1   : > { %2979 = vmatprep.subr.bf16.mxu1 %v7301_v41  ;;  %3032 = vmatprep.subr.bf16.mxu0 %v7429_v42  ;;  %v1313_v41 = vld [vmem:[#allocation11 + $0x3f0] sm:$0xff] }
 0x2b2   : > { %v1437_v42 = vld [vmem:[#allocation11 + $0x7d0] sm:$0xff]  ;;  %v7373_v46 = vcombine.high %v1309_v40, %v1313_v41  ;;  %v7372_v56 = vcombine.low %v1309_v40, %v1313_v41 }
 0x2b3   : > { %v7500_v57 = vcombine.low %v1437_v42, %v1441_v43  ;;  %v1401_v2 = vld [vmem:[#allocation11 + $0x6b0] sm:$0xff] }
 0x2b4   : > { %2980 = vmatpush1.bf16.msra.mxu1 %v7300_v47  ;;  %3033 = vmatpush1.bf16.msra.mxu0 %v7428_v48  ;;  %v7501_v47 = vcombine.high %v1437_v42, %v1441_v43  ;;  %v1301_v48 = vld [vmem:[#allocation11 + $0x390] sm:$0xff] }
 0x2b5   : > { %2981 = vmatprep.subr.bf16.mxu1 %v7293_v51  ;;  %3034 = vmatprep.subr.bf16.mxu0 %v7421_v52  ;;  %v1305_v51 = vld [vmem:[#allocation11 + $0x3b0] sm:$0xff] }
 0x2b6   : > { %2914 = vmatmul.mubr.bf16.gmra.mxu1 %v9727_v27  ;;  %2967 = vmatmul.mubr.bf16.gmra.mxu0 %v9729_v9  ;;  %v1429_v52 = vld [vmem:[#allocation11 + $0x790] sm:$0xff]  ;;  %v7365_v58 = vcombine.high %v1301_v48, %v1305_v51  ;;  %v7364_v8 = vcombine.low %v1301_v48, %v1305_v51 }
 0x2b7   : > { %3009 = vmatprep.mubr.bf16.mxu1 %v9703_v49  ;;  %3062 = vmatprep.mubr.bf16.mxu0 %v9705_v50  ;;  %v7492_v13 = vcombine.low %v1429_v52, %v1433_v55  ;;  %v1393_v40 = vld [vmem:[#allocation11 + $0x670] sm:$0xff] }
 0x2b8   : > { %2982 = vmatpush1.bf16.msra.mxu1 %v7292_v59  ;;  %3035 = vmatpush1.bf16.msra.mxu0 %v7420_v63  ;;  %v7493_v59 = vcombine.high %v1429_v52, %v1433_v55  ;;  %v1293_v63 = vld [vmem:[#allocation11 + $0x350] sm:$0xff] }
 0x2b9   : > { %2983 = vmatprep.subr.bf16.mxu1 %v7285_v3  ;;  %3036 = vmatprep.subr.bf16.mxu0 %v7413_v6  ;;  %v1297_v3 = vld [vmem:[#allocation11 + $0x370] sm:$0xff] }
 0x2ba   : > { %v1421_v6 = vld [vmem:[#allocation11 + $0x750] sm:$0xff]  ;;  %v7357_v14 = vcombine.high %v1293_v63, %v1297_v3  ;;  %v7356_v11 = vcombine.low %v1293_v63, %v1297_v3  ;;  %v1378_v63 = vld [vmem:[#allocation11 + $0x5f8] sm:$0xff] }
 0x2bb   : > { %v7484_v12 = vcombine.low %v1421_v6, %v1425_v7  ;;  %v1385_v48 = vld [vmem:[#allocation11 + $0x630] sm:$0xff] }
 0x2bc   : > { %2984 = vmatpush1.bf16.msra.mxu1 %v7284_v15  ;;  %3037 = vmatpush1.bf16.msra.mxu0 %v7412_v16  ;;  %v7485_v15 = vcombine.high %v1421_v6, %v1425_v7  ;;  %v1285_v16 = vld [vmem:[#allocation11 + $0x310] sm:$0xff] }
 0x2bd   : > { %2985 = vmatprep.subr.bf16.mxu1 %v7277_v17  ;;  %3038 = vmatprep.subr.bf16.mxu0 %v7405_v18  ;;  %v1289_v17 = vld [vmem:[#allocation11 + $0x330] sm:$0xff] }
 0x2be   : > { %v1413_v18 = vld [vmem:[#allocation11 + $0x710] sm:$0xff]  ;;  %v7349_v20 = vcombine.high %v1285_v16, %v1289_v17  ;;  %v7348_v26 = vcombine.low %v1285_v16, %v1289_v17  ;;  %v1370_v16 = vld [vmem:[#allocation11 + $0x5b8] sm:$0xff] }
 0x2bf   : > { %v7476_v10 = vcombine.low %v1413_v18, %v1417_v19 }
 0x2c0   : > { %2986 = vmatpush1.bf16.msra.mxu1 %v7276_v21  ;;  %3039 = vmatpush1.bf16.msra.mxu0 %v7404_v22  ;;  %v7477_v21 = vcombine.high %v1413_v18, %v1417_v19  ;;  %v1277_v22 = vld [vmem:[#allocation11 + $0x2d0] sm:$0xff] }
 0x2c1   : > { %2987 = vmatprep.subr.bf16.mxu1 %v7269_v23  ;;  %3040 = vmatprep.subr.bf16.mxu0 %v7397_v24  ;;  %v1281_v23 = vld [vmem:[#allocation11 + $0x2f0] sm:$0xff] }
 0x2c2   : > { %v1405_v24 = vld [vmem:[#allocation11 + $0x6d0] sm:$0xff]  ;;  %v7341_v29 = vcombine.high %v1277_v22, %v1281_v23  ;;  %v7340_v33 = vcombine.low %v1277_v22, %v1281_v23  ;;  %v1362_v22 = vld [vmem:[#allocation11 + $0x578] sm:$0xff] }
 0x2c3   : > { %v7468_v34 = vcombine.low %v1405_v24, %v1409_v25 }
 0x2c4   : > { %2988 = vmatpush1.bf16.msra.mxu1 %v7268_v32  ;;  %3041 = vmatpush1.bf16.msra.mxu0 %v7396_v60  ;;  %v7469_v32 = vcombine.high %v1405_v24, %v1409_v25  ;;  %v1269_v60 = vld [vmem:[#allocation11 + $0x290] sm:$0xff] }
 0x2c5   : > { %2989 = vmatprep.subr.bf16.mxu1 %v7261_v62  ;;  %3042 = vmatprep.subr.bf16.mxu0 %v7389_v0  ;;  %v1273_v62 = vld [vmem:[#allocation11 + $0x2b0] sm:$0xff] }
 0x2c6   : > { %v1397_v0 = vld [vmem:[#allocation11 + $0x690] sm:$0xff]  ;;  %v7333_v35 = vcombine.high %v1269_v60, %v1273_v62  ;;  %v7332_v41 = vcombine.low %v1269_v60, %v1273_v62  ;;  %v1354_v60 = vld [vmem:[#allocation11 + $0x538] sm:$0xff] }
 0x2c7   : > { %v7460_v42 = vcombine.low %v1397_v0, %v1401_v2 }
 0x2c8   : > { %2990 = vmatpush1.bf16.msra.mxu1 %v7260_v36  ;;  %3043 = vmatpush1.bf16.msra.mxu0 %v7388_v37  ;;  %v7461_v36 = vcombine.high %v1397_v0, %v1401_v2  ;;  %v1261_v37 = vld [vmem:[#allocation11 + $0x250] sm:$0xff] }
 0x2c9   : > { %2991 = vmatprep.subr.bf16.mxu1 %v7253_v38  ;;  %3044 = vmatprep.subr.bf16.mxu0 %v7381_v39  ;;  %v1265_v38 = vld [vmem:[#allocation11 + $0x270] sm:$0xff] }
 0x2ca   : > { %v1389_v39 = vld [vmem:[#allocation11 + $0x650] sm:$0xff]  ;;  %v7325_v43 = vcombine.high %v1261_v37, %v1265_v38  ;;  %v7324_v51 = vcombine.low %v1261_v37, %v1265_v38  ;;  %v1346_v37 = vld [vmem:[#allocation11 + $0x4f8] sm:$0xff] }
 0x2cb   : > { %v7452_v52 = vcombine.low %v1389_v39, %v1393_v40 }
 0x2cc   : > { %2992 = vmatpush1.bf16.msra.mxu1 %v7252_v44  ;;  %3045 = vmatpush1.bf16.msra.mxu0 %v7380_v45  ;;  %v7453_v44 = vcombine.high %v1389_v39, %v1393_v40  ;;  %v1253_v45 = vld [vmem:[#allocation11 + $0x210] sm:$0xff] }
 0x2cd   : > { %2993 = vmatprep.subr.bf16.mxu1 %v7373_v46  ;;  %3046 = vmatprep.subr.bf16.mxu0 %v7501_v47  ;;  %v1257_v46 = vld [vmem:[#allocation11 + $0x230] sm:$0xff] }
 0x2ce   : > { %v1381_v47 = vld [vmem:[#allocation11 + $0x610] sm:$0xff]  ;;  %v7317_v55 = vcombine.high %v1253_v45, %v1257_v46  ;;  %v7316_v3 = vcombine.low %v1253_v45, %v1257_v46  ;;  %v1338_v45 = vld [vmem:[#allocation11 + $0x4b8] sm:$0xff] }
 0x2cf   : > { %v7444_v6 = vcombine.low %v1381_v47, %v1385_v48 }
 0x2d0   : > { %2994 = vmatpush2.bf16.msra.mxu1 %v7372_v56  ;;  %3047 = vmatpush2.bf16.msra.mxu0 %v7500_v57  ;;  %v7445_v56 = vcombine.high %v1381_v47, %v1385_v48  ;;  %v1246_v57 = vld [vmem:[#allocation11 + $0x1d8] sm:$0xff] }
 0x2d1   : > { %2995 = vmatprep.subr.bf16.mxu1 %v7365_v58  ;;  %3048 = vmatprep.subr.bf16.mxu0 %v7493_v59  ;;  %v1250_v58 = vld [vmem:[#allocation11 + $0x1f8] sm:$0xff] }
 0x2d2   : > { %v1374_v59 = vld [vmem:[#allocation11 + $0x5d8] sm:$0xff]  ;;  %v7311_v7 = vcombine.high %v1246_v57, %v1250_v58  ;;  %v7310_v17 = vcombine.low %v1246_v57, %v1250_v58 }
 0x2d3   : > { %v7438_v18 = vcombine.low %v1374_v59, %v1378_v63  ;;  %v1198_v48 = vld [vmem:[#allocation11 + $0x58] sm:$0xff] }
 0x2d4   : > { %2996 = vmatpush2.bf16.msra.mxu1 %v7364_v8  ;;  %3049 = vmatpush2.bf16.msra.mxu0 %v7492_v13  ;;  %v7439_v8 = vcombine.high %v1374_v59, %v1378_v63  ;;  %v1238_v13 = vld [vmem:[#allocation11 + $0x198] sm:$0xff] }
 0x2d5   : > { %2997 = vmatprep.subr.bf16.mxu1 %v7357_v14  ;;  %3050 = vmatprep.subr.bf16.mxu0 %v7485_v15  ;;  %v1242_v14 = vld [vmem:[#allocation11 + $0x1b8] sm:$0xff] }
 0x2d6   : > { %v1366_v15 = vld [vmem:[#allocation11 + $0x598] sm:$0xff]  ;;  %v7303_v19 = vcombine.high %v1238_v13, %v1242_v14  ;;  %v7302_v23 = vcombine.low %v1238_v13, %v1242_v14 }
 0x2d7   : > { %v7430_v24 = vcombine.low %v1366_v15, %v1370_v16  ;;  %v1190_v63 = vld [vmem:[#allocation11 + $0x18] sm:$0xff] }
 0x2d8   : > { %2998 = vmatpush2.bf16.msra.mxu1 %v7356_v11  ;;  %3051 = vmatpush2.bf16.msra.mxu0 %v7484_v12  ;;  %v7431_v11 = vcombine.high %v1366_v15, %v1370_v16  ;;  %v1230_v12 = vld [vmem:[#allocation11 + $0x158] sm:$0xff] }
 0x2d9   : > { %2999 = vmatprep.subr.bf16.mxu1 %v7349_v20  ;;  %3052 = vmatprep.subr.bf16.mxu0 %v7477_v21  ;;  %v1234_v20 = vld [vmem:[#allocation11 + $0x178] sm:$0xff] }
 0x2da   : > { %v1358_v21 = vld [vmem:[#allocation11 + $0x558] sm:$0xff]  ;;  %v7295_v25 = vcombine.high %v1230_v12, %v1234_v20  ;;  %v7294_v62 = vcombine.low %v1230_v12, %v1234_v20 }
 0x2db   : > { %v7422_v0 = vcombine.low %v1358_v21, %v1362_v22  ;;  %v1310_v16 = vld [vmem:[#allocation11 + $0x3d8] sm:$0xff] }
 0x2dc   : > { %3000 = vmatpush2.bf16.msra.mxu1 %v7348_v26  ;;  %3053 = vmatpush2.bf16.msra.mxu0 %v7476_v10  ;;  %v7423_v26 = vcombine.high %v1358_v21, %v1362_v22  ;;  %v1222_v10 = vld [vmem:[#allocation11 + $0x118] sm:$0xff] }
 0x2dd   : > { %3001 = vmatprep.subr.bf16.mxu1 %v7341_v29  ;;  %3054 = vmatprep.subr.bf16.mxu0 %v7469_v32  ;;  %v1226_v29 = vld [vmem:[#allocation11 + $0x138] sm:$0xff] }
 0x2de   : > { %v1350_v32 = vld [vmem:[#allocation11 + $0x518] sm:$0xff]  ;;  %v7287_v2 = vcombine.high %v1222_v10, %v1226_v29  ;;  %v7286_v38 = vcombine.low %v1222_v10, %v1226_v29 }
 0x2df   : > { %v7414_v39 = vcombine.low %v1350_v32, %v1354_v60  ;;  %v1302_v22 = vld [vmem:[#allocation11 + $0x398] sm:$0xff] }
 0x2e0   : > { %3002 = vmatpush2.bf16.msra.mxu1 %v7340_v33  ;;  %3055 = vmatpush2.bf16.msra.mxu0 %v7468_v34  ;;  %v7415_v33 = vcombine.high %v1350_v32, %v1354_v60  ;;  %v1214_v34 = vld [vmem:[#allocation11 + $0xd8] sm:$0xff] }
 0x2e1   : > { %3003 = vmatprep.subr.bf16.mxu1 %v7333_v35  ;;  %3056 = vmatprep.subr.bf16.mxu0 %v7461_v36  ;;  %v1218_v35 = vld [vmem:[#allocation11 + $0xf8] sm:$0xff] }
 0x2e2   : > { %v1342_v36 = vld [vmem:[#allocation11 + $0x4d8] sm:$0xff]  ;;  %v7279_v40 = vcombine.high %v1214_v34, %v1218_v35  ;;  %v7278_v46 = vcombine.low %v1214_v34, %v1218_v35 }
 0x2e3   : > { %v7406_v47 = vcombine.low %v1342_v36, %v1346_v37  ;;  %v1294_v60 = vld [vmem:[#allocation11 + $0x358] sm:$0xff] }
 0x2e4   : > { %3004 = vmatpush2.bf16.msra.mxu1 %v7332_v41  ;;  %3057 = vmatpush2.bf16.msra.mxu0 %v7460_v42  ;;  %v7407_v41 = vcombine.high %v1342_v36, %v1346_v37  ;;  %v1206_v42 = vld [vmem:[#allocation11 + $0x98] sm:$0xff] }
 0x2e5   : > { %3005 = vmatprep.subr.bf16.mxu1 %v7325_v43  ;;  %3058 = vmatprep.subr.bf16.mxu0 %v7453_v44  ;;  %v1210_v43 = vld [vmem:[#allocation11 + $0xb8] sm:$0xff] }
 0x2e6   : > { %v1334_v44 = vld [vmem:[#allocation11 + $0x498] sm:$0xff] }
 0x2e7   : > { %v7398_v57 = vcombine.low %v1334_v44, %v1338_v45  ;;  %v1286_v37 = vld [vmem:[#allocation11 + $0x318] sm:$0xff] }
 0x2e8   : > { %3006 = vmatpush2.bf16.msra.mxu1 %v7324_v51  ;;  %3059 = vmatpush2.bf16.msra.mxu0 %v7452_v52  ;;  %v1202_v51 = vld [vmem:[#allocation11 + $0x78] sm:$0xff] }
 0x2e9   : > { %3007 = vmatprep.subr.bf16.mxu1 %v7317_v55  ;;  %3060 = vmatprep.subr.bf16.mxu0 %v7445_v56  ;;  %v1326_v52 = vld [vmem:[#allocation11 + $0x458] sm:$0xff]  ;;  %v7270_v56 = vcombine.low %v1206_v42, %v1210_v43  ;;  %v7263_v58 = vcombine.high %v1198_v48, %v1202_v51 }
 0x2ea   : > { %v1330_v55 = vld [vmem:[#allocation11 + $0x478] sm:$0xff] }
 0x2eb   : > { %v7391_v59 = vcombine.high %v1326_v52, %v1330_v55  ;;  %v7390_v13 = vcombine.low %v1326_v52, %v1330_v55  ;;  %v1270_v55 = vld [vmem:[#allocation11 + $0x298] sm:$0xff] }
 0x2ec   : > { %3008 = vmatpush2.bf16.msra.mxu1 %v7316_v3  ;;  %3061 = vmatpush2.bf16.msra.mxu0 %v7444_v6  ;;  %v1194_v3 = vld [vmem:[#allocation11 + $0x38] sm:$0xff] }
 0x2ed   : > { %3083 = vmatprep.subr.bf16.mxu1 %v7311_v7  ;;  %3136 = vmatprep.subr.bf16.mxu0 %v7439_v8  ;;  %v1318_v6 = vld [vmem:[#allocation11 + $0x418] sm:$0xff]  ;;  %v7262_v8 = vcombine.low %v1198_v48, %v1202_v51  ;;  %v7255_v14 = vcombine.high %v1190_v63, %v1194_v3 }
 0x2ee   : > { %v1322_v7 = vld [vmem:[#allocation11 + $0x438] sm:$0xff] }
 0x2ef   : > { %3010 = vmatmul.mubr.bf16.vlgmr.msra.gmra.mxu1 %v9709_v53  ;;  %3063 = vmatmul.mubr.bf16.vlgmr.msra.gmra.mxu0 %v9711_v54  ;;  %v7383_v15 = vcombine.high %v1318_v6, %v1322_v7  ;;  %v7382_v12 = vcombine.low %v1318_v6, %v1322_v7  ;;  %v1262_v7 = vld [vmem:[#allocation11 + $0x258] sm:$0xff] }
 0x2f0   : > { %3019 = vmatprep.mubr.bf16.mxu1 %v9731_v61  ;;  %3072 = vmatprep.mubr.bf16.mxu0 %v9733_v1 }
 0x2f1   : > { %3084 = vmatpush1.bf16.msra.mxu1 %v7310_v17  ;;  %3137 = vmatpush1.bf16.msra.mxu0 %v7438_v18  ;;  %v1314_v17 = vld [vmem:[#allocation11 + $0x3f8] sm:$0xff] }
 0x2f2   : > { %3085 = vmatprep.subr.bf16.mxu1 %v7303_v19  ;;  %3138 = vmatprep.subr.bf16.mxu0 %v7431_v11  ;;  %v1438_v18 = vld [vmem:[#allocation11 + $0x7d8] sm:$0xff]  ;;  %v7254_v11 = vcombine.low %v1190_v63, %v1194_v3  ;;  %v7375_v20 = vcombine.high %v1310_v16, %v1314_v17 }
 0x2f3   : > { %v1442_v19 = vld [vmem:[#allocation11 + $0x7f8] sm:$0xff] }
 0x2f4   : > { %v7503_v21 = vcombine.high %v1438_v18, %v1442_v19  ;;  %v7502_v10 = vcombine.low %v1438_v18, %v1442_v19  ;;  %v1254_v19 = vld [vmem:[#allocation11 + $0x218] sm:$0xff] }
 0x2f5   : > { %3086 = vmatpush1.bf16.msra.mxu1 %v7302_v23  ;;  %3139 = vmatpush1.bf16.msra.mxu0 %v7430_v24  ;;  %v1306_v23 = vld [vmem:[#allocation11 + $0x3b8] sm:$0xff] }
 0x2f6   : > { %3087 = vmatprep.subr.bf16.mxu1 %v7295_v25  ;;  %3140 = vmatprep.subr.bf16.mxu0 %v7423_v26  ;;  %v1430_v24 = vld [vmem:[#allocation11 + $0x798] sm:$0xff]  ;;  %v7374_v26 = vcombine.low %v1310_v16, %v1314_v17  ;;  %v7367_v29 = vcombine.high %v1302_v22, %v1306_v23 }
 0x2f7   : > { %3020 = vmatmul.mubr.bf16.gmra.mxu1 %v9727_v27  ;;  %3073 = vmatmul.mubr.bf16.gmra.mxu0 %v9729_v9  ;;  %v1434_v25 = vld [vmem:[#allocation11 + $0x7b8] sm:$0xff] }
 0x2f8   : > { %3115 = vmatprep.mubr.bf16.mxu1 %v9703_v49  ;;  %3168 = vmatprep.mubr.bf16.mxu0 %v9705_v50  ;;  %v7271_v49 = vcombine.high %v1206_v42, %v1210_v43  ;;  %v7399_v50 = vcombine.high %v1334_v44, %v1338_v45  ;;  %v7495_v32 = vcombine.high %v1430_v24, %v1434_v25  ;;  %v1278_v45 = vld [vmem:[#allocation11 + $0x2d8] sm:$0xff] }
 0x2f9   : > { %3088 = vmatpush1.bf16.msra.mxu1 %v7294_v62  ;;  %3141 = vmatpush1.bf16.msra.mxu0 %v7422_v0  ;;  %v1298_v62 = vld [vmem:[#allocation11 + $0x378] sm:$0xff]  ;;  %v7494_v34 = vcombine.low %v1430_v24, %v1434_v25 }
 0x2fa   : > { %3089 = vmatprep.subr.bf16.mxu1 %v7287_v2  ;;  %3142 = vmatprep.subr.bf16.mxu0 %v7415_v33  ;;  %v1422_v0 = vld [vmem:[#allocation11 + $0x758] sm:$0xff]  ;;  %v7366_v33 = vcombine.low %v1302_v22, %v1306_v23  ;;  %v7359_v35 = vcombine.high %v1294_v60, %v1298_v62 }
 0x2fb   : > { %v1426_v2 = vld [vmem:[#allocation11 + $0x778] sm:$0xff] }
 0x2fc   : > { %v7487_v36 = vcombine.high %v1422_v0, %v1426_v2  ;;  %v7486_v42 = vcombine.low %v1422_v0, %v1426_v2 }
 0x2fd   : > { %3090 = vmatpush1.bf16.msra.mxu1 %v7286_v38  ;;  %3143 = vmatpush1.bf16.msra.mxu0 %v7414_v39  ;;  %v1290_v38 = vld [vmem:[#allocation11 + $0x338] sm:$0xff] }
 0x2fe   : > { %3091 = vmatprep.subr.bf16.mxu1 %v7279_v40  ;;  %3144 = vmatprep.subr.bf16.mxu0 %v7407_v41  ;;  %v1414_v39 = vld [vmem:[#allocation11 + $0x718] sm:$0xff]  ;;  %v7358_v41 = vcombine.low %v1294_v60, %v1298_v62  ;;  %v7351_v43 = vcombine.high %v1286_v37, %v1290_v38  ;;  %v8350_v62 = vld [vmem:[#allocation14 + $0x188] ss:$28 sps:$4 sm:$0xff]  }
 0x2ff   : > { %v1418_v40 = vld [vmem:[#allocation11 + $0x738] sm:$0xff] }
 0x300   : > { %v7479_v44 = vcombine.high %v1414_v39, %v1418_v40  ;;  %v7478_v48 = vcombine.low %v1414_v39, %v1418_v40  ;;  %v8353_v39 = vld [vmem:[#allocation14 + $0x150] ss:$28 sps:$4 sm:$0xff]  }
 0x301   : > { %3092 = vmatpush1.bf16.msra.mxu1 %v7278_v46  ;;  %3145 = vmatpush1.bf16.msra.mxu0 %v7406_v47  ;;  %v1282_v46 = vld [vmem:[#allocation11 + $0x2f8] sm:$0xff] }
 0x302   : > { %3093 = vmatprep.subr.bf16.mxu1 %v7271_v49  ;;  %3146 = vmatprep.subr.bf16.mxu0 %v7399_v50  ;;  %v1406_v47 = vld [vmem:[#allocation11 + $0x6d8] sm:$0xff]  ;;  %v7350_v50 = vcombine.low %v1286_v37, %v1290_v38  ;;  %v7343_v51 = vcombine.high %v1278_v45, %v1282_v46 }
 0x303   : > { %v1410_v49 = vld [vmem:[#allocation11 + $0x6f8] sm:$0xff] }
 0x304   : > { %v7471_v52 = vcombine.high %v1406_v47, %v1410_v49  ;;  %v7470_v63 = vcombine.low %v1406_v47, %v1410_v49  ;;  %v8361_v49 = vld [vmem:[#allocation14 + $0xe4] ss:$28 sps:$4 sm:$0xff]  }
 0x305   : > { %3094 = vmatpush1.bf16.msra.mxu1 %v7270_v56  ;;  %3147 = vmatpush1.bf16.msra.mxu0 %v7398_v57  ;;  %v1274_v56 = vld [vmem:[#allocation11 + $0x2b8] sm:$0xff] }
 0x306   : > { %3095 = vmatprep.subr.bf16.mxu1 %v7263_v58  ;;  %3148 = vmatprep.subr.bf16.mxu0 %v7391_v59  ;;  %v1398_v57 = vld [vmem:[#allocation11 + $0x698] sm:$0xff]  ;;  %v7342_v59 = vcombine.low %v1278_v45, %v1282_v46  ;;  %v7335_v3 = vcombine.high %v1270_v55, %v1274_v56 }
 0x307   : > { %v1402_v58 = vld [vmem:[#allocation11 + $0x6b8] sm:$0xff] }
 0x308   : > { %v7463_v6 = vcombine.high %v1398_v57, %v1402_v58  ;;  %v7462_v16 = vcombine.low %v1398_v57, %v1402_v58  ;;  %v8356_v45 = vld [vmem:[#allocation14 + $0x118] ss:$28 sps:$4 sm:$0xff]   ;;  %v8364_v57 = vld [vmem:[#allocation14 + $0xac] ss:$28 sps:$4 sm:$0xff]  }
 0x309   : > { %3096 = vmatpush1.bf16.msra.mxu1 %v7262_v8  ;;  %3149 = vmatpush1.bf16.msra.mxu0 %v7390_v13  ;;  %v1266_v8 = vld [vmem:[#allocation11 + $0x278] sm:$0xff]  ;;  %v8391_v58 = vld [vmem:[#allocation14 + $0x42c] ss:$28 sps:$4 sm:$0xff]  }
 0x30a   : > { %3097 = vmatprep.subr.bf16.mxu1 %v7255_v14  ;;  %3150 = vmatprep.subr.bf16.mxu0 %v7383_v15  ;;  %v1390_v13 = vld [vmem:[#allocation11 + $0x658] sm:$0xff]  ;;  %v7334_v15 = vcombine.low %v1270_v55, %v1274_v56  ;;  %v7327_v17 = vcombine.high %v1262_v7, %v1266_v8  ;;  %v8383_v55 = vld [vmem:[#allocation14 + $0x460] ss:$28 sps:$4 sm:$0xff]  }
 0x30b   : > { %v1394_v14 = vld [vmem:[#allocation11 + $0x678] sm:$0xff] }
 0x30c   : > { %v7455_v18 = vcombine.high %v1390_v13, %v1394_v14  ;;  %v7454_v22 = vcombine.low %v1390_v13, %v1394_v14  ;;  %v8377_v46 = vld [vmem:[#allocation14 + $0x498] ss:$28 sps:$4 sm:$0xff]  }
 0x30d   : > { %3098 = vmatpush1.bf16.msra.mxu1 %v7254_v11  ;;  %3151 = vmatpush1.bf16.msra.mxu0 %v7382_v12  ;;  %v1258_v11 = vld [vmem:[#allocation11 + $0x238] sm:$0xff] }
 0x30e   : > { %3099 = vmatprep.subr.bf16.mxu1 %v7375_v20  ;;  %3152 = vmatprep.subr.bf16.mxu0 %v7503_v21  ;;  %v1382_v12 = vld [vmem:[#allocation11 + $0x618] sm:$0xff]  ;;  %v7326_v21 = vcombine.low %v1262_v7, %v1266_v8  ;;  %v7319_v23 = vcombine.high %v1254_v19, %v1258_v11  ;;  %v7318_v25 = vcombine.low %v1254_v19, %v1258_v11  ;;  %v8376_v7 = vld [vmem:[#allocation14 + $0x3c] ss:$28 sps:$4 sm:$0xff]   ;;  %v8388_v19 = vld [vmem:[#allocation14 + $0x34c] ss:$28 sps:$4 sm:$0xff]  }
 0x30f   : > { %v1386_v20 = vld [vmem:[#allocation11 + $0x638] sm:$0xff]  ;;  %v8403_v8 = vld [vmem:[#allocation14 + $0x3bc] ss:$28 sps:$4 sm:$0xff]   ;;  %v8415_v11 = vld [vmem:[#allocation14 + $0x6cc] ss:$28 sps:$4 sm:$0xff]  }
 0x310   : > { %v7447_v24 = vcombine.high %v1382_v12, %v1386_v20  ;;  %v8374_v13 = vld [vmem:[#allocation14 + $0x38] ss:$28 sps:$4 sm:$0xff]  }
 0x311   : > { %3100 = vmatpush2.bf16.msra.mxu1 %v7374_v26  ;;  %3153 = vmatpush2.bf16.msra.mxu0 %v7502_v10  ;;  %v7446_v26 = vcombine.low %v1382_v12, %v1386_v20  ;;  %v8352_v10 = vld [vmem:[#allocation14 + $0x18c] ss:$28 sps:$4 sm:$0xff]   ;;  %v8401_v14 = vld [vmem:[#allocation14 + $0x3b8] ss:$28 sps:$4 sm:$0xff]  }
 0x312   : > { %3101 = vmatprep.subr.bf16.mxu1 %v7367_v29  ;;  %3154 = vmatprep.subr.bf16.mxu0 %v7495_v32  ;;  %v8367_v29 = vld [vmem:[#allocation14 + $0x50c] ss:$28 sps:$4 sm:$0xff]   ;;  %v9757_v32 = vld [vmem:[#allocation13] sm:$0xff] }
 0x313   : > { %v9761_v60 = vrot.slane %v9757_v32, %v9659_v31  ;;  %v8386_v12 = vld [vmem:[#allocation14 + $0x348] ss:$28 sps:$4 sm:$0xff]  }
 0x314   : > { %v8413_v20 = vld [vmem:[#allocation14 + $0x6c8] ss:$28 sps:$4 sm:$0xff]  }
 0x315   : > { %3102 = vmatpush2.bf16.msra.mxu1 %v7366_v33  ;;  %3155 = vmatpush2.bf16.msra.mxu0 %v7494_v34  ;;  %v8365_v33 = vld [vmem:[#allocation14 + $0x508] ss:$28 sps:$4 sm:$0xff]   ;;  %v8355_v34 = vld [vmem:[#allocation14 + $0x154] ss:$28 sps:$4 sm:$0xff]  }
 0x316   : > { %3103 = vmatprep.subr.bf16.mxu1 %v7359_v35  ;;  %3156 = vmatprep.subr.bf16.mxu0 %v7487_v36  ;;  %v8373_v35 = vld [vmem:[#allocation14 + $0x4d4] ss:$28 sps:$4 sm:$0xff]  }
 0x319   : > { %3104 = vmatpush2.bf16.msra.mxu1 %v7358_v41  ;;  %3157 = vmatpush2.bf16.msra.mxu0 %v7486_v42  ;;  %v8371_v42 = vld [vmem:[#allocation14 + $0x4d0] ss:$28 sps:$4 sm:$0xff]  }
 0x31a   : > { %3105 = vmatprep.subr.bf16.mxu1 %v7351_v43  ;;  %3158 = vmatprep.subr.bf16.mxu0 %v7479_v44 }
 0x31d   : > { %3106 = vmatpush2.bf16.msra.mxu1 %v7350_v50  ;;  %3159 = vmatpush2.bf16.msra.mxu0 %v7478_v48  ;;  %v8385_v50 = vld [vmem:[#allocation14 + $0x464] ss:$28 sps:$4 sm:$0xff]  }
 0x31e   : > { %3107 = vmatprep.subr.bf16.mxu1 %v7343_v51  ;;  %3160 = vmatprep.subr.bf16.mxu0 %v7471_v52  ;;  %v8359_v52 = vld [vmem:[#allocation14 + $0xe0] ss:$28 sps:$4 sm:$0xff]  }
 0x321   : > { %3108 = vmatpush2.bf16.msra.mxu1 %v7342_v59  ;;  %3161 = vmatpush2.bf16.msra.mxu0 %v7470_v63  ;;  %v8362_v59 = vld [vmem:[#allocation14 + $0xa8] ss:$28 sps:$4 sm:$0xff]   ;;  %v8397_v63 = vld [vmem:[#allocation14 + $0x3f4] ss:$28 sps:$4 sm:$0xff]  }
 0x322   : > { %3109 = vmatprep.subr.bf16.mxu1 %v7335_v3  ;;  %3162 = vmatprep.subr.bf16.mxu0 %v7463_v6  ;;  %v8368_v3 = vld [vmem:[#allocation14 + $0x70] ss:$28 sps:$4 sm:$0xff]  }
 0x323   : > { %v8395_v6 = vld [vmem:[#allocation14 + $0x3f0] ss:$28 sps:$4 sm:$0xff]  }
 0x325   : > { %3110 = vmatpush2.bf16.msra.mxu1 %v7334_v15  ;;  %3163 = vmatpush2.bf16.msra.mxu0 %v7462_v16  ;;  %v8382_v15 = vld [vmem:[#allocation14 + $0x4] ss:$28 sps:$4 sm:$0xff]  }
 0x326   : > { %3111 = vmatprep.subr.bf16.mxu1 %v7327_v17  ;;  %3164 = vmatprep.subr.bf16.mxu0 %v7455_v18  ;;  %v8409_v16 = vld [vmem:[#allocation14 + $0x384] ss:$28 sps:$4 sm:$0xff]  }
 0x327   : > { %v8380_v17 = vld [vmem:[#allocation14] ss:$28 sps:$4 sm:$0xff]  }
 0x328   : > { %v8407_v18 = vld [vmem:[#allocation14 + $0x380] ss:$28 sps:$4 sm:$0xff]  }
 0x329   : > { %3112 = vmatpush2.bf16.msra.mxu1 %v7326_v21  ;;  %3165 = vmatpush2.bf16.msra.mxu0 %v7454_v22  ;;  %v8394_v21 = vld [vmem:[#allocation14 + $0x314] ss:$28 sps:$4 sm:$0xff]  }
 0x32a   : > { %3113 = vmatprep.subr.bf16.mxu1 %v7319_v23  ;;  %3166 = vmatprep.subr.bf16.mxu0 %v7447_v24  ;;  %v8421_v22 = vld [vmem:[#allocation14 + $0x694] ss:$28 sps:$4 sm:$0xff]  }
 0x32b   : > { %v8392_v23 = vld [vmem:[#allocation14 + $0x310] ss:$28 sps:$4 sm:$0xff]  }
 0x32c   : > { %v8419_v24 = vld [vmem:[#allocation14 + $0x690] ss:$28 sps:$4 sm:$0xff]  }
 0x32d   : > { %3114 = vmatpush2.bf16.msra.mxu1 %v7318_v25  ;;  %3167 = vmatpush2.bf16.msra.mxu0 %v7446_v26  ;;  %v8400_v25 = vld [vmem:[#allocation14 + $0x2dc] ss:$28 sps:$4 sm:$0xff]  }
 0x32e   : > { %6090 = vmatprep.subr.bf16.mxu1 %v8352_v10  ;;  %v9763_v0 = vpop.f32.mrf.mxu1  ;;  %v9765_v2 = vpop.f32.mrf.mxu0  ;;  %6143 = vmatprep.subr.bf16.mxu0 %v8367_v29  ;;  %v8427_v26 = vld [vmem:[#allocation14 + $0x65c] ss:$28 sps:$4 sm:$0xff]  }
 0x32f   : > { %v8398_v29 = vld [vmem:[#allocation14 + $0x2d8] ss:$28 sps:$4 sm:$0xff]  }
 0x330   : > { %3116 = vmatmul.mubr.bf16.vlgmr.msra.gmra.mxu1 %v9709_v53  ;;  %3169 = vmatmul.mubr.bf16.vlgmr.msra.gmra.mxu0 %v9711_v54  ;;  %v2801_v36 = vpop.f32.mrf.mxu1  ;;  %v2854_v37 = vpop.f32.mrf.mxu0  ;;  %v8358_v53 = vld [vmem:[#allocation14 + $0x11c] ss:$28 sps:$4 sm:$0xff]  }
 0x331   : > { %3125 = vmatprep.mubr.bf16.mxu1 %v9731_v61  ;;  %3178 = vmatprep.mubr.bf16.mxu0 %v9733_v1  ;;  %v2802_v38 = vadd.f32 %v2801_v36, %v9761_v60  ;;  %v8379_v54 = vld [vmem:[#allocation14 + $0x49c] ss:$28 sps:$4 sm:$0xff]  }
 0x332   : > { %6091 = vmatpush1.bf16.msra.mxu1 %v8350_v62  ;;  %v9772_v40 = vpop.f32.mrf.mxu1  ;;  %v9774_v41 = vpop.f32.mrf.mxu0  ;;  %6144 = vmatpush1.bf16.msra.mxu0 %v8365_v33  ;;  %v8425_v62 = vld [vmem:[#allocation14 + $0x658] ss:$28 sps:$4 sm:$0xff]   ;;  %v8406_v33 = vld [vmem:[#allocation14 + $0x2a4] ss:$28 sps:$4 sm:$0xff]  }
 0x333   : > { %6092 = vmatprep.subr.bf16.mxu1 %v8355_v34  ;;  %6145 = vmatprep.subr.bf16.mxu0 %v8373_v35  ;;  %v2855_v44 = vadd.f32 %v2854_v37, %v2802_v38  ;;  %v8433_v34 = vld [vmem:[#allocation14 + $0x624] ss:$28 sps:$4 sm:$0xff]  }
 0x334   : > { %v2805_v43 = vpop.f32.mrf.mxu1  ;;  %v2858_v1 = vpop.f32.mrf.mxu0  ;;  %v8404_v37 = vld [vmem:[#allocation14 + $0x2a0] ss:$28 sps:$4 sm:$0xff]  }
 0x335   : > { %v2806_v61 = vadd.f32 %v2805_v43, %v9761_v60  ;;  %v3190_v48 = vmax.f32 %v2855_v44, 0.0  ;;  %v8431_v38 = vld [vmem:[#allocation14 + $0x620] ss:$28 sps:$4 sm:$0xff]   ;;  %v8410_v43 = vld [vmem:[#allocation14 + $0x268] ss:$28 sps:$4 sm:$0xff]  }
 0x336   : > { %6093 = vmatpush1.bf16.msra.mxu1 %v8353_v39  ;;  %6146 = vmatpush1.bf16.msra.mxu0 %v8371_v42  ;;  %v2809_v10 = vpop.f32.mrf.mxu1  ;;  %v9782_v36 = vpop.f32.mrf.mxu0  ;;  %v8412_v39 = vld [vmem:[#allocation14 + $0x26c] ss:$28 sps:$4 sm:$0xff]  }
 0x337   : > { %v2859_v47 = vadd.f32 %v2858_v1, %v2806_v61  ;;  %6094 = vmatprep.subr.bf16.mxu1 %v8358_v53  ;;  %6147 = vmatprep.subr.bf16.mxu0 %v8379_v54  ;;  %v8436_v42 = vld [vmem:[#allocation14 + $0x5ec] ss:$28 sps:$4 sm:$0xff]   ;;  %v8418_v61 = vld [vmem:[#allocation14 + $0x234] ss:$28 sps:$4 sm:$0xff]  }
 0x338   : > { %3126 = vmatmul.mubr.bf16.gmra.mxu1 %v9727_v27  ;;  %3179 = vmatmul.mubr.bf16.gmra.mxu0 %v9729_v9  ;;  %v8389_v27 = vld [vmem:[#allocation14 + $0x428] ss:$28 sps:$4 sm:$0xff]   ;;  %v8370_v9 = vld [vmem:[#allocation14 + $0x74] ss:$28 sps:$4 sm:$0xff]   ;;  %v2811_v35 = vpop.f32.mrf.mxu1  ;;  %v2864_v54 = vpop.f32.mrf.mxu0 }
 0x339   : > { %v3198_v51 = vmax.f32 %v2859_v47, 0.0  ;;  %v8434_v44 = vld [vmem:[#allocation14 + $0x5e8] ss:$28 sps:$4 sm:$0xff]   ;;  %v8439_v1 = vld [vmem:[#allocation14 + $0x5b4] ss:$28 sps:$4 sm:$0xff]  }
 0x33a   : > { %6095 = vmatpush1.bf16.msra.mxu1 %v8356_v45  ;;  %6148 = vmatpush1.bf16.msra.mxu0 %v8377_v46  ;;  %v2813_v53 = vpop.f32.mrf.mxu1  ;;  %v1448_v45 = vrot.slane %v9757_v32, %v9656_v30  ;;  %v2866_v47 = vpop.f32.mrf.mxu0 }
 0x33b   : > { %v9779_v56 = vpack.c.bf16 %v3198_v51, %v3190_v48  ;;  %6096 = vmatprep.subr.bf16.mxu1 %v8361_v49  ;;  %6149 = vmatprep.subr.bf16.mxu0 %v8385_v50  ;;  %v8416_v49 = vld [vmem:[#allocation14 + $0x230] ss:$28 sps:$4 sm:$0xff]   ;;  %v8424_v51 = vld [vmem:[#allocation14 + $0x1fc] ss:$28 sps:$4 sm:$0xff]  }
 0x33c   : > { %v2815_v46 = vpop.f32.mrf.mxu1  ;;  %v8437_v50 = vld [vmem:[#allocation14 + $0x5b0] ss:$28 sps:$4 sm:$0xff]   ;;  %v2804_v48 = vadd.f32 %v9772_v40, %v1448_v45  ;;  %v8445_v40 = vld [vmem:[#allocation14 + $0x544] ss:$28 sps:$4 sm:$0xff]  }
 0x33d   : > { %6122 = vmatprep.mubr.bf16.mxu1 %v9779_v56 }
 0x33e   : > { %6097 = vmatpush1.bf16.msra.mxu1 %v8359_v52  ;;  %6150 = vmatpush1.bf16.msra.mxu0 %v8383_v55  ;;  %v8442_v52 = vld [vmem:[#allocation14 + $0x57c] ss:$28 sps:$4 sm:$0xff]   ;;  %v2812_v55 = vadd.f32 %v2811_v35, %v9761_v60 }
 0x33f   : > { %6098 = vmatprep.subr.bf16.mxu1 %v8364_v57  ;;  %6151 = vmatprep.subr.bf16.mxu0 %v8391_v58  ;;  %v2816_v57 = vadd.f32 %v2815_v46, %v9761_v60  ;;  %v2800_v58 = vadd.f32 %v9763_v0, %v1448_v45  ;;  %v8443_v60 = vld [vmem:[#allocation14 + $0x540] ss:$28 sps:$4 sm:$0xff]  }
 0x342   : > { %6099 = vmatpush1.bf16.msra.mxu1 %v8362_v59  ;;  %6152 = vmatpush1.bf16.msra.mxu0 %v8389_v27  ;;  %v2868_v59 = vpop.f32.mrf.mxu0  ;;  %v8422_v27 = vld [vmem:[#allocation14 + $0x1f8] ss:$28 sps:$4 sm:$0xff]  }
 0x343   : > { %6100 = vmatprep.subr.bf16.mxu1 %v8370_v9  ;;  %6153 = vmatprep.subr.bf16.mxu0 %v8397_v63  ;;  %v8440_v9 = vld [vmem:[#allocation14 + $0x578] ss:$28 sps:$4 sm:$0xff]   ;;  %v2857_v63 = vadd.f32 %v9774_v41, %v2804_v48  ;;  %v8457_v48 = vld [vmem:[#allocation14 + $0x7e4] ss:$28 sps:$4 sm:$0xff]  }
 0x345   : > { %v3197_v0 = vmax.f32 %v2857_v63, 0.0 }
 0x346   : > { %6101 = vmatpush1.bf16.msra.mxu1 %v8368_v3  ;;  %6154 = vmatpush1.bf16.msra.mxu0 %v8395_v6  ;;  %v8430_v3 = vld [vmem:[#allocation14 + $0x1c4] ss:$28 sps:$4 sm:$0xff]   ;;  %v2865_v6 = vadd.f32 %v2864_v54, %v2812_v55 }
 0x347   : > { %6102 = vmatprep.subr.bf16.mxu1 %v8376_v7  ;;  %6155 = vmatprep.subr.bf16.mxu0 %v8403_v8  ;;  %v2869_v7 = vadd.f32 %v2868_v59, %v2816_v57  ;;  %v2853_v8 = vadd.f32 %v9765_v2, %v2800_v58  ;;  %v1456_v2 = vrot.slane %v9757_v32, %v9683_v5 }
 0x348   : > { %v3206_v41 = vmax.f32 %v2865_v6, 0.0 }
 0x34a   : > { %6103 = vmatpush1.bf16.msra.mxu1 %v8374_v13  ;;  %6156 = vmatpush1.bf16.msra.mxu0 %v8401_v14  ;;  %v8428_v13 = vld [vmem:[#allocation14 + $0x1c0] ss:$28 sps:$4 sm:$0xff]   ;;  %v2810_v14 = vadd.f32 %v2809_v10, %v1448_v45 }
 0x34b   : > { %6104 = vmatprep.subr.bf16.mxu1 %v8382_v15  ;;  %6157 = vmatprep.subr.bf16.mxu0 %v8409_v16  ;;  %v2814_v15 = vadd.f32 %v2813_v53, %v1448_v45  ;;  %v8448_v16 = vld [vmem:[#allocation14 + $0x88c] ss:$28 sps:$4 sm:$0xff]  }
 0x34e   : > { %6105 = vmatpush1.bf16.msra.mxu1 %v8380_v17  ;;  %6158 = vmatpush1.bf16.msra.mxu0 %v8407_v18  ;;  %v8496_v17 = vld [vmem:[#allocation14 + $0xc0c] ss:$28 sps:$4 sm:$0xff]   ;;  %v3214_v18 = vmax.f32 %v2869_v7, 0.0 }
 0x34f   : > { %6106 = vmatprep.subr.bf16.mxu1 %v8388_v19  ;;  %6159 = vmatprep.subr.bf16.mxu0 %v8415_v11  ;;  %v3189_v19 = vmax.f32 %v2853_v8, 0.0  ;;  %v9794_v11 = vrot.slane %v9757_v32, %v9680_v4  ;;  %v8460_v8 = vld [vmem:[#allocation14 + $0x7ac] ss:$28 sps:$4 sm:$0xff]  }
 0x352   : > { %6107 = vmatpush2.bf16.msra.mxu1 %v8386_v12  ;;  %6160 = vmatpush2.bf16.msra.mxu0 %v8413_v20 }
 0x353   : > { %6108 = vmatprep.subr.bf16.mxu1 %v8394_v21  ;;  %6161 = vmatprep.subr.bf16.mxu0 %v8421_v22  ;;  %v8446_v21 = vld [vmem:[#allocation14 + $0x888] ss:$28 sps:$4 sm:$0xff]   ;;  %v9798_v22 = vpack.c.bf16 %v3197_v0, %v3189_v19 }
 0x354   : > { %v8458_v19 = vld [vmem:[#allocation14 + $0x7a8] ss:$28 sps:$4 sm:$0xff]  }
 0x356   : > { %6109 = vmatpush2.bf16.msra.mxu1 %v8392_v23  ;;  %6162 = vmatpush2.bf16.msra.mxu0 %v8419_v24  ;;  %v2863_v23 = vadd.f32 %v9782_v36, %v2810_v14  ;;  %v2867_v24 = vadd.f32 %v2866_v47, %v2814_v15  ;;  %v8452_v47 = vld [vmem:[#allocation14 + $0x818] ss:$28 sps:$4 sm:$0xff]  }
 0x357   : > { %6110 = vmatprep.subr.bf16.mxu1 %v8400_v25  ;;  %6163 = vmatprep.subr.bf16.mxu0 %v8427_v26  ;;  %v8451_v25 = vld [vmem:[#allocation14 + $0x854] ss:$28 sps:$4 sm:$0xff]   ;;  %v9801_v26 = vpack.c.bf16 %v3214_v18, %v3206_v41 }
 0x358   : > { %v3205_v36 = vmax.f32 %v2863_v23, 0.0  ;;  %v8502_v14 = vld [vmem:[#allocation14 + $0xbd4] ss:$28 sps:$4 sm:$0xff]   ;;  %v8508_v23 = vld [vmem:[#allocation14 + $0xb9c] ss:$28 sps:$4 sm:$0xff]  }
 0x35a   : > { %6111 = vmatpush2.bf16.msra.mxu1 %v8398_v29  ;;  %6164 = vmatpush2.bf16.msra.mxu0 %v8425_v62 }
 0x35b   : > { %6112 = vmatprep.subr.bf16.mxu1 %v8406_v33  ;;  %6165 = vmatprep.subr.bf16.mxu0 %v8433_v34 }
 0x35e   : > { %6113 = vmatpush2.bf16.msra.mxu1 %v8404_v37  ;;  %6166 = vmatpush2.bf16.msra.mxu0 %v8431_v38  ;;  %v8449_v37 = vld [vmem:[#allocation14 + $0x850] ss:$28 sps:$4 sm:$0xff]   ;;  %v3213_v38 = vmax.f32 %v2867_v24, 0.0 }
 0x35f   : > { %6114 = vmatprep.subr.bf16.mxu1 %v8412_v39  ;;  %6167 = vmatprep.subr.bf16.mxu0 %v8436_v42  ;;  %v8454_v42 = vld [vmem:[#allocation14 + $0x81c] ss:$28 sps:$4 sm:$0xff]  }
 0x362   : > { %6115 = vmatpush2.bf16.msra.mxu1 %v8410_v43  ;;  %6168 = vmatpush2.bf16.msra.mxu0 %v8434_v44 }
 0x363   : > { %6116 = vmatprep.subr.bf16.mxu1 %v8418_v61  ;;  %6169 = vmatprep.subr.bf16.mxu0 %v8439_v1 }
 0x366   : > { %6117 = vmatpush2.bf16.msra.mxu1 %v8416_v49  ;;  %6170 = vmatpush2.bf16.msra.mxu0 %v8437_v50  ;;  %v9807_v49 = vpack.c.bf16 %v3213_v38, %v3205_v36  ;;  %v8469_v36 = vld [vmem:[#allocation14 + $0x704] ss:$28 sps:$4 sm:$0xff]  }
 0x367   : > { %6118 = vmatprep.subr.bf16.mxu1 %v8424_v51  ;;  %6171 = vmatprep.subr.bf16.mxu0 %v8442_v52  ;;  %v8512_v38 = vld [vmem:[#allocation14 + $0xb60] ss:$28 sps:$4 sm:$0xff]  }
 0x36a   : > { %6119 = vmatpush2.bf16.msra.mxu1 %v8422_v27  ;;  %6172 = vmatpush2.bf16.msra.mxu0 %v8440_v9 }
 0x36b   : > { %6120 = vmatprep.subr.bf16.mxu1 %v8430_v3  ;;  %6173 = vmatprep.subr.bf16.mxu0 %v8445_v40  ;;  %v8455_v40 = vld [vmem:[#allocation14 + $0x7e0] ss:$28 sps:$4 sm:$0xff]  }
 0x36e   : > { %6121 = vmatpush2.bf16.msra.mxu1 %v8428_v13  ;;  %v2905_v12 = vpop.f32.mrf.mxu1  ;;  %v2958_v20 = vpop.f32.mrf.mxu0  ;;  %6174 = vmatpush2.bf16.msra.mxu0 %v8443_v60  ;;  %v8494_v13 = vld [vmem:[#allocation14 + $0xc08] ss:$28 sps:$4 sm:$0xff]  }
 0x36f   : > { %6196 = vmatprep.subr.bf16.mxu1 %v8448_v16  ;;  %6249 = vmatprep.subr.bf16.mxu0 %v8496_v17  ;;  %v2906_v33 = vadd.f32 %v2905_v12, %v1456_v2  ;;  %v8463_v12 = vld [vmem:[#allocation14 + $0x774] ss:$28 sps:$4 sm:$0xff]  }
 0x370   : > { %v2907_v10 = vpop.f32.mrf.mxu1  ;;  %v2960_v29 = vpop.f32.mrf.mxu0 }
 0x371   : > { %6123 = vmatmul.mubr.bf16.vlgmr.msra.gmra.mxu1 %v9798_v22  ;;  %v2908_v62 = vadd.f32 %v2907_v10, %v9794_v11  ;;  %v2959_v1 = vadd.f32 %v2958_v20, %v2906_v33  ;;  %v8500_v20 = vld [vmem:[#allocation14 + $0xbd0] ss:$28 sps:$4 sm:$0xff]   ;;  %v8506_v33 = vld [vmem:[#allocation14 + $0xb98] ss:$28 sps:$4 sm:$0xff]  }
 0x372   : > { %6132 = vmatprep.mubr.bf16.mxu1 %v9801_v26  ;;  %v2909_v34 = vpop.f32.mrf.mxu1  ;;  %v2962_v35 = vpop.f32.mrf.mxu0  ;;  %6197 = vmatpush1.bf16.msra.mxu1 %v8446_v21 }
 0x373   : > { %v2910_v39 = vadd.f32 %v2909_v34, %v1456_v2  ;;  %6198 = vmatprep.subr.bf16.mxu1 %v8451_v25  ;;  %v2961_v43 = vadd.f32 %v2960_v29, %v2908_v62  ;;  %v3191_v27 = vmax.f32 %v2959_v1, 0.0  ;;  %v8466_v62 = vld [vmem:[#allocation14 + $0x73c] ss:$28 sps:$4 sm:$0xff]   ;;  %v8524_v1 = vld [vmem:[#allocation14 + $0xaf0] ss:$28 sps:$4 sm:$0xff]  }
 0x374   : > { %v2911_v53 = vpop.f32.mrf.mxu1  ;;  %v2964_v54 = vpop.f32.mrf.mxu0 }
 0x375   : > { %v2963_v44 = vadd.f32 %v2962_v35, %v2910_v39  ;;  %v2912_v61 = vadd.f32 %v2911_v53, %v9794_v11  ;;  %v3192_v57 = vmax.f32 %v2961_v43, 0.0  ;;  %v8514_v35 = vld [vmem:[#allocation14 + $0xb64] ss:$28 sps:$4 sm:$0xff]   ;;  %v8520_v39 = vld [vmem:[#allocation14 + $0xb2c] ss:$28 sps:$4 sm:$0xff]  }
 0x376   : > { %v2915_v45 = vpop.f32.mrf.mxu1  ;;  %v2968_v46 = vpop.f32.mrf.mxu0  ;;  %6199 = vmatpush1.bf16.msra.mxu1 %v8449_v37  ;;  %v8464_v37 = vld [vmem:[#allocation14 + $0x738] ss:$28 sps:$4 sm:$0xff]   ;;  %v8472_v53 = vld [vmem:[#allocation14 + $0xa4c] ss:$28 sps:$4 sm:$0xff]  }
 0x377   : > { %v2965_v50 = vadd.f32 %v2964_v54, %v2912_v61  ;;  %6200 = vmatprep.subr.bf16.mxu1 %v8454_v42  ;;  %v3199_v51 = vmax.f32 %v2963_v44, 0.0  ;;  %v2916_v9 = vadd.f32 %v2915_v45, %v1456_v2  ;;  %v8467_v42 = vld [vmem:[#allocation14 + $0x700] ss:$28 sps:$4 sm:$0xff]   ;;  %v8518_v54 = vld [vmem:[#allocation14 + $0xb28] ss:$28 sps:$4 sm:$0xff]  }
 0x378   : > { %v2917_v52 = vpop.f32.mrf.mxu1  ;;  %v2970_v55 = vpop.f32.mrf.mxu0  ;;  %v8526_v43 = vld [vmem:[#allocation14 + $0xaf4] ss:$28 sps:$4 sm:$0xff]   ;;  %v8470_v44 = vld [vmem:[#allocation14 + $0xa48] ss:$28 sps:$4 sm:$0xff]   ;;  %v8532_v45 = vld [vmem:[#allocation14 + $0xabc] ss:$28 sps:$4 sm:$0xff]  }
 0x379   : > { %v3200_v58 = vmax.f32 %v2965_v50, 0.0  ;;  %6133 = vmatmul.mubr.bf16.gmra.mxu1 %v9807_v49  ;;  %v2918_v59 = vadd.f32 %v2917_v52, %v9794_v11  ;;  %v9813_v60 = vpack.c.bf16 %v3199_v51, %v3191_v27  ;;  %v2969_v41 = vadd.f32 %v2968_v46, %v2916_v9  ;;  %v8475_v61 = vld [vmem:[#allocation14 + $0xa14] ss:$28 sps:$4 sm:$0xff]   ;;  %v8481_v52 = vld [vmem:[#allocation14 + $0x9a4] ss:$28 sps:$4 sm:$0xff]  }
 0x37a   : > { %v2919_v63 = vpop.f32.mrf.mxu1  ;;  %v2972_v3 = vpop.f32.mrf.mxu0  ;;  %6201 = vmatpush1.bf16.msra.mxu1 %v8452_v47  ;;  %v8473_v46 = vld [vmem:[#allocation14 + $0xa10] ss:$28 sps:$4 sm:$0xff]   ;;  %v8478_v47 = vld [vmem:[#allocation14 + $0x9dc] ss:$28 sps:$4 sm:$0xff]   ;;  %v8542_v27 = vld [vmem:[#allocation14 + $0xdc8] ss:$28 sps:$4 sm:$0xff]  }
 0x37b   : > { %v9811_v6 = vpack.c.bf16 %v3200_v58, %v3192_v57  ;;  %v2920_v7 = vadd.f32 %v2919_v63, %v1456_v2  ;;  %6202 = vmatprep.subr.bf16.mxu1 %v8457_v48  ;;  %v2971_v15 = vadd.f32 %v2970_v55, %v2918_v59  ;;  %v3207_v10 = vmax.f32 %v2969_v41, 0.0  ;;  %v8530_v50 = vld [vmem:[#allocation14 + $0xab8] ss:$28 sps:$4 sm:$0xff]   ;;  %v8538_v48 = vld [vmem:[#allocation14 + $0xa84] ss:$28 sps:$4 sm:$0xff]  }
 0x37c   : > { %v2921_v0 = vpop.f32.mrf.mxu1  ;;  %v2974_v18 = vpop.f32.mrf.mxu0  ;;  %v8476_v51 = vld [vmem:[#allocation14 + $0x9d8] ss:$28 sps:$4 sm:$0xff]   ;;  %v8536_v55 = vld [vmem:[#allocation14 + $0xa80] ss:$28 sps:$4 sm:$0xff]   ;;  %v8544_v57 = vld [vmem:[#allocation14 + $0xdcc] ss:$28 sps:$4 sm:$0xff]  }
 0x37d   : > { %v2973_v16 = vadd.f32 %v2972_v3, %v2920_v7  ;;  %v2922_v17 = vadd.f32 %v2921_v0, %v9794_v11  ;;  %6175 = vmatprep.mubr.bf16.mxu0 %v9811_v6  ;;  %v3208_v24 = vmax.f32 %v2971_v15, 0.0  ;;  %v8461_v11 = vld [vmem:[#allocation14 + $0x770] ss:$28 sps:$4 sm:$0xff]   ;;  %v8479_v58 = vld [vmem:[#allocation14 + $0x9a0] ss:$28 sps:$4 sm:$0xff]  }
 0x37e   : > { %6176 = vmatmul.mubr.bf16.vlgmr.msra.gmra.mxu0 %v9813_v60  ;;  %6203 = vmatpush1.bf16.msra.mxu1 %v8455_v40  ;;  %v8484_v59 = vld [vmem:[#allocation14 + $0x96c] ss:$28 sps:$4 sm:$0xff]   ;;  %v8550_v9 = vld [vmem:[#allocation14 + $0xd94] ss:$28 sps:$4 sm:$0xff]   ;;  %v8556_v7 = vld [vmem:[#allocation14 + $0xd5c] ss:$28 sps:$4 sm:$0xff]  }
 0x37f   : > { %v2975_v2 = vadd.f32 %v2974_v18, %v2922_v17  ;;  %6204 = vmatprep.subr.bf16.mxu1 %v8460_v8  ;;  %6250 = vmatpush1.bf16.msra.mxu0 %v8494_v13  ;;  %v3215_v21 = vmax.f32 %v2973_v16, 0.0  ;;  %v8482_v63 = vld [vmem:[#allocation14 + $0x968] ss:$28 sps:$4 sm:$0xff]   ;;  %v8487_v3 = vld [vmem:[#allocation14 + $0x934] ss:$28 sps:$4 sm:$0xff]   ;;  %v1467_v18 = vsub.s32 5, %v9653_v28 }
 0x380   : > { %6251 = vmatprep.subr.bf16.mxu0 %v8502_v14  ;;  %v8548_v40 = vld [vmem:[#allocation14 + $0xd90] ss:$28 sps:$4 sm:$0xff]   ;;  %v8490_v13 = vld [vmem:[#allocation14 + $0x8fc] ss:$28 sps:$4 sm:$0xff]   ;;  %v8562_v14 = vld [vmem:[#allocation14 + $0xd24] ss:$28 sps:$4 sm:$0xff]  }
 0x381   : > { %v3216_v25 = vmax.f32 %v2975_v2, 0.0  ;;  %v9820_v34 = vpack.c.bf16 %v3215_v21, %v3207_v10  ;;  %v8485_v8 = vld [vmem:[#allocation14 + $0x930] ss:$28 sps:$4 sm:$0xff]   ;;  %v8554_v0 = vld [vmem:[#allocation14 + $0xd58] ss:$28 sps:$4 sm:$0xff]   ;;  %v1463_v2 = vsub.s32 4, %v9653_v28 }
 0x382   : > { %6205 = vmatpush1.bf16.msra.mxu1 %v8458_v19  ;;  %v8488_v15 = vld [vmem:[#allocation14 + $0x8f8] ss:$28 sps:$4 sm:$0xff]   ;;  %v8493_v16 = vld [vmem:[#allocation14 + $0x8c4] ss:$28 sps:$4 sm:$0xff]   ;;  %v8568_v41 = vld [vmem:[#allocation14 + $0xcec] ss:$28 sps:$4 sm:$0xff]  }
 0x383   : > { %v9818_v29 = vpack.c.bf16 %v3216_v25, %v3208_v24  ;;  %6206 = vmatprep.subr.bf16.mxu1 %v8463_v12  ;;  %6252 = vmatpush1.bf16.msra.mxu0 %v8500_v20  ;;  %v8560_v17 = vld [vmem:[#allocation14 + $0xd20] ss:$28 sps:$4 sm:$0xff]   ;;  %v8499_v12 = vld [vmem:[#allocation14 + $0x194] ss:$28 sps:$4 sm:$0xff]   ;;  %v8566_v20 = vld [vmem:[#allocation14 + $0xce8] ss:$28 sps:$4 sm:$0xff]   ;;  %v1464_v24 = vrot.slane %v9757_v32, %v1463_v2 }
 0x384   : > { %6253 = vmatprep.subr.bf16.mxu0 %v8508_v23  ;;  %v8491_v19 = vld [vmem:[#allocation14 + $0x8c0] ss:$28 sps:$4 sm:$0xff]   ;;  %v8574_v21 = vld [vmem:[#allocation14 + $0xcb4] ss:$28 sps:$4 sm:$0xff]   ;;  %v1468_v23 = vrot.slane %v9757_v32, %v1467_v18 }
 0x385   : > { %6185 = vmatprep.mubr.bf16.mxu0 %v9818_v29 }
 0x386   : > { %6186 = vmatmul.mubr.bf16.gmra.mxu0 %v9820_v34  ;;  %6207 = vmatpush1.bf16.msra.mxu1 %v8461_v11  ;;  %v8572_v11 = vld [vmem:[#allocation14 + $0xcb0] ss:$28 sps:$4 sm:$0xff]  }
 0x387   : > { %6208 = vmatprep.subr.bf16.mxu1 %v8466_v62  ;;  %6254 = vmatpush1.bf16.msra.mxu0 %v8506_v33  ;;  %v8580_v62 = vld [vmem:[#allocation14 + $0xc7c] ss:$28 sps:$4 sm:$0xff]  }
 0x388   : > { %6255 = vmatprep.subr.bf16.mxu0 %v8514_v35 }
 0x38a   : > { %6209 = vmatpush1.bf16.msra.mxu1 %v8464_v37 }
 0x38b   : > { %6210 = vmatprep.subr.bf16.mxu1 %v8469_v36  ;;  %6256 = vmatpush1.bf16.msra.mxu0 %v8512_v38 }
 0x38c   : > { %6257 = vmatprep.subr.bf16.mxu0 %v8520_v39 }
 0x38e   : > { %6211 = vmatpush1.bf16.msra.mxu1 %v8467_v42  ;;  %v8578_v42 = vld [vmem:[#allocation14 + $0xc78] ss:$28 sps:$4 sm:$0xff]  }
 0x38f   : > { %6212 = vmatprep.subr.bf16.mxu1 %v8472_v53  ;;  %6258 = vmatpush1.bf16.msra.mxu0 %v8518_v54  ;;  %v8586_v54 = vld [vmem:[#allocation14 + $0xc44] ss:$28 sps:$4 sm:$0xff]  }
 0x390   : > { %6259 = vmatprep.subr.bf16.mxu0 %v8526_v43 }
 0x392   : > { %6213 = vmatpush2.bf16.msra.mxu1 %v8470_v44 }
 0x393   : > { %6214 = vmatprep.subr.bf16.mxu1 %v8475_v61  ;;  %6260 = vmatpush1.bf16.msra.mxu0 %v8524_v1 }
 0x394   : > { %6261 = vmatprep.subr.bf16.mxu0 %v8532_v45 }
 0x396   : > { %6215 = vmatpush2.bf16.msra.mxu1 %v8473_v46 }
 0x397   : > { %6216 = vmatprep.subr.bf16.mxu1 %v8478_v47  ;;  %6262 = vmatpush1.bf16.msra.mxu0 %v8530_v50 }
 0x398   : > { %6263 = vmatprep.subr.bf16.mxu0 %v8538_v48  ;;  %v8584_v48 = vld [vmem:[#allocation14 + $0xc40] ss:$28 sps:$4 sm:$0xff]  }
 0x39a   : > { %6217 = vmatpush2.bf16.msra.mxu1 %v8476_v51 }
 0x39b   : > { %6218 = vmatprep.subr.bf16.mxu1 %v8481_v52  ;;  %6264 = vmatpush1.bf16.msra.mxu0 %v8536_v55  ;;  %v8592_v52 = vld [vmem:[#allocation14 + $0x514] ss:$28 sps:$4 sm:$0xff]  }
 0x39c   : > { %6265 = vmatprep.subr.bf16.mxu0 %v8544_v57 }
 0x39e   : > { %6219 = vmatpush2.bf16.msra.mxu1 %v8479_v58 }
 0x39f   : > { %6220 = vmatprep.subr.bf16.mxu1 %v8484_v59  ;;  %6266 = vmatpush2.bf16.msra.mxu0 %v8542_v27 }
 0x3a0   : > { %6267 = vmatprep.subr.bf16.mxu0 %v8550_v9 }
 0x3a2   : > { %6221 = vmatpush2.bf16.msra.mxu1 %v8482_v63 }
 0x3a3   : > { %6222 = vmatprep.subr.bf16.mxu1 %v8487_v3  ;;  %6268 = vmatpush2.bf16.msra.mxu0 %v8548_v40 }
 0x3a4   : > { %6269 = vmatprep.subr.bf16.mxu0 %v8556_v7 }
 0x3a6   : > { %6223 = vmatpush2.bf16.msra.mxu1 %v8485_v8 }
 0x3a7   : > { %6224 = vmatprep.subr.bf16.mxu1 %v8490_v13  ;;  %6270 = vmatpush2.bf16.msra.mxu0 %v8554_v0  ;;  %v8497_v0 = vld [vmem:[#allocation14 + $0x190] ss:$28 sps:$4 sm:$0xff]  }
 0x3a8   : > { %6271 = vmatprep.subr.bf16.mxu0 %v8562_v14 }
 0x3aa   : > { %6225 = vmatpush2.bf16.msra.mxu1 %v8488_v15 }
 0x3ab   : > { %6226 = vmatprep.subr.bf16.mxu1 %v8493_v16  ;;  %6272 = vmatpush2.bf16.msra.mxu0 %v8560_v17  ;;  %v8505_v16 = vld [vmem:[#allocation14 + $0x15c] ss:$28 sps:$4 sm:$0xff]  }
 0x3ac   : > { %6273 = vmatprep.subr.bf16.mxu0 %v8568_v41 }
 0x3ae   : > { %6227 = vmatpush2.bf16.msra.mxu1 %v8491_v19 }
 0x3af   : > { %v3011_v25 = vpop.f32.mrf.mxu1  ;;  %v3064_v10 = vpop.f32.mrf.mxu0  ;;  %6302 = vmatprep.subr.bf16.mxu1 %v8499_v12  ;;  %6274 = vmatpush2.bf16.msra.mxu0 %v8566_v20 }
 0x3b0   : > { %6275 = vmatprep.subr.bf16.mxu0 %v8574_v21  ;;  %v3012_v36 = vadd.f32 %v3011_v25, %v1464_v24  ;;  %v8503_v25 = vld [vmem:[#allocation14 + $0x158] ss:$28 sps:$4 sm:$0xff]  }
 0x3b1   : > { %v3013_v33 = vpop.f32.mrf.mxu1  ;;  %v3066_v35 = vpop.f32.mrf.mxu0 }
 0x3b2   : > { %v3014_v37 = vadd.f32 %v3013_v33, %v1468_v23  ;;  %v3065_v46 = vadd.f32 %v3064_v10, %v3012_v36  ;;  %v8517_v36 = vld [vmem:[#allocation14 + $0xec] ss:$28 sps:$4 sm:$0xff]  }
 0x3b3   : > { %v3015_v38 = vpop.f32.mrf.mxu1  ;;  %v3068_v39 = vpop.f32.mrf.mxu0  ;;  %6276 = vmatpush2.bf16.msra.mxu0 %v8572_v11 }
 0x3b4   : > { %v3016_v53 = vadd.f32 %v3015_v38, %v1464_v24  ;;  %6277 = vmatprep.subr.bf16.mxu0 %v8580_v62  ;;  %v3067_v61 = vadd.f32 %v3066_v35, %v3014_v37  ;;  %v3193_v63 = vmax.f32 %v3065_v46, 0.0  ;;  %v8509_v37 = vld [vmem:[#allocation14 + $0x120] ss:$28 sps:$4 sm:$0xff]   ;;  %v8515_v38 = vld [vmem:[#allocation14 + $0xe8] ss:$28 sps:$4 sm:$0xff]  }
 0x3b5   : > { %v3017_v43 = vpop.f32.mrf.mxu1  ;;  %v3070_v44 = vpop.f32.mrf.mxu0  ;;  %v8545_v46 = vld [vmem:[#allocation14 + $0x350] ss:$28 sps:$4 sm:$0xff]  }
 0x3b6   : > { %v3069_v1 = vadd.f32 %v3068_v39, %v3016_v53  ;;  %v3018_v45 = vadd.f32 %v3017_v43, %v1468_v23  ;;  %v3194_v59 = vmax.f32 %v3067_v61, 0.0  ;;  %v8523_v39 = vld [vmem:[#allocation14 + $0xb4] ss:$28 sps:$4 sm:$0xff]   ;;  %v8529_v53 = vld [vmem:[#allocation14 + $0x7c] ss:$28 sps:$4 sm:$0xff]  }
 0x3b7   : > { %v3021_v47 = vpop.f32.mrf.mxu1  ;;  %v3074_v50 = vpop.f32.mrf.mxu0  ;;  %6278 = vmatpush2.bf16.msra.mxu0 %v8578_v42  ;;  %v8521_v42 = vld [vmem:[#allocation14 + $0xb0] ss:$28 sps:$4 sm:$0xff]   ;;  %v8535_v43 = vld [vmem:[#allocation14 + $0x44] ss:$28 sps:$4 sm:$0xff]  }
 0x3b8   : > { %v3071_v51 = vadd.f32 %v3070_v44, %v3018_v45  ;;  %6279 = vmatprep.subr.bf16.mxu0 %v8586_v54  ;;  %v3201_v55 = vmax.f32 %v3069_v1, 0.0  ;;  %v3022_v3 = vadd.f32 %v3021_v47, %v1464_v24  ;;  %v8527_v54 = vld [vmem:[#allocation14 + $0x78] ss:$28 sps:$4 sm:$0xff]   ;;  %v8533_v44 = vld [vmem:[#allocation14 + $0x40] ss:$28 sps:$4 sm:$0xff]  }
 0x3b9   : > { %v3023_v57 = vpop.f32.mrf.mxu1  ;;  %v3076_v58 = vpop.f32.mrf.mxu0  ;;  %v8541_v61 = vld [vmem:[#allocation14 + $0xc] ss:$28 sps:$4 sm:$0xff]   ;;  %v8547_v45 = vld [vmem:[#allocation14 + $0x354] ss:$28 sps:$4 sm:$0xff]   ;;  %v8553_v47 = vld [vmem:[#allocation14 + $0x31c] ss:$28 sps:$4 sm:$0xff]  }
 0x3ba   : > { %v3202_v27 = vmax.f32 %v3071_v51, 0.0  ;;  %v3024_v9 = vadd.f32 %v3023_v57, %v1468_v23  ;;  %v9834_v14 = vpack.c.bf16 %v3201_v55, %v3193_v63  ;;  %v3075_v12 = vadd.f32 %v3074_v50, %v3022_v3  ;;  %v8539_v1 = vld [vmem:[#allocation14 + $0x8] ss:$28 sps:$4 sm:$0xff]   ;;  %v8551_v50 = vld [vmem:[#allocation14 + $0x318] ss:$28 sps:$4 sm:$0xff]  }
 0x3bb   : > { %v3025_v40 = vpop.f32.mrf.mxu1  ;;  %v3078_v7 = vpop.f32.mrf.mxu0  ;;  %6280 = vmatpush2.bf16.msra.mxu0 %v8584_v48  ;;  %v8559_v48 = vld [vmem:[#allocation14 + $0x2e4] ss:$28 sps:$4 sm:$0xff]   ;;  %v8571_v57 = vld [vmem:[#allocation14 + $0x274] ss:$28 sps:$4 sm:$0xff]  }
 0x3bc   : > { %v9832_v8 = vpack.c.bf16 %v3202_v27, %v3194_v59  ;;  %v3026_v13 = vadd.f32 %v3025_v40, %v1464_v24  ;;  %6355 = vmatprep.subr.bf16.mxu0 %v8592_v52  ;;  %v3077_v17 = vadd.f32 %v3076_v58, %v3024_v9  ;;  %v8511_v24 = vld [vmem:[#allocation14 + $0x124] ss:$28 sps:$4 sm:$0xff]   ;;  %v3209_v33 = vmax.f32 %v3075_v12, 0.0  ;;  %v8565_v52 = vld [vmem:[#allocation14 + $0x2ac] ss:$28 sps:$4 sm:$0xff]  }
 0x3bd   : > { %v3027_v15 = vpop.f32.mrf.mxu1  ;;  %v3080_v20 = vpop.f32.mrf.mxu0  ;;  %v8557_v51 = vld [vmem:[#allocation14 + $0x2e0] ss:$28 sps:$4 sm:$0xff]   ;;  %v8563_v55 = vld [vmem:[#allocation14 + $0x2a8] ss:$28 sps:$4 sm:$0xff]   ;;  %v1475_v58 = vsub.s32 7, %v9653_v28  ;;  %v1471_v27 = vsub.s32 6, %v9653_v28 }
 0x3be   : > { %v3079_v41 = vadd.f32 %v3078_v7, %v3026_v13  ;;  %v3028_v19 = vadd.f32 %v3027_v15, %v1468_v23  ;;  %6228 = vmatprep.mubr.bf16.mxu1 %v9832_v8  ;;  %v3210_v11 = vmax.f32 %v3077_v17, 0.0  ;;  %v8569_v59 = vld [vmem:[#allocation14 + $0x270] ss:$28 sps:$4 sm:$0xff]   ;;  %v8577_v9 = vld [vmem:[#allocation14 + $0x23c] ss:$28 sps:$4 sm:$0xff]  }
 0x3bf   : > { %6229 = vmatmul.mubr.bf16.vlgmr.msra.gmra.mxu1 %v9834_v14  ;;  %v1476_v63 = vrot.slane %v9757_v32, %v1475_v58  ;;  %v1472_v3 = vrot.slane %v9757_v32, %v1471_v27  ;;  %v8575_v13 = vld [vmem:[#allocation14 + $0x238] ss:$28 sps:$4 sm:$0xff]  }
 0x3c0   : > { %v3081_v21 = vadd.f32 %v3080_v20, %v3028_v19  ;;  %6303 = vmatpush1.bf16.msra.mxu1 %v8497_v0  ;;  %v3217_v10 = vmax.f32 %v3079_v41, 0.0  ;;  %v8583_v0 = vld [vmem:[#allocation14 + $0x204] ss:$28 sps:$4 sm:$0xff]  }
 0x3c1   : > { %6304 = vmatprep.subr.bf16.mxu1 %v8505_v16  ;;  %v8581_v20 = vld [vmem:[#allocation14 + $0x200] ss:$28 sps:$4 sm:$0xff]  }
 0x3c2   : > { %v3218_v62 = vmax.f32 %v3081_v21, 0.0  ;;  %v9840_v23 = vpack.c.bf16 %v3217_v10, %v3209_v33 }
 0x3c4   : > { %v9838_v35 = vpack.c.bf16 %v3218_v62, %v3210_v11  ;;  %6305 = vmatpush1.bf16.msra.mxu1 %v8503_v25  ;;  %v8589_v25 = vld [vmem:[#allocation14 + $0x1cc] ss:$28 sps:$4 sm:$0xff]  }
 0x3c5   : > { %6306 = vmatprep.subr.bf16.mxu1 %v8511_v24 }
 0x3c6   : > { %6238 = vmatprep.mubr.bf16.mxu1 %v9838_v35 }
 0x3c7   : > { %6239 = vmatmul.mubr.bf16.gmra.mxu1 %v9840_v23 }
 0x3c8   : > { %6307 = vmatpush1.bf16.msra.mxu1 %v8509_v37  ;;  %6334 = vmatprep.mubr.bf16.mxu1 %v9779_v56 }
 0x3c9   : > { %6308 = vmatprep.subr.bf16.mxu1 %v8517_v36 }
 0x3cc   : > { %6309 = vmatpush1.bf16.msra.mxu1 %v8515_v38  ;;  %v8587_v38 = vld [vmem:[#allocation14 + $0x1c8] ss:$28 sps:$4 sm:$0xff]  }
 0x3cd   : > { %6310 = vmatprep.subr.bf16.mxu1 %v8523_v39 }
 0x3d0   : > { %6311 = vmatpush1.bf16.msra.mxu1 %v8521_v42  ;;  %v8595_v42 = vld [vmem:[#allocation14 + $0x894] ss:$28 sps:$4 sm:$0xff]  }
 0x3d1   : > { %6312 = vmatprep.subr.bf16.mxu1 %v8529_v53 }
 0x3d4   : > { %6313 = vmatpush1.bf16.msra.mxu1 %v8527_v54 }
 0x3d5   : > { %6314 = vmatprep.subr.bf16.mxu1 %v8535_v43 }
 0x3d8   : > { %6315 = vmatpush1.bf16.msra.mxu1 %v8533_v44 }
 0x3d9   : > { %6316 = vmatprep.subr.bf16.mxu1 %v8541_v61 }
 0x3dc   : > { %6317 = vmatpush1.bf16.msra.mxu1 %v8539_v1 }
 0x3dd   : > { %6318 = vmatprep.subr.bf16.mxu1 %v8547_v45 }
 0x3e0   : > { %6319 = vmatpush2.bf16.msra.mxu1 %v8545_v46 }
 0x3e1   : > { %6320 = vmatprep.subr.bf16.mxu1 %v8553_v47 }
 0x3e4   : > { %6321 = vmatpush2.bf16.msra.mxu1 %v8551_v50 }
 0x3e5   : > { %6322 = vmatprep.subr.bf16.mxu1 %v8559_v48 }
 0x3e8   : > { %6323 = vmatpush2.bf16.msra.mxu1 %v8557_v51 }
 0x3e9   : > { %6324 = vmatprep.subr.bf16.mxu1 %v8565_v52  ;;  %v8590_v52 = vld [vmem:[#allocation14 + $0x510] ss:$28 sps:$4 sm:$0xff]  }
 0x3ec   : > { %6325 = vmatpush2.bf16.msra.mxu1 %v8563_v55  ;;  %v8593_v55 = vld [vmem:[#allocation14 + $0x890] ss:$28 sps:$4 sm:$0xff]  }
 0x3ed   : > { %6326 = vmatprep.subr.bf16.mxu1 %v8571_v57 }
 0x3f0   : > { %v3117_v40 = vpop.f32.mrf.mxu1  ;;  %v3170_v7 = vpop.f32.mrf.mxu0  ;;  %6327 = vmatpush2.bf16.msra.mxu1 %v8569_v59  ;;  %v8598_v59 = vld [vmem:[#allocation14 + $0x4dc] ss:$28 sps:$4 sm:$0xff]  }
 0x3f1   : > { %6328 = vmatprep.subr.bf16.mxu1 %v8577_v9  ;;  %v3118_v41 = vadd.f32 %v3117_v40, %v1472_v3  ;;  %v8601_v9 = vld [vmem:[#allocation14 + $0x85c] ss:$28 sps:$4 sm:$0xff]  }
 0x3f2   : > { %v3119_v15 = vpop.f32.mrf.mxu1  ;;  %v3172_v16 = vpop.f32.mrf.mxu0 }
 0x3f3   : > { %v3120_v17 = vadd.f32 %v3119_v15, %v1476_v63  ;;  %v3171_v33 = vadd.f32 %v3170_v7, %v3118_v41 }
 0x3f4   : > { %v3121_v19 = vpop.f32.mrf.mxu1  ;;  %v3174_v12 = vpop.f32.mrf.mxu0  ;;  %6329 = vmatpush2.bf16.msra.mxu1 %v8575_v13 }
 0x3f5   : > { %v3122_v21 = vadd.f32 %v3121_v19, %v1472_v3  ;;  %6330 = vmatprep.subr.bf16.mxu1 %v8583_v0  ;;  %v3173_v32 = vadd.f32 %v3172_v16, %v3120_v17  ;;  %v3195_v45 = vmax.f32 %v3171_v33, 0.0  ;;  %v8596_v16 = vld [vmem:[#allocation14 + $0x4d8] ss:$28 sps:$4 sm:$0xff]   ;;  %v8604_v19 = vld [vmem:[#allocation14 + $0x4a4] ss:$28 sps:$4 sm:$0xff]  }
 0x3f6   : > { %v3123_v10 = vpop.f32.mrf.mxu1  ;;  %v3176_v24 = vpop.f32.mrf.mxu0  ;;  %v8599_v17 = vld [vmem:[#allocation14 + $0x858] ss:$28 sps:$4 sm:$0xff]   ;;  %v8608_v33 = vld [vmem:[#allocation14 + $0x468] ss:$28 sps:$4 sm:$0xff]  }
 0x3f7   : > { %v3175_v11 = vadd.f32 %v3174_v12, %v3122_v21  ;;  %v3124_v62 = vadd.f32 %v3123_v10, %v1476_v63  ;;  %v3196_v44 = vmax.f32 %v3173_v32, 0.0  ;;  %v8602_v10 = vld [vmem:[#allocation14 + $0x4a0] ss:$28 sps:$4 sm:$0xff]  }
 0x3f8   : > { %v3127_v37 = vpop.f32.mrf.mxu1  ;;  %v3180_v36 = vpop.f32.mrf.mxu0  ;;  %6331 = vmatpush2.bf16.msra.mxu1 %v8581_v20 }
 0x3f9   : > { %v3177_v39 = vadd.f32 %v3176_v24, %v3124_v62  ;;  %6332 = vmatprep.subr.bf16.mxu1 %v8589_v25  ;;  %v3203_v53 = vmax.f32 %v3175_v11, 0.0  ;;  %v3128_v46 = vadd.f32 %v3127_v37, %v1472_v3  ;;  %v8605_v24 = vld [vmem:[#allocation14 + $0x820] ss:$28 sps:$4 sm:$0xff]   ;;  %v8610_v11 = vld [vmem:[#allocation14 + $0x46c] ss:$28 sps:$4 sm:$0xff]  }
 0x3fa   : > { %v3129_v54 = vpop.f32.mrf.mxu1  ;;  %v3182_v43 = vpop.f32.mrf.mxu0  ;;  %v8613_v62 = vld [vmem:[#allocation14 + $0x7ec] ss:$28 sps:$4 sm:$0xff]  }
 0x3fb   : > { %v3204_v61 = vmax.f32 %v3177_v39, 0.0  ;;  %v3130_v1 = vadd.f32 %v3129_v54, %v1476_v63  ;;  %v9853_v57 = vpack.c.bf16 %v3203_v53, %v3195_v45  ;;  %v3181_v0 = vadd.f32 %v3180_v36, %v3128_v46  ;;  %v8611_v37 = vld [vmem:[#allocation14 + $0x7e8] ss:$28 sps:$4 sm:$0xff]   ;;  %v8616_v36 = vld [vmem:[#allocation14 + $0x434] ss:$28 sps:$4 sm:$0xff]  }
 0x3fc   : > { %v3131_v47 = vpop.f32.mrf.mxu1  ;;  %v3184_v50 = vpop.f32.mrf.mxu0  ;;  %6333 = vmatpush2.bf16.msra.mxu1 %v8587_v38  ;;  %v8619_v38 = vld [vmem:[#allocation14 + $0x7b4] ss:$28 sps:$4 sm:$0xff]   ;;  %v8622_v53 = vld [vmem:[#allocation14 + $0x3fc] ss:$28 sps:$4 sm:$0xff]  }
 0x3fd   : > { %v9851_v48 = vpack.c.bf16 %v3204_v61, %v3196_v44  ;;  %v3132_v51 = vadd.f32 %v3131_v47, %v1472_v3  ;;  %6408 = vmatprep.subr.bf16.mxu1 %v8595_v42  ;;  %v3183_v40 = vadd.f32 %v3182_v43, %v3130_v1  ;;  %v3211_v21 = vmax.f32 %v3181_v0, 0.0  ;;  %v8614_v39 = vld [vmem:[#allocation14 + $0x430] ss:$28 sps:$4 sm:$0xff]   ;;  %v8625_v54 = vld [vmem:[#allocation14 + $0x77c] ss:$28 sps:$4 sm:$0xff]  }
 0x3fe   : > { %v3133_v58 = vpop.f32.mrf.mxu1  ;;  %v3186_v15 = vpop.f32.mrf.mxu0  ;;  %v8617_v42 = vld [vmem:[#allocation14 + $0x7b0] ss:$28 sps:$4 sm:$0xff]   ;;  %v8620_v43 = vld [vmem:[#allocation14 + $0x3f8] ss:$28 sps:$4 sm:$0xff]   ;;  %v8628_v61 = vld [vmem:[#allocation14 + $0x3c4] ss:$28 sps:$4 sm:$0xff]  }
 0x3ff   : > { %v3185_v7 = vadd.f32 %v3184_v50, %v3132_v51  ;;  %v3134_v13 = vadd.f32 %v3133_v58, %v1476_v63  ;;  %6281 = vmatprep.mubr.bf16.mxu0 %v9851_v48  ;;  %6335 = vmatmul.mubr.bf16.vlgmr.msra.gmra.mxu1 %v9798_v22  ;;  %v8607_v63 = vld [vmem:[#allocation14 + $0x824] ss:$28 sps:$4 sm:$0xff]   ;;  %v3212_v12 = vmax.f32 %v3183_v40, 0.0  ;;  %v8623_v44 = vld [vmem:[#allocation14 + $0x778] ss:$28 sps:$4 sm:$0xff]  }
 0x400   : > { %6282 = vmatmul.mubr.bf16.vlgmr.msra.gmra.mxu0 %v9853_v57  ;;  %6344 = vmatprep.mubr.bf16.mxu1 %v9801_v26  ;;  %v8631_v1 = vld [vmem:[#allocation14 + $0x744] ss:$28 sps:$4 sm:$0xff]   ;;  %v8634_v47 = vld [vmem:[#allocation14 + $0x38c] ss:$28 sps:$4 sm:$0xff]   ;;  %v8643_v58 = vld [vmem:[#allocation14 + $0xa54] ss:$28 sps:$4 sm:$0xff]  }
 0x401   : > { %v3187_v3 = vadd.f32 %v3186_v15, %v3134_v13  ;;  %6356 = vmatpush1.bf16.msra.mxu0 %v8590_v52  ;;  %6409 = vmatpush1.bf16.msra.mxu1 %v8593_v55  ;;  %v3219_v41 = vmax.f32 %v3185_v7, 0.0  ;;  %v8626_v45 = vld [vmem:[#allocation14 + $0x3c0] ss:$28 sps:$4 sm:$0xff]   ;;  %v8637_v50 = vld [vmem:[#allocation14 + $0x70c] ss:$28 sps:$4 sm:$0xff]  }
 0x402   : > { %6357 = vmatprep.subr.bf16.mxu0 %v8598_v59  ;;  %6410 = vmatprep.subr.bf16.mxu1 %v8601_v9  ;;  %v8629_v46 = vld [vmem:[#allocation14 + $0x740] ss:$28 sps:$4 sm:$0xff]   ;;  %v8632_v51 = vld [vmem:[#allocation14 + $0x388] ss:$28 sps:$4 sm:$0xff]   ;;  %v8640_v55 = vld [vmem:[#allocation14 + $0x6d4] ss:$28 sps:$4 sm:$0xff]  }
 0x403   : > { %v3220_v20 = vmax.f32 %v3187_v3, 0.0  ;;  %v9861_v32 = vpack.c.bf16 %v3219_v41, %v3211_v21  ;;  %v8635_v52 = vld [vmem:[#allocation14 + $0x708] ss:$28 sps:$4 sm:$0xff]   ;;  %v8638_v59 = vld [vmem:[#allocation14 + $0x6d0] ss:$28 sps:$4 sm:$0xff]  }
 0x404   : > { %v8641_v9 = vld [vmem:[#allocation14 + $0xa50] ss:$28 sps:$4 sm:$0xff]   ;;  %v8646_v40 = vld [vmem:[#allocation14 + $0x69c] ss:$28 sps:$4 sm:$0xff]   ;;  %v8652_v15 = vld [vmem:[#allocation14 + $0x664] ss:$28 sps:$4 sm:$0xff]  }
 0x405   : > { %v9859_v25 = vpack.c.bf16 %v3220_v20, %v3212_v12  ;;  %6358 = vmatpush1.bf16.msra.mxu0 %v8596_v16  ;;  %6411 = vmatpush1.bf16.msra.mxu1 %v8599_v17  ;;  %v8649_v7 = vld [vmem:[#allocation14 + $0xa1c] ss:$28 sps:$4 sm:$0xff]   ;;  %v8655_v3 = vld [vmem:[#allocation14 + $0x9e4] ss:$28 sps:$4 sm:$0xff]   ;;  %v8658_v41 = vld [vmem:[#allocation14 + $0x62c] ss:$28 sps:$4 sm:$0xff]  }
 0x406   : > { %6359 = vmatprep.subr.bf16.mxu0 %v8604_v19  ;;  %6412 = vmatprep.subr.bf16.mxu1 %v8607_v63  ;;  %v8644_v13 = vld [vmem:[#allocation14 + $0x698] ss:$28 sps:$4 sm:$0xff]   ;;  %v8650_v16 = vld [vmem:[#allocation14 + $0x660] ss:$28 sps:$4 sm:$0xff]   ;;  %v8661_v19 = vld [vmem:[#allocation14 + $0x9ac] ss:$28 sps:$4 sm:$0xff]  }
 0x407   : > { %6291 = vmatprep.mubr.bf16.mxu0 %v9859_v25  ;;  %6345 = vmatmul.mubr.bf16.gmra.mxu1 %v9807_v49  ;;  %v8647_v0 = vld [vmem:[#allocation14 + $0xa18] ss:$28 sps:$4 sm:$0xff]   ;;  %v8653_v17 = vld [vmem:[#allocation14 + $0x9e0] ss:$28 sps:$4 sm:$0xff]   ;;  %v8656_v63 = vld [vmem:[#allocation14 + $0x628] ss:$28 sps:$4 sm:$0xff]  }
 0x408   : > { %6292 = vmatmul.mubr.bf16.gmra.mxu0 %v9861_v32  ;;  %6440 = vmatprep.mubr.bf16.mxu1 %v9832_v8  ;;  %v8659_v12 = vld [vmem:[#allocation14 + $0x9a8] ss:$28 sps:$4 sm:$0xff]   ;;  %v8664_v20 = vld [vmem:[#allocation14 + $0x5f4] ss:$28 sps:$4 sm:$0xff]  }
 0x409   : > { %6360 = vmatpush1.bf16.msra.mxu0 %v8602_v10  ;;  %6413 = vmatpush1.bf16.msra.mxu1 %v8605_v24  ;;  %v8667_v21 = vld [vmem:[#allocation14 + $0x974] ss:$28 sps:$4 sm:$0xff]  }
 0x40a   : > { %6387 = vmatprep.mubr.bf16.mxu0 %v9811_v6  ;;  %6361 = vmatprep.subr.bf16.mxu0 %v8610_v11  ;;  %v8662_v10 = vld [vmem:[#allocation14 + $0x5f0] ss:$28 sps:$4 sm:$0xff]   ;;  %v8670_v11 = vld [vmem:[#allocation14 + $0x5bc] ss:$28 sps:$4 sm:$0xff]  }
 0x40b   : > { %6414 = vmatprep.subr.bf16.mxu1 %v8613_v62  ;;  %v8665_v24 = vld [vmem:[#allocation14 + $0x970] ss:$28 sps:$4 sm:$0xff]   ;;  %v8673_v62 = vld [vmem:[#allocation14 + $0x93c] ss:$28 sps:$4 sm:$0xff]  }
 0x40d   : > { %6362 = vmatpush1.bf16.msra.mxu0 %v8608_v33  ;;  %6415 = vmatpush1.bf16.msra.mxu1 %v8611_v37  ;;  %v8668_v33 = vld [vmem:[#allocation14 + $0x5b8] ss:$28 sps:$4 sm:$0xff]  }
 0x40e   : > { %6363 = vmatprep.subr.bf16.mxu0 %v8616_v36  ;;  %6416 = vmatprep.subr.bf16.mxu1 %v8619_v38  ;;  %v8671_v37 = vld [vmem:[#allocation14 + $0x938] ss:$28 sps:$4 sm:$0xff]   ;;  %v8676_v36 = vld [vmem:[#allocation14 + $0x584] ss:$28 sps:$4 sm:$0xff]  }
 0x40f   : > { %v8679_v38 = vld [vmem:[#allocation14 + $0x904] ss:$28 sps:$4 sm:$0xff]  }
 0x411   : > { %6364 = vmatpush1.bf16.msra.mxu0 %v8614_v39  ;;  %6417 = vmatpush1.bf16.msra.mxu1 %v8617_v42  ;;  %v8674_v39 = vld [vmem:[#allocation14 + $0x580] ss:$28 sps:$4 sm:$0xff]  }
 0x412   : > { %6365 = vmatprep.subr.bf16.mxu0 %v8622_v53  ;;  %6418 = vmatprep.subr.bf16.mxu1 %v8625_v54  ;;  %v8677_v42 = vld [vmem:[#allocation14 + $0x900] ss:$28 sps:$4 sm:$0xff]   ;;  %v8682_v53 = vld [vmem:[#allocation14 + $0x54c] ss:$28 sps:$4 sm:$0xff]  }
 0x413   : > { %v8685_v54 = vld [vmem:[#allocation14 + $0x8cc] ss:$28 sps:$4 sm:$0xff]  }
 0x415   : > { %6366 = vmatpush1.bf16.msra.mxu0 %v8620_v43  ;;  %6419 = vmatpush1.bf16.msra.mxu1 %v8623_v44  ;;  %v8680_v43 = vld [vmem:[#allocation14 + $0x548] ss:$28 sps:$4 sm:$0xff]  }
 0x416   : > { %6367 = vmatprep.subr.bf16.mxu0 %v8628_v61  ;;  %6420 = vmatprep.subr.bf16.mxu1 %v8631_v1  ;;  %v8683_v44 = vld [vmem:[#allocation14 + $0x8c8] ss:$28 sps:$4 sm:$0xff]   ;;  %v8688_v61 = vld [vmem:[#allocation14 + $0xc14] ss:$28 sps:$4 sm:$0xff]   ;;  %v8691_v1 = vld [vmem:[#allocation14 + $0x19c] ss:$28 sps:$4 sm:$0xff]  }
 0x419   : > { %6368 = vmatpush1.bf16.msra.mxu0 %v8626_v45  ;;  %6421 = vmatpush1.bf16.msra.mxu1 %v8629_v46  ;;  %v8686_v45 = vld [vmem:[#allocation14 + $0xc10] ss:$28 sps:$4 sm:$0xff]   ;;  %v8689_v46 = vld [vmem:[#allocation14 + $0x198] ss:$28 sps:$4 sm:$0xff]  }
 0x41a   : > { %6369 = vmatprep.subr.bf16.mxu0 %v8634_v47  ;;  %6422 = vmatprep.subr.bf16.mxu1 %v8637_v50  ;;  %v8694_v47 = vld [vmem:[#allocation14 + $0xbdc] ss:$28 sps:$4 sm:$0xff]   ;;  %v8697_v50 = vld [vmem:[#allocation14 + $0x164] ss:$28 sps:$4 sm:$0xff]  }
 0x41d   : > { %6370 = vmatpush1.bf16.msra.mxu0 %v8632_v51  ;;  %6423 = vmatpush1.bf16.msra.mxu1 %v8635_v52  ;;  %v8692_v51 = vld [vmem:[#allocation14 + $0xbd8] ss:$28 sps:$4 sm:$0xff]   ;;  %v8695_v52 = vld [vmem:[#allocation14 + $0x160] ss:$28 sps:$4 sm:$0xff]  }
 0x41e   : > { %6371 = vmatprep.subr.bf16.mxu0 %v8640_v55  ;;  %6424 = vmatprep.subr.bf16.mxu1 %v8643_v58  ;;  %v8700_v55 = vld [vmem:[#allocation14 + $0xba4] ss:$28 sps:$4 sm:$0xff]   ;;  %v8703_v58 = vld [vmem:[#allocation14 + $0x12c] ss:$28 sps:$4 sm:$0xff]  }
 0x421   : > { %6372 = vmatpush2.bf16.msra.mxu0 %v8638_v59  ;;  %6425 = vmatpush2.bf16.msra.mxu1 %v8641_v9  ;;  %v8698_v59 = vld [vmem:[#allocation14 + $0xba0] ss:$28 sps:$4 sm:$0xff]   ;;  %v8701_v9 = vld [vmem:[#allocation14 + $0x128] ss:$28 sps:$4 sm:$0xff]  }
 0x422   : > { %6373 = vmatprep.subr.bf16.mxu0 %v8646_v40  ;;  %6426 = vmatprep.subr.bf16.mxu1 %v8649_v7  ;;  %v8706_v40 = vld [vmem:[#allocation14 + $0xb6c] ss:$28 sps:$4 sm:$0xff]   ;;  %v8709_v7 = vld [vmem:[#allocation14 + $0xf4] ss:$28 sps:$4 sm:$0xff]  }
 0x425   : > { %6374 = vmatpush2.bf16.msra.mxu0 %v8644_v13  ;;  %6427 = vmatpush2.bf16.msra.mxu1 %v8647_v0  ;;  %v8704_v13 = vld [vmem:[#allocation14 + $0xb68] ss:$28 sps:$4 sm:$0xff]   ;;  %v8707_v0 = vld [vmem:[#allocation14 + $0xf0] ss:$28 sps:$4 sm:$0xff]  }
 0x426   : > { %6375 = vmatprep.subr.bf16.mxu0 %v8652_v15  ;;  %6428 = vmatprep.subr.bf16.mxu1 %v8655_v3  ;;  %v8712_v15 = vld [vmem:[#allocation14 + $0xb34] ss:$28 sps:$4 sm:$0xff]   ;;  %v8715_v3 = vld [vmem:[#allocation14 + $0xbc] ss:$28 sps:$4 sm:$0xff]  }
 0x429   : > { %6376 = vmatpush2.bf16.msra.mxu0 %v8650_v16  ;;  %6429 = vmatpush2.bf16.msra.mxu1 %v8653_v17  ;;  %v8710_v16 = vld [vmem:[#allocation14 + $0xb30] ss:$28 sps:$4 sm:$0xff]   ;;  %v8713_v17 = vld [vmem:[#allocation14 + $0xb8] ss:$28 sps:$4 sm:$0xff]  }
 0x42a   : > { %6377 = vmatprep.subr.bf16.mxu0 %v8658_v41  ;;  %6430 = vmatprep.subr.bf16.mxu1 %v8661_v19  ;;  %v8718_v41 = vld [vmem:[#allocation14 + $0xafc] ss:$28 sps:$4 sm:$0xff]   ;;  %v8721_v19 = vld [vmem:[#allocation14 + $0x84] ss:$28 sps:$4 sm:$0xff]  }
 0x42d   : > { %6378 = vmatpush2.bf16.msra.mxu0 %v8656_v63  ;;  %6431 = vmatpush2.bf16.msra.mxu1 %v8659_v12  ;;  %v8716_v63 = vld [vmem:[#allocation14 + $0xaf8] ss:$28 sps:$4 sm:$0xff]   ;;  %v8719_v12 = vld [vmem:[#allocation14 + $0x80] ss:$28 sps:$4 sm:$0xff]  }
 0x42e   : > { %6379 = vmatprep.subr.bf16.mxu0 %v8664_v20  ;;  %6432 = vmatprep.subr.bf16.mxu1 %v8667_v21  ;;  %v8724_v20 = vld [vmem:[#allocation14 + $0xac4] ss:$28 sps:$4 sm:$0xff]   ;;  %v8727_v21 = vld [vmem:[#allocation14 + $0x4c] ss:$28 sps:$4 sm:$0xff]  }
 0x431   : > { %6380 = vmatpush2.bf16.msra.mxu0 %v8662_v10  ;;  %6433 = vmatpush2.bf16.msra.mxu1 %v8665_v24  ;;  %v8722_v10 = vld [vmem:[#allocation14 + $0xac0] ss:$28 sps:$4 sm:$0xff]   ;;  %v8725_v24 = vld [vmem:[#allocation14 + $0x48] ss:$28 sps:$4 sm:$0xff]  }
 0x432   : > { %6381 = vmatprep.subr.bf16.mxu0 %v8670_v11  ;;  %6434 = vmatprep.subr.bf16.mxu1 %v8673_v62  ;;  %v8730_v11 = vld [vmem:[#allocation14 + $0xa8c] ss:$28 sps:$4 sm:$0xff]   ;;  %v8733_v62 = vld [vmem:[#allocation14 + $0x14] ss:$28 sps:$4 sm:$0xff]  }
 0x435   : > { %6382 = vmatpush2.bf16.msra.mxu0 %v8668_v33  ;;  %6435 = vmatpush2.bf16.msra.mxu1 %v8671_v37  ;;  %v8728_v33 = vld [vmem:[#allocation14 + $0xa88] ss:$28 sps:$4 sm:$0xff]   ;;  %v8731_v37 = vld [vmem:[#allocation14 + $0x10] ss:$28 sps:$4 sm:$0xff]  }
 0x436   : > { %6383 = vmatprep.subr.bf16.mxu0 %v8676_v36  ;;  %6436 = vmatprep.subr.bf16.mxu1 %v8679_v38  ;;  %v8736_v36 = vld [vmem:[#allocation14 + $0xdd4] ss:$28 sps:$4 sm:$0xff]   ;;  %v8739_v38 = vld [vmem:[#allocation14 + $0x35c] ss:$28 sps:$4 sm:$0xff]  }
 0x439   : > { %6384 = vmatpush2.bf16.msra.mxu0 %v8674_v39  ;;  %6437 = vmatpush2.bf16.msra.mxu1 %v8677_v42  ;;  %v8734_v39 = vld [vmem:[#allocation14 + $0xdd0] ss:$28 sps:$4 sm:$0xff]   ;;  %v8737_v42 = vld [vmem:[#allocation14 + $0x358] ss:$28 sps:$4 sm:$0xff]  }
 0x43a   : > { %6385 = vmatprep.subr.bf16.mxu0 %v8682_v53  ;;  %6438 = vmatprep.subr.bf16.mxu1 %v8685_v54  ;;  %v8742_v53 = vld [vmem:[#allocation14 + $0xd9c] ss:$28 sps:$4 sm:$0xff]   ;;  %v8745_v54 = vld [vmem:[#allocation14 + $0x324] ss:$28 sps:$4 sm:$0xff]  }
 0x43d   : > { %6386 = vmatpush2.bf16.msra.mxu0 %v8680_v43  ;;  %6439 = vmatpush2.bf16.msra.mxu1 %v8683_v44  ;;  %v8740_v43 = vld [vmem:[#allocation14 + $0xd98] ss:$28 sps:$4 sm:$0xff]   ;;  %v8743_v44 = vld [vmem:[#allocation14 + $0x320] ss:$28 sps:$4 sm:$0xff]  }
 0x43e   : > { %6461 = vmatprep.subr.bf16.mxu0 %v8688_v61  ;;  %6514 = vmatprep.subr.bf16.mxu1 %v8691_v1  ;;  %v8748_v61 = vld [vmem:[#allocation14 + $0xd64] ss:$28 sps:$4 sm:$0xff]   ;;  %v8751_v1 = vld [vmem:[#allocation14 + $0x2ec] ss:$28 sps:$4 sm:$0xff]  }
 0x440   : > { %6388 = vmatmul.mubr.bf16.vlgmr.msra.gmra.mxu0 %v9813_v60  ;;  %6441 = vmatmul.mubr.bf16.vlgmr.msra.gmra.mxu1 %v9834_v14 }
 0x441   : > { %6397 = vmatprep.mubr.bf16.mxu0 %v9818_v29  ;;  %6450 = vmatprep.mubr.bf16.mxu1 %v9838_v35 }
 0x442   : > { %6462 = vmatpush1.bf16.msra.mxu0 %v8686_v45  ;;  %6515 = vmatpush1.bf16.msra.mxu1 %v8689_v46  ;;  %v8746_v45 = vld [vmem:[#allocation14 + $0xd60] ss:$28 sps:$4 sm:$0xff]   ;;  %v8749_v46 = vld [vmem:[#allocation14 + $0x2e8] ss:$28 sps:$4 sm:$0xff]  }
 0x443   : > { %6463 = vmatprep.subr.bf16.mxu0 %v8694_v47  ;;  %6516 = vmatprep.subr.bf16.mxu1 %v8697_v50  ;;  %v8754_v47 = vld [vmem:[#allocation14 + $0xd2c] ss:$28 sps:$4 sm:$0xff]   ;;  %v8757_v50 = vld [vmem:[#allocation14 + $0x2b4] ss:$28 sps:$4 sm:$0xff]  }
 0x446   : > { %6464 = vmatpush1.bf16.msra.mxu0 %v8692_v51  ;;  %6517 = vmatpush1.bf16.msra.mxu1 %v8695_v52  ;;  %v8752_v51 = vld [vmem:[#allocation14 + $0xd28] ss:$28 sps:$4 sm:$0xff]   ;;  %v8755_v52 = vld [vmem:[#allocation14 + $0x2b0] ss:$28 sps:$4 sm:$0xff]  }
 0x447   : > { %6465 = vmatprep.subr.bf16.mxu0 %v8700_v55  ;;  %6518 = vmatprep.subr.bf16.mxu1 %v8703_v58  ;;  %v8760_v55 = vld [vmem:[#allocation14 + $0xcf4] ss:$28 sps:$4 sm:$0xff]   ;;  %v8763_v58 = vld [vmem:[#allocation14 + $0x27c] ss:$28 sps:$4 sm:$0xff]  }
 0x448   : > { %6398 = vmatmul.mubr.bf16.gmra.mxu0 %v9820_v34  ;;  %6451 = vmatmul.mubr.bf16.gmra.mxu1 %v9840_v23 }
 0x449   : > { %6493 = vmatprep.mubr.bf16.mxu0 %v9851_v48  ;;  %6546 = vmatprep.mubr.bf16.mxu1 %v9779_v56 }
 0x44a   : > { %6466 = vmatpush1.bf16.msra.mxu0 %v8698_v59  ;;  %6519 = vmatpush1.bf16.msra.mxu1 %v8701_v9  ;;  %v8758_v59 = vld [vmem:[#allocation14 + $0xcf0] ss:$28 sps:$4 sm:$0xff]   ;;  %v8761_v9 = vld [vmem:[#allocation14 + $0x278] ss:$28 sps:$4 sm:$0xff]  }
 0x44b   : > { %6467 = vmatprep.subr.bf16.mxu0 %v8706_v40  ;;  %6520 = vmatprep.subr.bf16.mxu1 %v8709_v7  ;;  %v8766_v40 = vld [vmem:[#allocation14 + $0xcbc] ss:$28 sps:$4 sm:$0xff]   ;;  %v8769_v7 = vld [vmem:[#allocation14 + $0x244] ss:$28 sps:$4 sm:$0xff]  }
 0x44e   : > { %6468 = vmatpush1.bf16.msra.mxu0 %v8704_v13  ;;  %6521 = vmatpush1.bf16.msra.mxu1 %v8707_v0  ;;  %v8764_v13 = vld [vmem:[#allocation14 + $0xcb8] ss:$28 sps:$4 sm:$0xff]   ;;  %v8767_v0 = vld [vmem:[#allocation14 + $0x240] ss:$28 sps:$4 sm:$0xff]  }
 0x44f   : > { %6469 = vmatprep.subr.bf16.mxu0 %v8712_v15  ;;  %6522 = vmatprep.subr.bf16.mxu1 %v8715_v3  ;;  %v8772_v15 = vld [vmem:[#allocation14 + $0xc84] ss:$28 sps:$4 sm:$0xff]   ;;  %v8775_v3 = vld [vmem:[#allocation14 + $0x20c] ss:$28 sps:$4 sm:$0xff]  }
 0x452   : > { %6470 = vmatpush1.bf16.msra.mxu0 %v8710_v16  ;;  %6523 = vmatpush1.bf16.msra.mxu1 %v8713_v17  ;;  %v8770_v16 = vld [vmem:[#allocation14 + $0xc80] ss:$28 sps:$4 sm:$0xff]   ;;  %v8773_v17 = vld [vmem:[#allocation14 + $0x208] ss:$28 sps:$4 sm:$0xff]  }
 0x453   : > { %6471 = vmatprep.subr.bf16.mxu0 %v8718_v41  ;;  %6524 = vmatprep.subr.bf16.mxu1 %v8721_v19  ;;  %v8778_v41 = vld [vmem:[#allocation14 + $0xc4c] ss:$28 sps:$4 sm:$0xff]   ;;  %v8781_v19 = vld [vmem:[#allocation14 + $0x1d4] ss:$28 sps:$4 sm:$0xff]  }
 0x456   : > { %6472 = vmatpush1.bf16.msra.mxu0 %v8716_v63  ;;  %6525 = vmatpush1.bf16.msra.mxu1 %v8719_v12  ;;  %v8776_v63 = vld [vmem:[#allocation14 + $0xc48] ss:$28 sps:$4 sm:$0xff]   ;;  %v8779_v12 = vld [vmem:[#allocation14 + $0x1d0] ss:$28 sps:$4 sm:$0xff]  }
 0x457   : > { %6473 = vmatprep.subr.bf16.mxu0 %v8724_v20  ;;  %6526 = vmatprep.subr.bf16.mxu1 %v8727_v21  ;;  %v8784_v20 = vld [vmem:[#allocation14 + $0x51c] ss:$28 sps:$4 sm:$0xff]  }
 0x458   : > { %v8787_v21 = vld [vmem:[#allocation14 + $0x89c] ss:$28 sps:$4 sm:$0xff]  }
 0x45a   : > { %6474 = vmatpush1.bf16.msra.mxu0 %v8722_v10  ;;  %6527 = vmatpush1.bf16.msra.mxu1 %v8725_v24  ;;  %v8782_v10 = vld [vmem:[#allocation14 + $0x518] ss:$28 sps:$4 sm:$0xff]  }
 0x45b   : > { %6475 = vmatprep.subr.bf16.mxu0 %v8730_v11  ;;  %6528 = vmatprep.subr.bf16.mxu1 %v8733_v62  ;;  %v8785_v24 = vld [vmem:[#allocation14 + $0x898] ss:$28 sps:$4 sm:$0xff]   ;;  %v8790_v11 = vld [vmem:[#allocation14 + $0x4e4] ss:$28 sps:$4 sm:$0xff]  }
 0x45c   : > { %v8793_v62 = vld [vmem:[#allocation14 + $0x864] ss:$28 sps:$4 sm:$0xff]  }
 0x45e   : > { %6476 = vmatpush1.bf16.msra.mxu0 %v8728_v33  ;;  %6529 = vmatpush1.bf16.msra.mxu1 %v8731_v37  ;;  %v8788_v33 = vld [vmem:[#allocation14 + $0x4e0] ss:$28 sps:$4 sm:$0xff]  }
 0x45f   : > { %6477 = vmatprep.subr.bf16.mxu0 %v8736_v36  ;;  %6530 = vmatprep.subr.bf16.mxu1 %v8739_v38  ;;  %v8791_v37 = vld [vmem:[#allocation14 + $0x860] ss:$28 sps:$4 sm:$0xff]   ;;  %v8796_v36 = vld [vmem:[#allocation14 + $0x4ac] ss:$28 sps:$4 sm:$0xff]  }
 0x460   : > { %v8799_v38 = vld [vmem:[#allocation14 + $0x82c] ss:$28 sps:$4 sm:$0xff]  }
 0x462   : > { %6478 = vmatpush2.bf16.msra.mxu0 %v8734_v39  ;;  %6531 = vmatpush2.bf16.msra.mxu1 %v8737_v42  ;;  %v8794_v39 = vld [vmem:[#allocation14 + $0x4a8] ss:$28 sps:$4 sm:$0xff]  }
 0x463   : > { %6479 = vmatprep.subr.bf16.mxu0 %v8742_v53  ;;  %6532 = vmatprep.subr.bf16.mxu1 %v8745_v54  ;;  %v8797_v42 = vld [vmem:[#allocation14 + $0x828] ss:$28 sps:$4 sm:$0xff]   ;;  %v8802_v53 = vld [vmem:[#allocation14 + $0x474] ss:$28 sps:$4 sm:$0xff]  }
 0x464   : > { %v8805_v54 = vld [vmem:[#allocation14 + $0x7f4] ss:$28 sps:$4 sm:$0xff]  }
 0x466   : > { %6480 = vmatpush2.bf16.msra.mxu0 %v8740_v43  ;;  %6533 = vmatpush2.bf16.msra.mxu1 %v8743_v44  ;;  %v8800_v43 = vld [vmem:[#allocation14 + $0x470] ss:$28 sps:$4 sm:$0xff]  }
 0x467   : > { %6481 = vmatprep.subr.bf16.mxu0 %v8748_v61  ;;  %6534 = vmatprep.subr.bf16.mxu1 %v8751_v1  ;;  %v8803_v44 = vld [vmem:[#allocation14 + $0x7f0] ss:$28 sps:$4 sm:$0xff]   ;;  %v8808_v61 = vld [vmem:[#allocation14 + $0x43c] ss:$28 sps:$4 sm:$0xff]  }
 0x468   : > { %v8811_v1 = vld [vmem:[#allocation14 + $0x7bc] ss:$28 sps:$4 sm:$0xff]  }
 0x46a   : > { %6482 = vmatpush2.bf16.msra.mxu0 %v8746_v45  ;;  %6535 = vmatpush2.bf16.msra.mxu1 %v8749_v46  ;;  %v8806_v45 = vld [vmem:[#allocation14 + $0x438] ss:$28 sps:$4 sm:$0xff]  }
 0x46b   : > { %6483 = vmatprep.subr.bf16.mxu0 %v8754_v47  ;;  %6536 = vmatprep.subr.bf16.mxu1 %v8757_v50  ;;  %v8809_v46 = vld [vmem:[#allocation14 + $0x7b8] ss:$28 sps:$4 sm:$0xff]   ;;  %v9884_v47 = vpop.f32.mrf.mxu1  ;;  %v8814_v50 = vld [vmem:[#allocation14 + $0x404] ss:$28 sps:$4 sm:$0xff]  }
 0x46e   : > { %6484 = vmatpush2.bf16.msra.mxu0 %v8752_v51  ;;  %6537 = vmatpush2.bf16.msra.mxu1 %v8755_v52  ;;  %v8817_v51 = vld [vmem:[#allocation14 + $0x784] ss:$28 sps:$4 sm:$0xff]  }
 0x46f   : > { %6485 = vmatprep.subr.bf16.mxu0 %v8760_v55  ;;  %6538 = vmatprep.subr.bf16.mxu1 %v8763_v58  ;;  %v8812_v52 = vld [vmem:[#allocation14 + $0x400] ss:$28 sps:$4 sm:$0xff]   ;;  %v9886_v58 = vpop.f32.mrf.mxu1 }
 0x470   : > { %v8815_v55 = vld [vmem:[#allocation14 + $0x780] ss:$28 sps:$4 sm:$0xff]  }
 0x472   : > { %6486 = vmatpush2.bf16.msra.mxu0 %v8758_v59  ;;  %6539 = vmatpush2.bf16.msra.mxu1 %v8761_v9  ;;  %v8820_v59 = vld [vmem:[#allocation14 + $0x3cc] ss:$28 sps:$4 sm:$0xff]  }
 0x473   : > { %6487 = vmatprep.subr.bf16.mxu0 %v8766_v40  ;;  %6540 = vmatprep.subr.bf16.mxu1 %v8769_v7  ;;  %v8823_v9 = vld [vmem:[#allocation14 + $0x74c] ss:$28 sps:$4 sm:$0xff]  }
 0x474   : > { %v8818_v40 = vld [vmem:[#allocation14 + $0x3c8] ss:$28 sps:$4 sm:$0xff]  }
 0x475   : > { %v8821_v7 = vld [vmem:[#allocation14 + $0x748] ss:$28 sps:$4 sm:$0xff]  }
 0x476   : > { %6488 = vmatpush2.bf16.msra.mxu0 %v8764_v13  ;;  %6541 = vmatpush2.bf16.msra.mxu1 %v8767_v0  ;;  %v9888_v13 = vpop.f32.mrf.mxu1  ;;  %v8826_v0 = vld [vmem:[#allocation14 + $0x394] ss:$28 sps:$4 sm:$0xff]  }
 0x477   : > { %6489 = vmatprep.subr.bf16.mxu0 %v8772_v15  ;;  %6542 = vmatprep.subr.bf16.mxu1 %v8775_v3  ;;  %v8829_v15 = vld [vmem:[#allocation14 + $0x714] ss:$28 sps:$4 sm:$0xff]  }
 0x478   : > { %v8824_v3 = vld [vmem:[#allocation14 + $0x390] ss:$28 sps:$4 sm:$0xff]  }
 0x47a   : > { %6490 = vmatpush2.bf16.msra.mxu0 %v8770_v16  ;;  %6543 = vmatpush2.bf16.msra.mxu1 %v8773_v17  ;;  %v8827_v16 = vld [vmem:[#allocation14 + $0x710] ss:$28 sps:$4 sm:$0xff]   ;;  %v9890_v17 = vpop.f32.mrf.mxu1 }
 0x47b   : > { %6491 = vmatprep.subr.bf16.mxu0 %v8778_v41  ;;  %6544 = vmatprep.subr.bf16.mxu1 %v8781_v19  ;;  %v8832_v41 = vld [vmem:[#allocation14 + $0x6dc] ss:$28 sps:$4 sm:$0xff]  }
 0x47c   : > { %v8835_v19 = vld [vmem:[#allocation14 + $0xa5c] ss:$28 sps:$4 sm:$0xff]  }
 0x47e   : > { %6492 = vmatpush2.bf16.msra.mxu0 %v8776_v63  ;;  %6545 = vmatpush2.bf16.msra.mxu1 %v8779_v12  ;;  %v8830_v63 = vld [vmem:[#allocation14 + $0x6d8] ss:$28 sps:$4 sm:$0xff]  }
 0x47f   : > { %6567 = vmatprep.subr.bf16.mxu0 %v8784_v20  ;;  %6620 = vmatprep.subr.bf16.mxu1 %v8787_v21  ;;  %v8833_v12 = vld [vmem:[#allocation14 + $0xa58] ss:$28 sps:$4 sm:$0xff]   ;;  %v9892_v20 = vpop.f32.mrf.mxu1  ;;  %v8838_v21 = vld [vmem:[#allocation14 + $0x6a4] ss:$28 sps:$4 sm:$0xff]  }
 0x481   : > { %6494 = vmatmul.mubr.bf16.vlgmr.msra.gmra.mxu0 %v9853_v57  ;;  %6547 = vmatmul.mubr.bf16.vlgmr.msra.gmra.mxu1 %v9798_v22 }
 0x482   : > { %6503 = vmatprep.mubr.bf16.mxu0 %v9859_v25  ;;  %6556 = vmatprep.mubr.bf16.mxu1 %v9801_v26 }
 0x483   : > { %6568 = vmatpush1.bf16.msra.mxu0 %v8782_v10  ;;  %6621 = vmatpush1.bf16.msra.mxu1 %v8785_v24  ;;  %v8841_v10 = vld [vmem:[#allocation14 + $0xa24] ss:$28 sps:$4 sm:$0xff]   ;;  %v9894_v24 = vpop.f32.mrf.mxu0 }
 0x484   : > { %6569 = vmatprep.subr.bf16.mxu0 %v8790_v11  ;;  %6622 = vmatprep.subr.bf16.mxu1 %v8793_v62  ;;  %v8836_v11 = vld [vmem:[#allocation14 + $0x6a0] ss:$28 sps:$4 sm:$0xff]  }
 0x485   : > { %v8839_v62 = vld [vmem:[#allocation14 + $0xa20] ss:$28 sps:$4 sm:$0xff]  }
 0x487   : > { %6570 = vmatpush1.bf16.msra.mxu0 %v8788_v33  ;;  %6623 = vmatpush1.bf16.msra.mxu1 %v8791_v37  ;;  %v9896_v33 = vpop.f32.mrf.mxu1  ;;  %v8844_v37 = vld [vmem:[#allocation14 + $0x66c] ss:$28 sps:$4 sm:$0xff]  }
 0x488   : > { %6571 = vmatprep.subr.bf16.mxu0 %v8796_v36  ;;  %6624 = vmatprep.subr.bf16.mxu1 %v8799_v38  ;;  %v8847_v36 = vld [vmem:[#allocation14 + $0x9ec] ss:$28 sps:$4 sm:$0xff]   ;;  %v9898_v38 = vpop.f32.mrf.mxu0 }
 0x489   : > { %6504 = vmatmul.mubr.bf16.gmra.mxu0 %v9861_v32  ;;  %6557 = vmatmul.mubr.bf16.gmra.mxu1 %v9807_v49 }
 0x48a   : > { %6599 = vmatprep.mubr.bf16.mxu0 %v9811_v6  ;;  %6652 = vmatprep.mubr.bf16.mxu1 %v9832_v8 }
 0x48b   : > { %6572 = vmatpush1.bf16.msra.mxu0 %v8794_v39  ;;  %6625 = vmatpush1.bf16.msra.mxu1 %v8797_v42  ;;  %v8842_v39 = vld [vmem:[#allocation14 + $0x668] ss:$28 sps:$4 sm:$0xff]  }
 0x48c   : > { %6573 = vmatprep.subr.bf16.mxu0 %v8802_v53  ;;  %6626 = vmatprep.subr.bf16.mxu1 %v8805_v54  ;;  %v8845_v42 = vld [vmem:[#allocation14 + $0x9e8] ss:$28 sps:$4 sm:$0xff]   ;;  %v9900_v53 = vpop.f32.mrf.mxu1  ;;  %v8850_v54 = vld [vmem:[#allocation14 + $0x634] ss:$28 sps:$4 sm:$0xff]  }
 0x48f   : > { %6574 = vmatpush1.bf16.msra.mxu0 %v8800_v43  ;;  %6627 = vmatpush1.bf16.msra.mxu1 %v8803_v44  ;;  %v8853_v43 = vld [vmem:[#allocation14 + $0x9b4] ss:$28 sps:$4 sm:$0xff]   ;;  %v9902_v44 = vpop.f32.mrf.mxu0 }
 0x490   : > { %6575 = vmatprep.subr.bf16.mxu0 %v8808_v61  ;;  %6628 = vmatprep.subr.bf16.mxu1 %v8811_v1  ;;  %v8848_v61 = vld [vmem:[#allocation14 + $0x630] ss:$28 sps:$4 sm:$0xff]  }
 0x491   : > { %v8851_v1 = vld [vmem:[#allocation14 + $0x9b0] ss:$28 sps:$4 sm:$0xff]  }
 0x493   : > { %6576 = vmatpush1.bf16.msra.mxu0 %v8806_v45  ;;  %6629 = vmatpush1.bf16.msra.mxu1 %v8809_v46  ;;  %v9904_v45 = vpop.f32.mrf.mxu1  ;;  %v8856_v46 = vld [vmem:[#allocation14 + $0x5fc] ss:$28 sps:$4 sm:$0xff]  }
 0x494   : > { %6577 = vmatprep.subr.bf16.mxu0 %v8814_v50  ;;  %6630 = vmatprep.subr.bf16.mxu1 %v8817_v51  ;;  %v8859_v50 = vld [vmem:[#allocation14 + $0x97c] ss:$28 sps:$4 sm:$0xff]   ;;  %v9906_v51 = vpop.f32.mrf.mxu0 }
 0x497   : > { %6578 = vmatpush1.bf16.msra.mxu0 %v8812_v52  ;;  %6631 = vmatpush1.bf16.msra.mxu1 %v8815_v55  ;;  %v6230_v52 = vpop.f32.mrf.mxu1  ;;  %v8854_v55 = vld [vmem:[#allocation14 + $0x5f8] ss:$28 sps:$4 sm:$0xff]  }
 0x498   : > { %6579 = vmatprep.subr.bf16.mxu0 %v8820_v59  ;;  %6632 = vmatprep.subr.bf16.mxu1 %v8823_v9  ;;  %v8857_v59 = vld [vmem:[#allocation14 + $0x978] ss:$28 sps:$4 sm:$0xff]   ;;  %v8862_v9 = vld [vmem:[#allocation14 + $0x5c4] ss:$28 sps:$4 sm:$0xff]  }
 0x49b   : > { %6580 = vmatpush1.bf16.msra.mxu0 %v8818_v40  ;;  %6633 = vmatpush1.bf16.msra.mxu1 %v8821_v7  ;;  %v8865_v40 = vld [vmem:[#allocation14 + $0x944] ss:$28 sps:$4 sm:$0xff]   ;;  %v9908_v7 = vpop.f32.mrf.mxu0 }
 0x49c   : > { %6581 = vmatprep.subr.bf16.mxu0 %v8826_v0  ;;  %6634 = vmatprep.subr.bf16.mxu1 %v8829_v15  ;;  %v6232_v0 = vpop.f32.mrf.mxu1  ;;  %v8860_v15 = vld [vmem:[#allocation14 + $0x5c0] ss:$28 sps:$4 sm:$0xff]  }
 0x49f   : > { %6582 = vmatpush1.bf16.msra.mxu0 %v8824_v3  ;;  %6635 = vmatpush1.bf16.msra.mxu1 %v8827_v16  ;;  %v8863_v3 = vld [vmem:[#allocation14 + $0x940] ss:$28 sps:$4 sm:$0xff]  }
 0x4a0   : > { %6583 = vmatprep.subr.bf16.mxu0 %v8832_v41  ;;  %6636 = vmatprep.subr.bf16.mxu1 %v8835_v19  ;;  %v9910_v16 = vld [vmem:[#allocation16] sm:$0xff]  ;;  %v8868_v41 = vld [vmem:[#allocation14 + $0x58c] ss:$28 sps:$4 sm:$0xff]  }
 0x4a1   : > { %v8871_v19 = vld [vmem:[#allocation14 + $0x90c] ss:$28 sps:$4 sm:$0xff]  }
 0x4a3   : > { %6584 = vmatpush2.bf16.msra.mxu0 %v8830_v63  ;;  %6637 = vmatpush2.bf16.msra.mxu1 %v8833_v12  ;;  %v9912_v63 = vpop.f32.mrf.mxu0  ;;  %v6234_v12 = vpop.f32.mrf.mxu1 }
 0x4a4   : > { %6585 = vmatprep.subr.bf16.mxu0 %v8838_v21  ;;  %6638 = vmatprep.subr.bf16.mxu1 %v8841_v10  ;;  %v9916_v21 = vrot.slane %v9910_v16, %v9656_v30  ;;  %v8866_v10 = vld [vmem:[#allocation14 + $0x588] ss:$28 sps:$4 sm:$0xff]   ;;  %v8872_v30 = vld [vmem:[#allocation14 + $0x550] ss:$28 sps:$4 sm:$0xff]  }
 0x4a7   : > { %6586 = vmatpush2.bf16.msra.mxu0 %v8836_v11  ;;  %6639 = vmatpush2.bf16.msra.mxu1 %v8839_v62  ;;  %v8869_v11 = vld [vmem:[#allocation14 + $0x908] ss:$28 sps:$4 sm:$0xff]   ;;  %v8874_v62 = vld [vmem:[#allocation14 + $0x554] ss:$28 sps:$4 sm:$0xff]  }
 0x4a8   : > { %6587 = vmatprep.subr.bf16.mxu0 %v8844_v37  ;;  %6640 = vmatprep.subr.bf16.mxu1 %v8847_v36  ;;  %v8877_v37 = vld [vmem:[#allocation14 + $0x8d4] ss:$28 sps:$4 sm:$0xff]   ;;  %v9920_v36 = vrot.slane %v9910_v16, %v9659_v31 }
 0x4ab   : > { %6588 = vmatpush2.bf16.msra.mxu0 %v8842_v39  ;;  %6641 = vmatpush2.bf16.msra.mxu1 %v8845_v42  ;;  %v9922_v39 = vpop.f32.mrf.mxu0  ;;  %v6236_v42 = vpop.f32.mrf.mxu1 }
 0x4ac   : > { %6589 = vmatprep.subr.bf16.mxu0 %v8850_v54  ;;  %6642 = vmatprep.subr.bf16.mxu1 %v8853_v43  ;;  %v6125_v54 = vadd.f32 %v9884_v47, %v9916_v21  ;;  %v8875_v43 = vld [vmem:[#allocation14 + $0x8d0] ss:$28 sps:$4 sm:$0xff]  }
 0x4ae   : > { %v6178_v31 = vadd.f32 %v9894_v24, %v6125_v54  ;;  %v8887_v54 = vld [vmem:[#allocation14 + $0x168] ss:$28 sps:$4 sm:$0xff]  }
 0x4af   : > { %6590 = vmatpush2.bf16.msra.mxu0 %v8848_v61  ;;  %6643 = vmatpush2.bf16.msra.mxu1 %v8851_v1  ;;  %v8880_v61 = vld [vmem:[#allocation14 + $0xc1c] ss:$28 sps:$4 sm:$0xff]  }
 0x4b0   : > { %6591 = vmatprep.subr.bf16.mxu0 %v8856_v46  ;;  %6644 = vmatprep.subr.bf16.mxu1 %v8859_v50  ;;  %v8881_v1 = vld [vmem:[#allocation14 + $0x360] ss:$28 sps:$4 sm:$0xff]   ;;  %v6127_v46 = vadd.f32 %v9886_v58, %v9920_v36  ;;  %v9929_v50 = vpop.f32.mrf.mxu0  ;;  %v6131_v58 = vadd.f32 %v9890_v17, %v9920_v36 }
 0x4b2   : > { %v6180_v47 = vadd.f32 %v9898_v38, %v6127_v46 }
 0x4b3   : > { %6592 = vmatpush2.bf16.msra.mxu0 %v8854_v55  ;;  %6645 = vmatpush2.bf16.msra.mxu1 %v8857_v59  ;;  %v6240_v55 = vpop.f32.mrf.mxu1  ;;  %v6129_v59 = vadd.f32 %v9888_v13, %v9916_v21  ;;  %v6135_v13 = vadd.f32 %v9892_v20, %v9916_v21  ;;  %v8883_v20 = vld [vmem:[#allocation14 + $0xbe0] ss:$28 sps:$4 sm:$0xff]  }
 0x4b4   : > { %6593 = vmatprep.subr.bf16.mxu0 %v8862_v9  ;;  %6646 = vmatprep.subr.bf16.mxu1 %v8865_v40  ;;  %v6231_v9 = vadd.f32 %v6230_v52, %v6178_v31  ;;  %v8878_v40 = vld [vmem:[#allocation14 + $0xc18] ss:$28 sps:$4 sm:$0xff]  }
 0x4b5   : > { %v6182_v24 = vadd.f32 %v9902_v44, %v6129_v59  ;;  %v6242_v38 = vpop.f32.mrf.mxu1  ;;  %v6137_v44 = vadd.f32 %v9896_v33, %v9920_v36 }
 0x4b7   : > { %6594 = vmatpush2.bf16.msra.mxu0 %v8860_v15  ;;  %6647 = vmatpush2.bf16.msra.mxu1 %v8863_v3  ;;  %v8882_v3 = vld [vmem:[#allocation14 + $0x1a0] ss:$28 sps:$4 sm:$0xff]   ;;  %v6244_v46 = vpop.f32.mrf.mxu1  ;;  %v6190_v33 = vadd.f32 %v9912_v63, %v6137_v44  ;;  %v8895_v63 = vld [vmem:[#allocation14 + $0xb74] ss:$28 sps:$4 sm:$0xff]   ;;  %v8906_v44 = vld [vmem:[#allocation14 + $0x248] ss:$28 sps:$4 sm:$0xff]  }
 0x4b8   : > { %6595 = vmatprep.subr.bf16.mxu0 %v8868_v41  ;;  %6648 = vmatprep.subr.bf16.mxu1 %v8871_v19  ;;  %v6233_v41 = vadd.f32 %v6232_v0, %v6180_v47 }
 0x4bb   : > { %6596 = vmatpush2.bf16.msra.mxu0 %v8866_v10  ;;  %6649 = vmatpush2.bf16.msra.mxu1 %v8869_v11  ;;  %v8885_v10 = vld [vmem:[#allocation14 + $0xbe4] ss:$28 sps:$4 sm:$0xff]  }
 0x4bc   : > { %6597 = vmatprep.subr.bf16.mxu0 %v8874_v62  ;;  %6650 = vmatprep.subr.bf16.mxu1 %v8877_v37  ;;  %v8886_v11 = vld [vmem:[#allocation14 + $0x328] ss:$28 sps:$4 sm:$0xff]   ;;  %v6184_v62 = vadd.f32 %v9906_v51, %v6131_v58  ;;  %v6235_v37 = vadd.f32 %v6234_v12, %v6182_v24  ;;  %v8893_v24 = vld [vmem:[#allocation14 + $0xb70] ss:$28 sps:$4 sm:$0xff]  }
 0x4bd   : > { %v8890_v12 = vld [vmem:[#allocation14 + $0xbac] ss:$28 sps:$4 sm:$0xff]  }
 0x4bf   : > { %6598 = vmatpush2.bf16.msra.mxu0 %v8872_v30  ;;  %6651 = vmatpush2.bf16.msra.mxu1 %v8875_v43  ;;  %v6188_v30 = vadd.f32 %v9908_v7, %v6135_v13  ;;  %v6237_v43 = vadd.f32 %v6236_v42, %v6184_v62  ;;  %v6141_v7 = vadd.f32 %v9904_v45, %v9920_v36  ;;  %v8888_v42 = vld [vmem:[#allocation14 + $0xba8] ss:$28 sps:$4 sm:$0xff]   ;;  %v8900_v13 = vld [vmem:[#allocation14 + $0xb3c] ss:$28 sps:$4 sm:$0xff]  }
 0x4c0   : > { %6673 = vmatprep.subr.bf16.mxu0 %v8880_v61  ;;  %7958 = vmatprep.subr.bf16.mxu1 %v8881_v1  ;;  %v6283_v15 = vpop.f32.mrf.mxu0  ;;  %v8891_v61 = vld [vmem:[#allocation14 + $0x2f0] ss:$28 sps:$4 sm:$0xff]   ;;  %v6139_v1 = vadd.f32 %v9900_v53, %v9916_v21  ;;  %v8896_v21 = vld [vmem:[#allocation14 + $0x2b8] ss:$28 sps:$4 sm:$0xff]  }
 0x4c1   : > { %v6284_v19 = vadd.f32 %v6283_v15, %v6231_v9  ;;  %v6241_v59 = vadd.f32 %v6240_v55, %v6188_v30  ;;  %v6246_v55 = vpop.f32.mrf.mxu1  ;;  %v6194_v36 = vadd.f32 %v9929_v50, %v6141_v7  ;;  %v8907_v30 = vld [vmem:[#allocation14 + $0x88] ss:$28 sps:$4 sm:$0xff]   ;;  %v8913_v7 = vld [vmem:[#allocation14 + $0xa90] ss:$28 sps:$4 sm:$0xff]  }
 0x4c2   : > { %6600 = vmatmul.mubr.bf16.vlgmr.msra.gmra.mxu0 %v9813_v60  ;;  %6653 = vmatmul.mubr.bf16.vlgmr.msra.gmra.mxu1 %v9834_v14  ;;  %v6285_v52 = vpop.f32.mrf.mxu0  ;;  %v6192_v15 = vadd.f32 %v9922_v39, %v6139_v1  ;;  %v8908_v1 = vld [vmem:[#allocation14 + $0xac8] ss:$28 sps:$4 sm:$0xff]  }
 0x4c3   : > { %8990 = vtanh.f32 %v6284_v19  ;;  %6609 = vmatprep.mubr.bf16.mxu0 %v9818_v29  ;;  %6662 = vmatprep.mubr.bf16.mxu1 %v9838_v35  ;;  %v6286_v17 = vadd.f32 %v6285_v52, %v6233_v41  ;;  %v8897_v19 = vld [vmem:[#allocation14 + $0xf8] ss:$28 sps:$4 sm:$0xff]  }
 0x4c4   : > { %6674 = vmatpush1.bf16.msra.mxu0 %v8878_v40  ;;  %7959 = vmatpush3.bf16.msra.mxu1 %v8882_v3  ;;  %v6287_v0 = vpop.f32.mrf.mxu0  ;;  %v8892_v40 = vld [vmem:[#allocation14 + $0x130] ss:$28 sps:$4 sm:$0xff]   ;;  %v6243_v3 = vadd.f32 %v6242_v38, %v6190_v33  ;;  %v6245_v58 = vadd.f32 %v6244_v46, %v6192_v15  ;;  %v8901_v38 = vld [vmem:[#allocation14 + $0x280] ss:$28 sps:$4 sm:$0xff]   ;;  %v8916_v33 = vld [vmem:[#allocation14 + $0x1d8] ss:$28 sps:$4 sm:$0xff]  }
 0x4c5   : > { %8992 = vtanh.f32 %v6286_v17  ;;  %6675 = vmatprep.subr.bf16.mxu0 %v8885_v10  ;;  %7960 = vmatprep.subr.bf16.mxu1 %v8886_v11  ;;  %v6288_v51 = vadd.f32 %v6287_v0, %v6235_v37  ;;  %v6247_v10 = vadd.f32 %v6246_v55, %v6194_v36  ;;  %v8902_v37 = vld [vmem:[#allocation14 + $0xc0] ss:$28 sps:$4 sm:$0xff]   ;;  %v8912_v46 = vld [vmem:[#allocation14 + $0x50] ss:$28 sps:$4 sm:$0xff]  }
 0x4c6   : > { %v6289_v31 = vpop.f32.mrf.mxu0  ;;  %v8905_v17 = vld [vmem:[#allocation14 + $0xb04] ss:$28 sps:$4 sm:$0xff]   ;;  %v8930_v36 = vld [vmem:[#allocation14 + $0xd6c] ss:$28 sps:$4 sm:$0xff]  }
 0x4c7   : > { %8994 = vtanh.f32 %v6288_v51  ;;  %v6290_v47 = vadd.f32 %v6289_v31, %v6237_v43  ;;  %v8910_v43 = vld [vmem:[#allocation14 + $0xacc] ss:$28 sps:$4 sm:$0xff]   ;;  %v8915_v31 = vld [vmem:[#allocation14 + $0xa94] ss:$28 sps:$4 sm:$0xff]   ;;  %v8923_v55 = vld [vmem:[#allocation14 + $0xda0] ss:$28 sps:$4 sm:$0xff]  }
 0x4c8   : > { %6676 = vmatpush1.bf16.msra.mxu0 %v8883_v20  ;;  %7961 = vmatpush3.bf16.msra.mxu1 %v8887_v54  ;;  %v6293_v9 = vpop.f32.mrf.mxu0  ;;  %v8903_v54 = vld [vmem:[#allocation14 + $0xb00] ss:$28 sps:$4 sm:$0xff]   ;;  %v8911_v51 = vld [vmem:[#allocation14 + $0x210] ss:$28 sps:$4 sm:$0xff]  }
 0x4c9   : > { %8996 = vtanh.f32 %v6290_v47  ;;  %6677 = vmatprep.subr.bf16.mxu0 %v8890_v12  ;;  %7962 = vmatprep.subr.bf16.mxu1 %v8891_v61  ;;  %v6294_v53 = vadd.f32 %v6293_v9, %v6241_v59  ;;  %v8920_v9 = vld [vmem:[#allocation14 + $0xddc] ss:$28 sps:$4 sm:$0xff]  }
 0x4ca   : > { %6610 = vmatmul.mubr.bf16.gmra.mxu0 %v9820_v34  ;;  %6663 = vmatmul.mubr.bf16.gmra.mxu1 %v9840_v23  ;;  %v6295_v45 = vpop.f32.mrf.mxu0 }
 0x4cb   : > { %8998 = vtanh.f32 %v6294_v53  ;;  %6705 = vmatprep.mubr.bf16.mxu0 %v9851_v48  ;;  %6758 = vmatprep.mubr.bf16.mxu1 %v9779_v56  ;;  %v6296_v39 = vadd.f32 %v6295_v45, %v6243_v3  ;;  %v8898_v56 = vld [vmem:[#allocation14 + $0xb38] ss:$28 sps:$4 sm:$0xff]   ;;  %v8922_v53 = vld [vmem:[#allocation14 + $0x8a0] ss:$28 sps:$4 sm:$0xff]   ;;  %v8927_v45 = vld [vmem:[#allocation14 + $0x868] ss:$28 sps:$4 sm:$0xff]  }
 0x4cc   : > { %6678 = vmatpush1.bf16.msra.mxu0 %v8888_v42  ;;  %7963 = vmatpush3.bf16.msra.mxu1 %v8892_v40  ;;  %v6297_v41 = vpop.f32.mrf.mxu0  ;;  %v8917_v42 = vld [vmem:[#allocation14 + $0x18] ss:$28 sps:$4 sm:$0xff]   ;;  %v8921_v40 = vld [vmem:[#allocation14 + $0xa60] ss:$28 sps:$4 sm:$0xff]  }
 0x4cd   : > { %9000 = vtanh.f32 %v6296_v39  ;;  %6679 = vmatprep.subr.bf16.mxu0 %v8895_v63  ;;  %7964 = vmatprep.subr.bf16.mxu1 %v8896_v21  ;;  %v6298_v11 = vadd.f32 %v6297_v41, %v6245_v58  ;;  %v8918_v3 = vld [vmem:[#allocation14 + $0xdd8] ss:$28 sps:$4 sm:$0xff]   ;;  %v8925_v63 = vld [vmem:[#allocation14 + $0xda4] ss:$28 sps:$4 sm:$0xff]   ;;  %v8931_v58 = vld [vmem:[#allocation14 + $0x9f0] ss:$28 sps:$4 sm:$0xff]  }
 0x4ce   : > { %v6299_v50 = vpop.f32.mrf.mxu0  ;;  %v8926_v21 = vld [vmem:[#allocation14 + $0xa28] ss:$28 sps:$4 sm:$0xff]   ;;  %v8935_v41 = vld [vmem:[#allocation14 + $0xd34] ss:$28 sps:$4 sm:$0xff]  }
 0x4cf   : > { %9002 = vtanh.f32 %v6298_v11  ;;  %v6300_v52 = vadd.f32 %v6299_v50, %v6247_v10  ;;  %v8928_v39 = vld [vmem:[#allocation14 + $0xd68] ss:$28 sps:$4 sm:$0xff]   ;;  %v8940_v10 = vld [vmem:[#allocation14 + $0xcfc] ss:$28 sps:$4 sm:$0xff]  }
 0x4d0   : > { %v8991_v62 = vpop.eup %8990  ;;  %6680 = vmatpush1.bf16.msra.mxu0 %v8893_v24  ;;  %7965 = vmatpush3.bf16.msra.mxu1 %v8897_v19  ;;  %v8932_v24 = vld [vmem:[#allocation14 + $0x830] ss:$28 sps:$4 sm:$0xff]   ;;  %v8936_v19 = vld [vmem:[#allocation14 + $0x9b8] ss:$28 sps:$4 sm:$0xff]   ;;  %v8941_v11 = vld [vmem:[#allocation14 + $0x980] ss:$28 sps:$4 sm:$0xff]  }
 0x4d1   : > { %6950 = vst [vmem:[%s9959_s16] sm:$0xff] %v8991_v62  ;;  %9004 = vtanh.f32 %v6300_v52  ;;  %6681 = vmatprep.subr.bf16.mxu0 %v8900_v13  ;;  %7966 = vmatprep.subr.bf16.mxu1 %v8901_v38  ;;  %v8938_v13 = vld [vmem:[#allocation14 + $0xcf8] ss:$28 sps:$4 sm:$0xff]   ;;  %v8942_v38 = vld [vmem:[#allocation14 + $0x7c0] ss:$28 sps:$4 sm:$0xff]   ;;  %v8946_v52 = vld [vmem:[#allocation14 + $0x948] ss:$28 sps:$4 sm:$0xff]  }
 0x4d2   : > { %v8993_v20 = vpop.eup %8992  ;;  %v8945_v50 = vld [vmem:[#allocation14 + $0xcc4] ss:$28 sps:$4 sm:$0xff]   ;;  %v8950_v62 = vld [vmem:[#allocation14 + $0xc8c] ss:$28 sps:$4 sm:$0xff]  }
 0x4d3   : > { %6951 = vst [vmem:[%s9959_s16 + $0x8] sm:$0xff] %v8993_v20  ;;  %v8956_v20 = vld [vmem:[#allocation14 + $0x8d8] ss:$28 sps:$4 sm:$0xff]  }
 0x4d4   : > { %v8995_v0 = vpop.eup %8994  ;;  %6682 = vmatpush1.bf16.msra.mxu0 %v8898_v56  ;;  %7967 = vmatpush3.bf16.msra.mxu1 %v8902_v37  ;;  %v8951_v56 = vld [vmem:[#allocation14 + $0x910] ss:$28 sps:$4 sm:$0xff]   ;;  %v8948_v37 = vld [vmem:[#allocation14 + $0xc88] ss:$28 sps:$4 sm:$0xff]  }
 0x4d5   : > { %6957 = vst [vmem:[%s9959_s16 + $0x38] sm:$0xff] %v8995_v0  ;;  %6683 = vmatprep.subr.bf16.mxu0 %v8905_v17  ;;  %7968 = vmatprep.subr.bf16.mxu1 %v8906_v44  ;;  %v8952_v17 = vld [vmem:[#allocation14 + $0x750] ss:$28 sps:$4 sm:$0xff]  }
 0x4d6   : > { %v8997_v12 = vpop.eup %8996  ;;  %v8955_v44 = vld [vmem:[#allocation14 + $0xc54] ss:$28 sps:$4 sm:$0xff]  }
 0x4d7   : > { %6958 = vst [vmem:[%s9959_s16 + $0x40] sm:$0xff] %v8997_v12  ;;  %v8953_v0 = vld [vmem:[#allocation14 + $0xc50] ss:$28 sps:$4 sm:$0xff]   ;;  %v9976_v12 = vld [vmem:[#allocation14 + $0xc20] ss:$28 sps:$4 sm:$0xff]  }
 0x4d8   : > { %v8999_v61 = vpop.eup %8998  ;;  %6684 = vmatpush1.bf16.msra.mxu0 %v8903_v54  ;;  %7969 = vmatpush3.bf16.msra.mxu1 %v8907_v30  ;;  %v8957_v54 = vld [vmem:[#allocation14 + $0x718] ss:$28 sps:$4 sm:$0xff]   ;;  %v8958_v30 = vld [vmem:[#allocation14 + $0x6e0] ss:$28 sps:$4 sm:$0xff]  }
 0x4d9   : > { %6964 = vst [vmem:[%s9959_s16 + $0x70] sm:$0xff] %v8999_v61  ;;  %6685 = vmatprep.subr.bf16.mxu0 %v8910_v43  ;;  %7970 = vmatprep.subr.bf16.mxu1 %v8911_v51  ;;  %v9973_v43 = vld [vmem:[#allocation14 + $0xde0] ss:$28 sps:$4 sm:$0xff]   ;;  %v8962_v61 = vld [vmem:[#allocation14 + $0x6a8] ss:$28 sps:$4 sm:$0xff]  }
 0x4da   : > { %v9001_v59 = vpop.eup %9000  ;;  %v8960_v51 = vld [vmem:[#allocation14 + $0x520] ss:$28 sps:$4 sm:$0xff]  }
 0x4db   : > { %6965 = vst [vmem:[%s9959_s16 + $0x78] sm:$0xff] %v9001_v59  ;;  %v9988_v59 = vld [vmem:[#allocation14 + $0xd70] ss:$28 sps:$4 sm:$0xff]  }
 0x4dc   : > { %v9003_v47 = vpop.eup %9002  ;;  %6686 = vmatpush1.bf16.msra.mxu0 %v8908_v1  ;;  %7971 = vmatpush3.bf16.msra.mxu1 %v8912_v46  ;;  %v9979_v1 = vld [vmem:[#allocation14 + $0xda8] ss:$28 sps:$4 sm:$0xff]  }
 0x4dd   : > { %6971 = vst [vmem:[%s9959_s16 + $0xa8] sm:$0xff] %v9003_v47  ;;  %6687 = vmatprep.subr.bf16.mxu0 %v8915_v31  ;;  %7972 = vmatprep.subr.bf16.mxu1 %v8916_v33  ;;  %v8964_v46 = vld [vmem:[#allocation14 + $0x4e8] ss:$28 sps:$4 sm:$0xff]   ;;  %v8966_v33 = vld [vmem:[#allocation14 + $0x670] ss:$28 sps:$4 sm:$0xff]  }
 0x4de   : > { %v9005_v15 = vpop.eup %9004  ;;  %v9985_v31 = vld [vmem:[#allocation14 + $0xbe8] ss:$28 sps:$4 sm:$0xff]   ;;  %v8968_v47 = vld [vmem:[#allocation14 + $0x4b0] ss:$28 sps:$4 sm:$0xff]  }
 0x4df   : > { %6972 = vst [vmem:[%s9959_s16 + $0xb0] sm:$0xff] %v9005_v15  ;;  %v8975_v15 = vld [vmem:[#allocation14 + $0xd00] ss:$28 sps:$4 sm:$0xff]  }
 0x4e0   : > { %6688 = vmatpush1.bf16.msra.mxu0 %v8913_v7  ;;  %7973 = vmatpush3.bf16.msra.mxu1 %v8917_v42  ;;  %v8970_v7 = vld [vmem:[#allocation14 + $0x638] ss:$28 sps:$4 sm:$0xff]  }
 0x4e1   : > { %6689 = vmatprep.subr.bf16.mxu0 %v8920_v9  ;;  %8014 = vmatprep.subr.bf16.mxu1 %v8921_v40  ;;  %v8972_v42 = vld [vmem:[#allocation14 + $0x478] ss:$28 sps:$4 sm:$0xff]   ;;  %v8974_v40 = vld [vmem:[#allocation14 + $0x600] ss:$28 sps:$4 sm:$0xff]  }
 0x4e2   : > { %v8973_v9 = vld [vmem:[#allocation14 + $0xb78] ss:$28 sps:$4 sm:$0xff]  }
 0x4e3   : > { %6759 = vmatmul.mubr.bf16.vlgmr.msra.gmra.mxu1 %v9798_v22  ;;  %v8933_v22 = vld [vmem:[#allocation14 + $0xd30] ss:$28 sps:$4 sm:$0xff]  }
 0x4e4   : > { %6690 = vmatpush2.bf16.msra.mxu0 %v8918_v3  ;;  %6766 = vmatprep.mubr.bf16.mxu1 %v9801_v26  ;;  %v8937_v26 = vld [vmem:[#allocation14 + $0x7f8] ss:$28 sps:$4 sm:$0xff]   ;;  %v8976_v3 = vld [vmem:[#allocation14 + $0x440] ss:$28 sps:$4 sm:$0xff]  }
 0x4e5   : > { %8015 = vmatpush3.bf16.msra.mxu1 %v8922_v53  ;;  %6691 = vmatprep.subr.bf16.mxu0 %v8925_v63  ;;  %v8977_v53 = vld [vmem:[#allocation14 + $0xb40] ss:$28 sps:$4 sm:$0xff]   ;;  %v6336_v63 = vpop.f32.mrf.mxu1 }
 0x4e6   : > { %8016 = vmatprep.subr.bf16.mxu1 %v8926_v21  ;;  %v8981_v21 = vld [vmem:[#allocation14 + $0xb08] ss:$28 sps:$4 sm:$0xff]  }
 0x4e8   : > { %6692 = vmatpush2.bf16.msra.mxu0 %v8923_v55  ;;  %v8982_v55 = vld [vmem:[#allocation14 + $0x590] ss:$28 sps:$4 sm:$0xff]  }
 0x4e9   : > { %8017 = vmatpush3.bf16.msra.mxu1 %v8927_v45  ;;  %6693 = vmatprep.subr.bf16.mxu0 %v8930_v36  ;;  %v6338_v45 = vpop.f32.mrf.mxu1  ;;  %v8983_v36 = vld [vmem:[#allocation14 + $0xc90] ss:$28 sps:$4 sm:$0xff]  }
 0x4ea   : > { %8018 = vmatprep.subr.bf16.mxu1 %v8931_v58  ;;  %v8984_v58 = vld [vmem:[#allocation14 + $0x3d0] ss:$28 sps:$4 sm:$0xff]  }
 0x4eb   : > { %6767 = vmatmul.mubr.bf16.gmra.mxu1 %v9807_v49  ;;  %v8943_v49 = vld [vmem:[#allocation14 + $0xcc0] ss:$28 sps:$4 sm:$0xff]  }
 0x4ec   : > { %6694 = vmatpush2.bf16.msra.mxu0 %v8928_v39  ;;  %6856 = vmatprep.mubr.bf16.mxu1 %v9832_v8  ;;  %v8947_v8 = vld [vmem:[#allocation14 + $0x788] ss:$28 sps:$4 sm:$0xff]   ;;  %v8985_v39 = vld [vmem:[#allocation14 + $0xad0] ss:$28 sps:$4 sm:$0xff]  }
 0x4ed   : > { %8019 = vmatpush3.bf16.msra.mxu1 %v8932_v24  ;;  %6695 = vmatprep.subr.bf16.mxu0 %v8935_v41  ;;  %v8986_v24 = vld [vmem:[#allocation14 + $0x558] ss:$28 sps:$4 sm:$0xff]   ;;  %v6340_v41 = vpop.f32.mrf.mxu1 }
 0x4ee   : > { %8020 = vmatprep.subr.bf16.mxu1 %v8936_v19  ;;  %v8987_v19 = vld [vmem:[#allocation14 + $0xc58] ss:$28 sps:$4 sm:$0xff]  }
 0x4f0   : > { %6696 = vmatpush2.bf16.msra.mxu0 %v8933_v22  ;;  %v8988_v22 = vld [vmem:[#allocation14 + $0x398] ss:$28 sps:$4 sm:$0xff]  }
 0x4f1   : > { %8021 = vmatpush3.bf16.msra.mxu1 %v8937_v26  ;;  %6697 = vmatprep.subr.bf16.mxu0 %v8940_v10  ;;  %v8989_v26 = vld [vmem:[#allocation14 + $0xa98] ss:$28 sps:$4 sm:$0xff]   ;;  %v6342_v10 = vpop.f32.mrf.mxu1 }
 0x4f2   : > { %8022 = vmatprep.subr.bf16.mxu1 %v8941_v11 }
 0x4f3   : > { %v6346_v11 = vpop.f32.mrf.mxu1 }
 0x4f4   : > { %6698 = vmatpush2.bf16.msra.mxu0 %v8938_v13 }
 0x4f5   : > { %8023 = vmatpush3.bf16.msra.mxu1 %v8942_v38  ;;  %6699 = vmatprep.subr.bf16.mxu0 %v8945_v50  ;;  %v6348_v38 = vpop.f32.mrf.mxu1 }
 0x4f6   : > { %8024 = vmatprep.subr.bf16.mxu1 %v8946_v52 }
 0x4f7   : > { %v6350_v52 = vpop.f32.mrf.mxu1 }
 0x4f8   : > { %6700 = vmatpush2.bf16.msra.mxu0 %v8943_v49 }
 0x4f9   : > { %8025 = vmatpush3.bf16.msra.mxu1 %v8947_v8  ;;  %6701 = vmatprep.subr.bf16.mxu0 %v8950_v62 }
 0x4fa   : > { %8026 = vmatprep.subr.bf16.mxu1 %v8951_v56  ;;  %v3762_v56 = vrot.slane %v9910_v16, %v9683_v5 }
 0x4fc   : > { %6702 = vmatpush2.bf16.msra.mxu0 %v8948_v37 }
 0x4fd   : > { %8027 = vmatpush3.bf16.msra.mxu1 %v8952_v17  ;;  %6703 = vmatprep.subr.bf16.mxu0 %v8955_v44  ;;  %v6337_v17 = vadd.f32 %v6336_v63, %v3762_v56 }
 0x4fe   : > { %8028 = vmatprep.subr.bf16.mxu1 %v8956_v20 }
 0x500   : > { %6704 = vmatpush2.bf16.msra.mxu0 %v8953_v0  ;;  %v6389_v13 = vpop.f32.mrf.mxu0 }
 0x501   : > { %8029 = vmatpush3.bf16.msra.mxu1 %v8957_v54  ;;  %7986 = vmatprep.subr.bf16.mxu0 %v8958_v30  ;;  %v6390_v0 = vadd.f32 %v6389_v13, %v6337_v17  ;;  %v6341_v30 = vadd.f32 %v6340_v41, %v3762_v56 }
 0x502   : > { %8070 = vmatprep.subr.bf16.mxu1 %v9973_v43  ;;  %v6391_v50 = vpop.f32.mrf.mxu0 }
 0x503   : > { %6706 = vmatmul.mubr.bf16.vlgmr.msra.gmra.mxu0 %v9853_v57 }
 0x504   : > { %6857 = vmatmul.mubr.bf16.vlgmr.msra.gmra.mxu1 %v9834_v14  ;;  %6715 = vmatprep.mubr.bf16.mxu0 %v9859_v25  ;;  %v9991_v14 = vld [vmem:[#allocation14 + $0xbb0] ss:$28 sps:$4 sm:$0xff]   ;;  %v6393_v49 = vpop.f32.mrf.mxu0 }
 0x505   : > { %7987 = vmatpush3.bf16.msra.mxu0 %v8960_v51  ;;  %6864 = vmatprep.mubr.bf16.mxu1 %v9838_v35  ;;  %v9995_v35 = vld [vmem:[#allocation14 + $0xd38] ss:$28 sps:$4 sm:$0xff]  }
 0x506   : > { %8078 = vmatpush3.bf16.msra.mxu1 %v9976_v12  ;;  %7988 = vmatprep.subr.bf16.mxu0 %v8962_v61  ;;  %v6394_v61 = vadd.f32 %v6393_v49, %v6341_v30 }
 0x507   : > { %8071 = vmatprep.subr.bf16.mxu1 %v9979_v1 }
 0x509   : > { %7989 = vmatpush3.bf16.msra.mxu0 %v8964_v46 }
 0x50a   : > { %8079 = vmatpush3.bf16.msra.mxu1 %v9985_v31  ;;  %7990 = vmatprep.subr.bf16.mxu0 %v8966_v33 }
 0x50b   : > { %6716 = vmatmul.mubr.bf16.gmra.mxu0 %v9861_v32  ;;  %8072 = vmatprep.subr.bf16.mxu1 %v9988_v59 }
 0x50c   : > { %6865 = vmatmul.mubr.bf16.gmra.mxu1 %v9840_v23  ;;  %6807 = vmatprep.mubr.bf16.mxu0 %v9811_v6  ;;  %v8978_v23 = vld [vmem:[#allocation14 + $0x5c8] ss:$28 sps:$4 sm:$0xff]  }
 0x50d   : > { %7991 = vmatpush3.bf16.msra.mxu0 %v8968_v47  ;;  %6913 = vmatprep.mubr.bf16.mxu1 %v9859_v25  ;;  %v8979_v6 = vld [vmem:[#allocation14 + $0xcc8] ss:$28 sps:$4 sm:$0xff]  }
 0x50e   : > { %8080 = vmatpush3.bf16.msra.mxu1 %v9991_v14  ;;  %7992 = vmatprep.subr.bf16.mxu0 %v8970_v7  ;;  %v8980_v25 = vld [vmem:[#allocation14 + $0x408] ss:$28 sps:$4 sm:$0xff]  }
 0x50f   : > { %8073 = vmatprep.subr.bf16.mxu1 %v9995_v35 }
 0x511   : > { %7993 = vmatpush3.bf16.msra.mxu0 %v8972_v42 }
 0x512   : > { %8081 = vmatpush3.bf16.msra.mxu1 %v8973_v9  ;;  %7994 = vmatprep.subr.bf16.mxu0 %v8974_v40 }
 0x513   : > { %8074 = vmatprep.subr.bf16.mxu1 %v8975_v15 }
 0x515   : > { %7995 = vmatpush3.bf16.msra.mxu0 %v8976_v3 }
 0x516   : > { %8082 = vmatpush3.bf16.msra.mxu1 %v8977_v53  ;;  %7996 = vmatprep.subr.bf16.mxu0 %v8978_v23 }
 0x517   : > { %8075 = vmatprep.subr.bf16.mxu1 %v8979_v6 }
 0x519   : > { %7997 = vmatpush3.bf16.msra.mxu0 %v8980_v25 }
 0x51a   : > { %8083 = vmatpush3.bf16.msra.mxu1 %v8981_v21  ;;  %7998 = vmatprep.subr.bf16.mxu0 %v8982_v55 }
 0x51b   : > { %8076 = vmatprep.subr.bf16.mxu1 %v8983_v36 }
 0x51d   : > { %7999 = vmatpush3.bf16.msra.mxu0 %v8984_v58 }
 0x51e   : > { %8084 = vmatpush3.bf16.msra.mxu1 %v8985_v39  ;;  %8000 = vmatprep.subr.bf16.mxu0 %v8986_v24 }
 0x51f   : > { %8077 = vmatprep.subr.bf16.mxu1 %v8987_v19 }
 0x521   : > { %8001 = vmatpush3.bf16.msra.mxu0 %v8988_v22 }
 0x522   : > { %8085 = vmatpush3.bf16.msra.mxu1 %v8989_v26  ;;  %8042 = vmatprep.subr.bf16.mxu0 %v9973_v43 }
 0x524   : > { %6808 = vmatmul.mubr.bf16.vlgmr.msra.gmra.mxu0 %v9813_v60  ;;  %v6352_v60 = vpop.f32.mrf.mxu1 }
 0x525   : > { %6914 = vmatmul.mubr.bf16.vlgmr.msra.gmra.mxu1 %v9861_v32  ;;  %6815 = vmatprep.mubr.bf16.mxu0 %v9818_v29  ;;  %v6395_v29 = vpop.f32.mrf.mxu0 }
 0x526   : > { %8043 = vmatpush3.bf16.msra.mxu0 %v9976_v12  ;;  %v6442_v32 = vpop.f32.mrf.mxu1 }
 0x527   : > { %8044 = vmatprep.subr.bf16.mxu0 %v9979_v1  ;;  %v6399_v8 = vpop.f32.mrf.mxu0  ;;  %v6443_v12 = vadd.f32 %v6442_v32, %v6390_v0 }
 0x528   : > { %v6444_v62 = vpop.f32.mrf.mxu1 }
 0x529   : > { %v6401_v37 = vpop.f32.mrf.mxu0 }
 0x52a   : > { %8045 = vmatpush3.bf16.msra.mxu0 %v9985_v31  ;;  %v6347_v31 = vadd.f32 %v6346_v11, %v3762_v56 }
 0x52b   : > { %8046 = vmatprep.subr.bf16.mxu0 %v9988_v59  ;;  %v6403_v44 = vpop.f32.mrf.mxu0 }
 0x52c   : > { %6816 = vmatmul.mubr.bf16.gmra.mxu0 %v9820_v34  ;;  %v3766_v34 = vrot.slane %v9910_v16, %v9680_v4 }
 0x52d   : > { %6905 = vmatprep.mubr.bf16.mxu0 %v9851_v48  ;;  %v6446_v48 = vpop.f32.mrf.mxu1  ;;  %v6405_v51 = vpop.f32.mrf.mxu0 }
 0x52e   : > { %8047 = vmatpush3.bf16.msra.mxu0 %v9991_v14  ;;  %v6339_v20 = vadd.f32 %v6338_v45, %v3766_v34  ;;  %v6343_v5 = vadd.f32 %v6342_v10, %v3766_v34  ;;  %v6349_v47 = vadd.f32 %v6348_v38, %v3766_v34  ;;  %v6447_v7 = vadd.f32 %v6446_v48, %v6394_v61 }
 0x52f   : > { %8048 = vmatprep.subr.bf16.mxu0 %v9995_v35  ;;  %v6448_v54 = vpop.f32.mrf.mxu1  ;;  %v6400_v35 = vadd.f32 %v6399_v8, %v6347_v31  ;;  %v6353_v63 = vadd.f32 %v6352_v60, %v3766_v34 }
 0x530   : > { %v6392_v43 = vadd.f32 %v6391_v50, %v6339_v20  ;;  %v6396_v33 = vadd.f32 %v6395_v29, %v6343_v5 }
 0x531   : > { %v6452_v1 = vpop.f32.mrf.mxu1 }
 0x532   : > { %8049 = vmatpush3.bf16.msra.mxu0 %v8973_v9  ;;  %v6445_v4 = vadd.f32 %v6444_v62, %v6392_v43  ;;  %v6351_v9 = vadd.f32 %v6350_v52, %v3762_v56  ;;  %v6449_v3 = vadd.f32 %v6448_v54, %v6396_v33  ;;  %v6453_v25 = vadd.f32 %v6452_v1, %v6400_v35 }
 0x533   : > { %8050 = vmatprep.subr.bf16.mxu0 %v8975_v15  ;;  %v6454_v40 = vpop.f32.mrf.mxu1  ;;  %v3770_v35 = vrot.slane %v9910_v16, %v1463_v2 }
 0x535   : > { %v6456_v45 = vpop.f32.mrf.mxu1 }
 0x536   : > { %8051 = vmatpush3.bf16.msra.mxu0 %v8977_v53  ;;  %v6402_v53 = vadd.f32 %v6401_v37, %v6349_v47 }
 0x537   : > { %8052 = vmatprep.subr.bf16.mxu0 %v8979_v6  ;;  %v6458_v22 = vpop.f32.mrf.mxu1 }
 0x538   : > { %v6455_v58 = vadd.f32 %v6454_v40, %v6402_v53  ;;  %v3774_v40 = vrot.slane %v9910_v16, %v1467_v18 }
 0x53a   : > { %8053 = vmatpush3.bf16.msra.mxu0 %v8981_v21  ;;  %v6404_v21 = vadd.f32 %v6403_v44, %v6351_v9 }
 0x53b   : > { %8054 = vmatprep.subr.bf16.mxu0 %v8983_v36 }
 0x53e   : > { %8055 = vmatpush3.bf16.msra.mxu0 %v8985_v39  ;;  %v6406_v39 = vadd.f32 %v6405_v51, %v6353_v63 }
 0x53f   : > { %8056 = vmatprep.subr.bf16.mxu0 %v8987_v19 }
 0x540   : > { %v6459_v10 = vadd.f32 %v6458_v22, %v6406_v39 }
 0x541   : > { %v6495_v46 = vpop.f32.mrf.mxu0  ;;  %v6548_v56 = vpop.f32.mrf.mxu1 }
 0x542   : > { %8057 = vmatpush3.bf16.msra.mxu0 %v8989_v26  ;;  %v6496_v59 = vadd.f32 %v6495_v46, %v6443_v12 }
 0x543   : > { %v6497_v14 = vpop.f32.mrf.mxu0  ;;  %v6550_v37 = vpop.f32.mrf.mxu1 }
 0x544   : > { %9006 = vtanh.f32 %v6496_v59  ;;  %v6498_v42 = vadd.f32 %v6497_v14, %v6445_v4 }
 0x545   : > { %6906 = vmatmul.mubr.bf16.vlgmr.msra.gmra.mxu0 %v9853_v57  ;;  %v6499_v15 = vpop.f32.mrf.mxu0  ;;  %v6457_v57 = vadd.f32 %v6456_v45, %v6404_v21  ;;  %v6552_v34 = vpop.f32.mrf.mxu1 }
 0x546   : > { %9008 = vtanh.f32 %v6498_v42  ;;  %v6500_v23 = vadd.f32 %v6499_v15, %v6447_v7  ;;  %v6549_v15 = vadd.f32 %v6548_v56, %v3770_v35 }
 0x547   : > { %v6501_v6 = vpop.f32.mrf.mxu0  ;;  %v6554_v48 = vpop.f32.mrf.mxu1 }
 0x548   : > { %9010 = vtanh.f32 %v6500_v23  ;;  %v6502_v55 = vadd.f32 %v6501_v6, %v6449_v3  ;;  %v6551_v23 = vadd.f32 %v6550_v37, %v3774_v40  ;;  %v6553_v6 = vadd.f32 %v6552_v34, %v3770_v35 }
 0x549   : > { %v6505_v36 = vpop.f32.mrf.mxu0  ;;  %v6558_v17 = vpop.f32.mrf.mxu1  ;;  %v6555_v45 = vadd.f32 %v6554_v48, %v3774_v40 }
 0x54a   : > { %9012 = vtanh.f32 %v6502_v55  ;;  %v6506_v24 = vadd.f32 %v6505_v36, %v6453_v25  ;;  %v6559_v39 = vadd.f32 %v6558_v17, %v3770_v35 }
 0x54b   : > { %v6507_v41 = vpop.f32.mrf.mxu0  ;;  %v6560_v44 = vpop.f32.mrf.mxu1 }
 0x54c   : > { %9014 = vtanh.f32 %v6506_v24  ;;  %v6508_v19 = vadd.f32 %v6507_v41, %v6455_v58  ;;  %v6561_v16 = vadd.f32 %v6560_v44, %v3774_v40 }
 0x54d   : > { %v6509_v26 = vpop.f32.mrf.mxu0  ;;  %v6562_v20 = vpop.f32.mrf.mxu1 }
 0x54e   : > { %9016 = vtanh.f32 %v6508_v19  ;;  %v6510_v11 = vadd.f32 %v6509_v26, %v6457_v57 }
 0x54f   : > { %v6511_v13 = vpop.f32.mrf.mxu0  ;;  %v6564_v0 = vpop.f32.mrf.mxu1 }
 0x550   : > { %9018 = vtanh.f32 %v6510_v11  ;;  %v6512_v38 = vadd.f32 %v6511_v13, %v6459_v10  ;;  %v6563_v11 = vadd.f32 %v6562_v20, %v3770_v35 }
 0x551   : > { %v9007_v50 = vpop.eup %9006 }
 0x552   : > { %6952 = vst [vmem:[%s9959_s16 + $0x10] sm:$0xff] %v9007_v50  ;;  %9020 = vtanh.f32 %v6512_v38 }
 0x553   : > { %v9009_v52 = vpop.eup %9008 }
 0x554   : > { %6953 = vst [vmem:[%s9959_s16 + $0x18] sm:$0xff] %v9009_v52 }
 0x555   : > { %v9011_v49 = vpop.eup %9010 }
 0x556   : > { %6959 = vst [vmem:[%s9959_s16 + $0x48] sm:$0xff] %v9011_v49 }
 0x557   : > { %v9013_v60 = vpop.eup %9012 }
 0x558   : > { %6960 = vst [vmem:[%s9959_s16 + $0x50] sm:$0xff] %v9013_v60  ;;  %v6565_v60 = vadd.f32 %v6564_v0, %v3774_v40 }
 0x559   : > { %v9015_v29 = vpop.eup %9014 }
 0x55a   : > { %6966 = vst [vmem:[%s9959_s16 + $0x80] sm:$0xff] %v9015_v29 }
 0x55b   : > { %v9017_v32 = vpop.eup %9016 }
 0x55c   : > { %6967 = vst [vmem:[%s9959_s16 + $0x88] sm:$0xff] %v9017_v32 }
 0x55d   : > { %v9019_v8 = vpop.eup %9018 }
 0x55e   : > { %6973 = vst [vmem:[%s9959_s16 + $0xb8] sm:$0xff] %v9019_v8 }
 0x55f   : > { %v9021_v62 = vpop.eup %9020 }
 0x560   : > { %6974 = vst [vmem:[%s9959_s16 + $0xc0] sm:$0xff] %v9021_v62 }
 0x582   : > { %v6654_v54 = vpop.f32.mrf.mxu1  ;;  %v6601_v61 = vpop.f32.mrf.mxu0 }
 0x583   : > { %v6602_v63 = vadd.f32 %v6601_v61, %v6549_v15 }
 0x584   : > { %v6656_v30 = vpop.f32.mrf.mxu1  ;;  %v6603_v46 = vpop.f32.mrf.mxu0 }
 0x585   : > { %v6604_v25 = vadd.f32 %v6603_v46, %v6551_v23  ;;  %v6655_v2 = vadd.f32 %v6654_v54, %v6602_v63 }
 0x586   : > { %v6658_v43 = vpop.f32.mrf.mxu1  ;;  %v6605_v33 = vpop.f32.mrf.mxu0 }
 0x587   : > { %v6606_v36 = vadd.f32 %v6605_v33, %v6553_v6  ;;  %v6657_v24 = vadd.f32 %v6656_v30, %v6604_v25 }
 0x588   : > { %v6660_v51 = vpop.f32.mrf.mxu1  ;;  %v6607_v47 = vpop.f32.mrf.mxu0 }
 0x589   : > { %v6608_v41 = vadd.f32 %v6607_v47, %v6555_v45  ;;  %v6659_v22 = vadd.f32 %v6658_v43, %v6606_v36 }
 0x58a   : > { %v6664_v5 = vpop.f32.mrf.mxu1  ;;  %v6611_v7 = vpop.f32.mrf.mxu0 }
 0x58b   : > { %v6612_v26 = vadd.f32 %v6611_v7, %v6559_v39  ;;  %v6661_v38 = vadd.f32 %v6660_v51, %v6608_v41 }
 0x58c   : > { %v6666_v12 = vpop.f32.mrf.mxu1  ;;  %v6613_v9 = vpop.f32.mrf.mxu0 }
 0x58d   : > { %v6614_v50 = vadd.f32 %v6613_v9, %v6561_v16  ;;  %v6665_v32 = vadd.f32 %v6664_v5, %v6612_v26 }
 0x58e   : > { %v6668_v1 = vpop.f32.mrf.mxu1  ;;  %v6615_v53 = vpop.f32.mrf.mxu0 }
 0x58f   : > { %v6616_v8 = vadd.f32 %v6615_v53, %v6563_v11  ;;  %v6667_v34 = vadd.f32 %v6666_v12, %v6614_v50 }
 0x590   : > { %v6670_v31 = vpop.f32.mrf.mxu1  ;;  %v6617_v55 = vpop.f32.mrf.mxu0 }
 0x591   : > { %v6618_v48 = vadd.f32 %v6617_v55, %v6565_v60  ;;  %v6669_v20 = vadd.f32 %v6668_v1, %v6616_v8 }
 0x593   : > { %v6671_v43 = vadd.f32 %v6670_v31, %v6618_v48 }
 0x5a3   : > { %v10027_v4 = vpop.f32.mrf.mxu1 }
 0x5a5   : > { %v10029_v59 = vpop.f32.mrf.mxu1 }
 0x5a7   : > { %v10031_v14 = vpop.f32.mrf.mxu1 }
 0x5a9   : > { %v10036_v42 = vpop.f32.mrf.mxu1 }
 0x5ab   : > { %v10041_v3 = vpop.f32.mrf.mxu1 }
 0x5ad   : > { %v10043_v21 = vpop.f32.mrf.mxu1 }
 0x5ae   : > { %v7982_v36 = vadd.f32 %v10043_v21, %v10041_v3 }
 0x5af   : > { %v10045_v57 = vpop.f32.mrf.mxu1 }
 0x5b1   : > { %v7984_v52 = vpop.f32.mrf.mxu1 }
 0x5c3   : > { %v6707_v58 = vpop.f32.mrf.mxu0 }
 0x5c4   : > { %v6708_v18 = vadd.f32 %v6707_v58, %v6655_v2  ;;  %v10047_v62 = vpop.f32.mrf.mxu1 }
 0x5c5   : > { %v6709_v19 = vpop.f32.mrf.mxu0 }
 0x5c6   : > { %9022 = vtanh.f32 %v6708_v18  ;;  %v6710_v10 = vadd.f32 %v6709_v19, %v6657_v24  ;;  %v10049_v54 = vpop.f32.mrf.mxu1  ;;  %v9046_v24 = vld [vmem:[#allocation16] sm:$0xff]  ;;  %v7985_v19 = vadd.f32 %v7984_v52, %v10045_v57  ;;  %v7976_v57 = vadd.f32 %v10029_v59, %v10027_v4 }
 0x5c7   : > { %v6711_v13 = vpop.f32.mrf.mxu0  ;;  %v3778_v41 = vrot.slane %v9046_v24, %v1471_v27 }
 0x5c8   : > { %9024 = vtanh.f32 %v6710_v10  ;;  %v6712_v49 = vadd.f32 %v6711_v13, %v6659_v22  ;;  %v10051_v12 = vpop.f32.mrf.mxu1 }
 0x5c9   : > { %v6713_v29 = vpop.f32.mrf.mxu0  ;;  %v6769_v16 = vadd.f32 %v7982_v36, %v3778_v41  ;;  %v6772_v50 = vadd.f32 %v7985_v19, %v3778_v41 }
 0x5ca   : > { %9026 = vtanh.f32 %v6712_v49  ;;  %v6714_v56 = vadd.f32 %v6713_v29, %v6661_v38  ;;  %v10055_v33 = vpop.f32.mrf.mxu1 }
 0x5cb   : > { %v6717_v37 = vpop.f32.mrf.mxu0 }
 0x5cc   : > { %9028 = vtanh.f32 %v6714_v56  ;;  %v6718_v17 = vadd.f32 %v6717_v37, %v6665_v32  ;;  %v8036_v7 = vpop.f32.mrf.mxu1  ;;  %v6761_v37 = vadd.f32 %v7976_v57, %v3778_v41 }
 0x5cd   : > { %v6719_v44 = vpop.f32.mrf.mxu0 }
 0x5ce   : > { %9030 = vtanh.f32 %v6718_v17  ;;  %v6720_v0 = vadd.f32 %v6719_v44, %v6667_v34  ;;  %v8037_v40 = vpop.f32.mrf.mxu1  ;;  %v7979_v34 = vadd.f32 %v10036_v42, %v10031_v14  ;;  %v8035_v14 = vadd.f32 %v10055_v33, %v10051_v12 }
 0x5cf   : > { %v6721_v30 = vpop.f32.mrf.mxu0  ;;  %v8038_v11 = vadd.f32 %v8037_v40, %v8036_v7 }
 0x5d0   : > { %9032 = vtanh.f32 %v6720_v0  ;;  %v6722_v51 = vadd.f32 %v6721_v30, %v6669_v20  ;;  %v8039_v23 = vpop.f32.mrf.mxu1  ;;  %v6764_v0 = vadd.f32 %v7979_v34, %v3778_v41  ;;  %v8032_v30 = vadd.f32 %v10049_v54, %v10047_v62 }
 0x5d1   : > { %v6723_v5 = vpop.f32.mrf.mxu0 }
 0x5d2   : > { %9034 = vtanh.f32 %v6722_v51  ;;  %v6724_v61 = vadd.f32 %v6723_v5, %v6671_v43  ;;  %v8040_v6 = vpop.f32.mrf.mxu1 }
 0x5d3   : > { %v9023_v46 = vpop.eup %9022  ;;  %v8041_v29 = vadd.f32 %v8040_v6, %v8039_v23 }
 0x5d4   : > { %6954 = vst [vmem:[%s9959_s16 + $0x20] sm:$0xff] %v9023_v46  ;;  %9036 = vtanh.f32 %v6724_v61 }
 0x5d5   : > { %v9025_v1 = vpop.eup %9024 }
 0x5d6   : > { %6955 = vst [vmem:[%s9959_s16 + $0x28] sm:$0xff] %v9025_v1 }
 0x5d7   : > { %v9027_v31 = vpop.eup %9026 }
 0x5d8   : > { %6961 = vst [vmem:[%s9959_s16 + $0x58] sm:$0xff] %v9027_v31 }
 0x5d9   : > { %v9029_v47 = vpop.eup %9028 }
 0x5da   : > { %6962 = vst [vmem:[%s9959_s16 + $0x60] sm:$0xff] %v9029_v47 }
 0x5db   : > { %v9031_v35 = vpop.eup %9030 }
 0x5dc   : > { %6968 = vst [vmem:[%s9959_s16 + $0x90] sm:$0xff] %v9031_v35 }
 0x5dd   : > { %v9033_v9 = vpop.eup %9032 }
 0x5de   : > { %6969 = vst [vmem:[%s9959_s16 + $0x98] sm:$0xff] %v9033_v9 }
 0x5df   : > { %v9035_v15 = vpop.eup %9034 }
 0x5e0   : > { %6975 = vst [vmem:[%s9959_s16 + $0xc8] sm:$0xff] %v9035_v15 }
 0x5e1   : > { %v9037_v53 = vpop.eup %9036 }
 0x5e2   : > { %6976 = vst [vmem:[%s9959_s16 + $0xd0] sm:$0xff] %v9037_v53 }
 0x5e4   : > { %v8002_v63 = vpop.f32.mrf.mxu0 }
 0x5e5   : > { %v8064_v55 = vpop.f32.mrf.mxu1 }
 0x5e6   : > { %v8003_v25 = vpop.f32.mrf.mxu0 }
 0x5e7   : > { %v8065_v58 = vpop.f32.mrf.mxu1  ;;  %v8004_v52 = vadd.f32 %v8003_v25, %v8002_v63 }
 0x5e8   : > { %v8005_v45 = vpop.f32.mrf.mxu0  ;;  %v8066_v49 = vadd.f32 %v8065_v58, %v8064_v55 }
 0x5e9   : > { %v8067_v26 = vpop.f32.mrf.mxu1  ;;  %v6810_v17 = vadd.f32 %v8004_v52, %v6761_v37 }
 0x5ea   : > { %v8006_v2 = vpop.f32.mrf.mxu0 }
 0x5eb   : > { %v8068_v21 = vpop.f32.mrf.mxu1  ;;  %v8007_v44 = vadd.f32 %v8006_v2, %v8005_v45  ;;  %v6859_v59 = vadd.f32 %v8032_v30, %v6810_v17 }
 0x5ec   : > { %v8008_v39 = vpop.f32.mrf.mxu0  ;;  %v8069_v27 = vadd.f32 %v8068_v21, %v8067_v26 }
 0x5ed   : > { %v6813_v4 = vadd.f32 %v8007_v44, %v6764_v0 }
 0x5ee   : > { %v8009_v18 = vpop.f32.mrf.mxu0 }
 0x5ef   : > { %v8010_v22 = vadd.f32 %v8009_v18, %v8008_v39  ;;  %v6862_v62 = vadd.f32 %v8035_v14, %v6813_v4 }
 0x5f0   : > { %v8011_v10 = vpop.f32.mrf.mxu0 }
 0x5f1   : > { %v6818_v13 = vadd.f32 %v8010_v22, %v6769_v16 }
 0x5f2   : > { %v8012_v38 = vpop.f32.mrf.mxu0 }
 0x5f3   : > { %v6867_v60 = vadd.f32 %v8038_v11, %v6818_v13  ;;  %v8013_v3 = vadd.f32 %v8012_v38, %v8011_v10 }
 0x5f5   : > { %v6916_v32 = vadd.f32 %v8066_v49, %v6867_v60  ;;  %v6821_v28 = vadd.f32 %v8013_v3, %v6772_v50 }
 0x5f7   : > { %9038 = vtanh.f32 %v6916_v32  ;;  %v6870_v8 = vadd.f32 %v8041_v29, %v6821_v28 }
 0x5f9   : > { %v6919_v56 = vadd.f32 %v8069_v27, %v6870_v8 }
 0x5fb   : > { %9040 = vtanh.f32 %v6919_v56 }
 0x604   : > { %v9039_v48 = vpop.eup %9038 }
 0x605   : > { %6970 = vst [vmem:[%s9959_s16 + $0xa0] sm:$0xff] %v9039_v48  ;;  %v8058_v20 = vpop.f32.mrf.mxu0 }
 0x607   : > { %v8059_v43 = vpop.f32.mrf.mxu0 }
 0x608   : > { %v9041_v51 = vpop.eup %9040  ;;  %v8060_v5 = vadd.f32 %v8059_v43, %v8058_v20 }
 0x609   : > { %6977 = vst [vmem:[%s9959_s16 + $0xd8] sm:$0xff] %v9041_v51  ;;  %v8061_v61 = vpop.f32.mrf.mxu0 }
 0x60a   : > { %v6908_v42 = vadd.f32 %v8060_v5, %v6859_v59 }
 0x60b   : > { %v8062_v46 = vpop.f32.mrf.mxu0 }
 0x60c   : > { %9042 = vtanh.f32 %v6908_v42  ;;  %v8063_v54 = vadd.f32 %v8062_v46, %v8061_v61 }
 0x60e   : > { %v6911_v1 = vadd.f32 %v8063_v54, %v6862_v62 }
 0x610   : > { %9044 = vtanh.f32 %v6911_v1 }
 0x619   : > { %v9043_v31 = vpop.eup %9042 }
 0x61a   : > { %6956 = vst [vmem:[%s9959_s16 + $0x30] sm:$0xff] %v9043_v31 }
 0x61d   : > { %v9045_v12 = vpop.eup %9044 }
 0x61e   : > { %6963 = vst [vmem:[%s9959_s16 + $0x68] sm:$0xff] %v9045_v12 }
 0x61f   : > { %9296 = shalt.err (!%p9293_p10)
}
 0x620   : > { %s9297_s3 = scalar_lea.hbm %s10084_s17, 3584  ;;  %s9301_s1 = scalar_lea.hbm %s10139_s9, 7168 }
 0x621   : > { %p9298_p11 = scmp.ne.s32.totalorder %s10084_s17, %s9297_s3  ;;  %p9302_p13 = scmp.lt.s32.totalorder %s10084_s17, %s10139_s9 }
 0x622   : > { %p9303_p0 = scmp.lt.s32.totalorder %s9301_s1, %s9297_s3 }
 0x623   : > { %p9299_p4 = pnand %p9298_p11, %p10169_p8 }
 0x624   : > { %p9304_p2 = por %p9303_p0, %p9302_p13 }
 0x625   : > { %p9300_p3 = pneg %p9299_p4 }
 0x627   : > { %p9305_p5 = pnand %p9304_p2, %p9300_p3 }
 0x629   : > { %9308 = shalt.err (!%p9305_p5)
}
 0x62a   : > { %s9386_s28 = smov 896   ;;  %s9387_s29 = smov 56  }
 0x62b   : > { %8122 = dma.vmem_to_hbm [thread:$0]  (%p10169_p8), %s10086_s27, 3584, %s10084_s17, %s6979_s14, %s9386_s28, %s9386_s28, %s9387_s29  }
 0x62c PF: > { %s7008_s25 = sand.u32 1, %s9351_s30   ;;  %p10170_p12 = scmp.ne.s32.totalorder %s10157_s23, 0 }
 0x62d   : > { %p10171_p1 = scmp.ge.s32.totalorder %s9363_s12, 2  ;;  %s7009_s15 = scalar_lea.sflag [#allocation4], %s7008_s25 }
 0x62f   : > { %p8154_p7 = pnand %p10171_p1, %p10170_p12 }
 0x631   : > { %p8155_p6 = pneg %p8154_p7 }
 0x633   : > { %9346 = dma.done.wait (%p8155_p6), %s7009_s15, 3584  }
 0x634   : > { %9348 = vsyncadd (%p8155_p6), %s7009_s15, 4294963712  ;;  %p26_p9 = scmp.ge.s32.totalorder %s9551_s19, 4   ;;  %s10172_s30 = smov %s9355_s10 }
 0x635   : > { %s10173_s10 = smov %s9359_s11  ;;  %s10174_s11 = smov %s9562_s13 }
 0x636   : > { %s10175_s12 = smov %s9551_s19  ;;  %28 = sbr.rel (!%p26_p9) target bundleno = 13 (0xd), region = 133 }
 0x63b   :  { %7014 = vsyncpa [#allocation3], 1 }
 0x63c   :  { %7016 = vsyncpa [#allocation3 + $0x1], 1 }
 0x63d   :  { %7017 = vsyncpa [#allocation6], 1 }
 0x63e   :  { %7018 = vsyncpa [#allocation9], 1 }
 0x63f   :  { %7019 = vsyncpa [#allocation12], 1 }
 0x640   :  { %7020 = vsyncpa [#allocation15], 1 }
 0x641   :  { %7021 = vsyncpa [#allocation4], 1 }
 0x642   :  { %7023 = vsyncpa [#allocation4 + $0x1], 1 }

</bundles_post_ra>
